<compile_context>
chip_gen: v6e
topology: v6e:2x2x1
jax: 0.10.0
libtpu: 0.0.40
codegen_flags: <defaults>
</compile_context>

<pallas_src>
import functools

import jax
import jax.numpy as jnp
from jax.experimental import pallas as pl
from jax.experimental.pallas import tpu as pltpu

EPS = 1e-5


# ---------------------------------------------------------------------------
# Pass 1: y = W1 @ x31 (written to HBM) + per-tile partial moments of (y, x25)
# ---------------------------------------------------------------------------
def _stats_kernel(w1_ref, x31_ref, x25_ref,
                  y_ref, sy_ref, sr_ref, cyy_ref, cyr_ref, crr_ref,
                  *, hw, lane_tile):
    x31 = x31_ref[...]            # (C_in,  T) streaming dtype
    x25 = x25_ref[...]            # (C_mid, T) streaming dtype

    if hw % lane_tile != 0:
        # Only traced in when the tile does not divide H*W (ragged tail exists):
        # zero out-of-bounds lanes so the moment sums stay exact.
        j = pl.program_id(1)
        valid = hw - j * lane_tile
        lane = jax.lax.broadcasted_iota(jnp.int32, (1, lane_tile), 1)
        mask = lane < valid
        x31 = jnp.where(mask, x31, jnp.zeros_like(x31))
        x25 = jnp.where(mask, x25, jnp.zeros_like(x25))

    # 1x1 conv == channel matmul (f32 accumulation on the MXU)
    y = jnp.dot(w1_ref[...], x31, preferred_element_type=jnp.float32)      # (C_mid, T) f32
    y_ref[...] = y.astype(y_ref.dtype)                                     # 16-ch intermediate

    x25f = x25.astype(jnp.float32)

    # Per-tile partial moments (each grid point owns its own output block -> fully parallel).
    sy_ref[...] = jnp.sum(y, axis=1, keepdims=True)                        # (C_mid, 1)
    sr_ref[...] = jnp.sum(x25f, axis=1, keepdims=True)                     # (C_mid, 1)
    dims = (((1,), (1,)), ((), ()))
    cyy_ref[...] = jax.lax.dot_general(y, y, dims, preferred_element_type=jnp.float32)
    cyr_ref[...] = jax.lax.dot_general(y, x25f, dims, preferred_element_type=jnp.float32)
    crr_ref[...] = jax.lax.dot_general(x25f, x25f, dims, preferred_element_type=jnp.float32)


# ---------------------------------------------------------------------------
# Tiny host-side fold of both BatchNorms into (A', B, c)
# ---------------------------------------------------------------------------
def _fold_params(sy, sr, cyy_p, cyr_p, crr_p, w2, g1, b1, g2, b2, count):
    mean_y = jnp.sum(sy, axis=(0, 1))[:, 0] / count
    mean_r = jnp.sum(sr, axis=(0, 1))[:, 0] / count
    cyy = jnp.sum(cyy_p, axis=(0, 1)) / count - jnp.outer(mean_y, mean_y)
    cyr = jnp.sum(cyr_p, axis=(0, 1)) / count - jnp.outer(mean_y, mean_r)
    crr = jnp.sum(crr_p, axis=(0, 1)) / count - jnp.outer(mean_r, mean_r)

    # BN1 (biased batch variance, training mode)
    var_y = jnp.diagonal(cyy)
    scale1 = g1 * jax.lax.rsqrt(var_y + EPS)
    shift1 = b1 - mean_y * scale1

    # u = scale1*y + shift1 + x25 ; z = W2 @ u
    cov_u = (scale1[:, None] * cyy * scale1[None, :]
             + scale1[:, None] * cyr
             + cyr.T * scale1[None, :]
             + crr)
    mean_u = scale1 * mean_y + shift1 + mean_r
    mean_z = w2 @ mean_u
    var_z = jnp.einsum('ij,jk,ik->i', w2, cov_u, w2)

    # BN2
    scale2 = g2 * jax.lax.rsqrt(var_z + EPS)
    shift2 = b2 - mean_z * scale2

    # out = A' @ y + B @ x25 + c
    mat_b = scale2[:, None] * w2                 # (C_in, C_mid)
    mat_ay = mat_b * scale1[None, :]             # (C_in, C_mid)
    bias = mat_b @ shift1 + shift2               # (C_in,)
    return mat_ay, mat_b, bias


# ---------------------------------------------------------------------------
# Pass 2: fully parallel tile-wise apply
# ---------------------------------------------------------------------------
def _apply_kernel(ay_ref, b_ref, c_ref, y_ref, x25_ref, out_ref):
    acc = jnp.dot(ay_ref[...], y_ref[...], preferred_element_type=jnp.float32)
    acc = acc + jnp.dot(b_ref[...], x25_ref[...], preferred_element_type=jnp.float32)
    out_ref[...] = (acc + c_ref[...]).astype(out_ref.dtype)


# ---------------------------------------------------------------------------
# Lane-tile selection: full HW if it fits, else largest 512-multiple <= cap,
# preferring a divisor of HW (keeps ragged-tail masking off the hot path).
# ---------------------------------------------------------------------------
def _pick_lane_tile(hw, max_lanes):
    if hw <= max_lanes:
        return hw
    base = (max_lanes // 512) * 512
    t = base
    while t >= 512:
        if hw % t == 0:
            return t
        t -= 512
    return base


# ---------------------------------------------------------------------------
# Wrapper
# ---------------------------------------------------------------------------
def m_forward(x31, x25, w1, g1, b1, w2, g2, b2, *,
              input_dtype=jnp.float32, out_dtype=jnp.float32,
              lane_tile=None, max_lane_tile=8192):
    """x31: (N, 48, H, W), x25: (N, 16, H, W) -> (N, 48, H, W)."""
    N, C_in, H, W = x31.shape
    C_mid = x25.shape[1]
    HW = H * W
    S = N * HW

    if lane_tile is None:
        lane_tile = _pick_lane_tile(HW, max_lane_tile)
    lane_tile = min(lane_tile, HW)
    assert lane_tile == HW or lane_tile % 128 == 0, "lane tile must be 128-multiple or full"
    num_t = pl.cdiv(HW, lane_tile)

    # Free reshapes: channels stay in the sublane dim, H*W becomes the lane dim.
    x31r = x31.reshape(N, C_in, HW).astype(input_dtype)
    x25r = x25.reshape(N, C_mid, HW).astype(input_dtype)
    w1c = w1.astype(input_dtype)

    cparams = pltpu.CompilerParams(
        dimension_semantics=("parallel", "parallel"),
        vmem_limit_bytes=32 * 1024 * 1024)

    # ---- pass 1: y + per-tile partial moments ----
    tile_spec_cin = pl.BlockSpec((None, C_in, lane_tile), lambda n, j: (n, 0, j))
    tile_spec_cmid = pl.BlockSpec((None, C_mid, lane_tile), lambda n, j: (n, 0, j))
    part_vec_spec = pl.BlockSpec((None, None, C_mid, 1), lambda n, j: (n, j, 0, 0))
    part_mat_spec = pl.BlockSpec((None, None, C_mid, C_mid), lambda n, j: (n, j, 0, 0))

    y_hbm, sy, sr, cyy_p, cyr_p, crr_p = pl.pallas_call(
        functools.partial(_stats_kernel, hw=HW, lane_tile=lane_tile),
        out_shape=(
            jax.ShapeDtypeStruct((N, C_mid, HW), input_dtype),            # y intermediate
            jax.ShapeDtypeStruct((N, num_t, C_mid, 1), jnp.float32),      # sum(y)
            jax.ShapeDtypeStruct((N, num_t, C_mid, 1), jnp.float32),      # sum(x25)
            jax.ShapeDtypeStruct((N, num_t, C_mid, C_mid), jnp.float32),  # y y^T
            jax.ShapeDtypeStruct((N, num_t, C_mid, C_mid), jnp.float32),  # y x25^T
            jax.ShapeDtypeStruct((N, num_t, C_mid, C_mid), jnp.float32),  # x25 x25^T
        ),
        grid=(N, num_t),
        in_specs=[
            pl.BlockSpec((C_mid, C_in), lambda n, j: (0, 0)),   # w1 (resident)
            tile_spec_cin,                                      # x31 tile
            tile_spec_cmid,                                     # x25 tile
        ],
        out_specs=(tile_spec_cmid, part_vec_spec, part_vec_spec,
                   part_mat_spec, part_mat_spec, part_mat_spec),
        compiler_params=cparams,
    )(w1c, x31r, x25r)

    # ---- fold both BN affines (tiny math) ----
    mat_ay, mat_b, bias = _fold_params(
        sy, sr, cyy_p, cyr_p, crr_p,
        w2.astype(jnp.float32), g1.astype(jnp.float32), b1.astype(jnp.float32),
        g2.astype(jnp.float32), b2.astype(jnp.float32), jnp.float32(S))
    bias2d = bias.reshape(C_in, 1).astype(jnp.float32)

    # ---- pass 2: apply ----
    out_flat = pl.pallas_call(
        _apply_kernel,
        out_shape=jax.ShapeDtypeStruct((N, C_in, HW), out_dtype),
        grid=(N, num_t),
        in_specs=[
            pl.BlockSpec((C_in, C_mid), lambda n, j: (0, 0)),   # A' (resident)
            pl.BlockSpec((C_in, C_mid), lambda n, j: (0, 0)),   # B  (resident)
            pl.BlockSpec((C_in, 1), lambda n, j: (0, 0)),       # c  (resident)
            tile_spec_cmid,                                     # y tile
            tile_spec_cmid,                                     # x25 tile
        ],
        out_specs=tile_spec_cin,
        compiler_params=cparams,
    )(mat_ay.astype(input_dtype), mat_b.astype(input_dtype), bias2d, y_hbm, x25r)

    return out_flat.reshape(N, C_in, H, W)


# ---------------------------------------------------------------------------
# Pure-JAX reference mirroring the PyTorch training-mode forward
# ---------------------------------------------------------------------------
def reference_forward(x31, x25, w1, g1, b1, w2, g2, b2):
    def bn(x, g, b):
        mean = jnp.mean(x, axis=(0, 2, 3), keepdims=True)
        var = jnp.mean((x - mean) ** 2, axis=(0, 2, 3), keepdims=True)
        return ((x - mean) * jax.lax.rsqrt(var + EPS) * g[None, :, None, None]
                + b[None, :, None, None])

    y = jnp.einsum('oc,nchw->nohw', w1, x31)
    u = bn(y, g1, b1) + x25
    z = jnp.einsum('oc,nchw->nohw', w2, u)
    return bn(z, g2, b2)


if __name__ == "__main__":
    key = jax.random.PRNGKey(0)
    ks = jax.random.split(key, 12)
    C_IN, C_MID = 48, 16

    # parameters (1x1 conv kernels squeezed to 2-D, BN affine as 1-D like PyTorch)
    w1 = jax.random.normal(ks[2], (C_MID, C_IN), dtype=jnp.float32) * 0.1
    w2 = jax.random.normal(ks[3], (C_IN, C_MID), dtype=jnp.float32) * 0.1
    g1 = 1.0 + 0.1 * jax.random.normal(ks[4], (C_MID,), dtype=jnp.float32)
    b1 = 0.1 * jax.random.normal(ks[5], (C_MID,), dtype=jnp.float32)
    g2 = 1.0 + 0.1 * jax.random.normal(ks[6], (C_IN,), dtype=jnp.float32)
    b2 = 0.1 * jax.random.normal(ks[7], (C_IN,), dtype=jnp.float32)

    run = jax.jit(m_forward,
                  static_argnames=("input_dtype", "out_dtype", "lane_tile", "max_lane_tile"))

    # --- config 1: module spec shape (1, 48/16, 56, 56), f32, full-HW lane tile ---
    N, H, W = 1, 56, 56
    x31 = jax.random.normal(ks[0], (N, C_IN, H, W), dtype=jnp.float32)
    x25 = jax.random.normal(ks[1], (N, C_MID, H, W), dtype=jnp.float32)
    out = jax.block_until_ready(run(x31, x25, w1, g1, b1, w2, g2, b2))
    ref = reference_forward(x31, x25, w1, g1, b1, w2, g2, b2)
    assert out.shape == (N, C_IN, H, W)
    assert jnp.allclose(out, ref, atol=1e-3, rtol=1e-3), "f32 mismatch vs reference"

    # --- config 2: bf16 streaming + bf16 output, batch 2, HW=400 (full-HW tile) ---
    N, H, W = 2, 20, 20
    x31b = jax.random.normal(ks[8], (N, C_IN, H, W), dtype=jnp.float32
                             ).astype(jnp.bfloat16).astype(jnp.float32)
    x25b = jax.random.normal(ks[9], (N, C_MID, H, W), dtype=jnp.float32
                             ).astype(jnp.bfloat16).astype(jnp.float32)
    out_b = jax.block_until_ready(run(x31b, x25b, w1, g1, b1, w2, g2, b2,
                                      input_dtype=jnp.bfloat16, out_dtype=jnp.bfloat16))
    ref_b = reference_forward(x31b, x25b, w1, g1, b1, w2, g2, b2)
    assert out_b.shape == (N, C_IN, H, W)
    assert jnp.allclose(out_b.astype(jnp.float32), ref_b, atol=5e-2, rtol=5e-2), \
        "bf16 mismatch vs reference"

    # --- config 3: forced small lane tile with ragged tail (HW=324, tile=128), f32 ---
    N, H, W = 2, 18, 18
    x31c = jax.random.normal(ks[10], (N, C_IN, H, W), dtype=jnp.float32)
    x25c = jax.random.normal(ks[11], (N, C_MID, H, W), dtype=jnp.float32)
    out_c = jax.block_until_ready(run(x31c, x25c, w1, g1, b1, w2, g2, b2, lane_tile=128))
    ref_c = reference_forward(x31c, x25c, w1, g1, b1, w2, g2, b2)
    assert out_c.shape == (N, C_IN, H, W)
    assert jnp.allclose(out_c, ref_c, atol=1e-3, rtol=1e-3), "tiled f32 mismatch vs reference"

    print("KERNEL_OK")
</pallas_src>

<mosaic_0001>
module attributes {stable_mosaic.version = 11 : i64} {
  func.func @_stats_kernel(%arg0: i32, %arg1: i32, %arg2: memref<16x48xf32, #tpu.memory_space<vmem>>, %arg3: memref<1x48x3136xf32, #tpu.memory_space<vmem>>, %arg4: memref<1x16x3136xf32, #tpu.memory_space<vmem>>, %arg5: memref<1x16x3136xf32, #tpu.memory_space<vmem>>, %arg6: memref<1x1x16x1xf32, #tpu.memory_space<vmem>>, %arg7: memref<1x1x16x1xf32, #tpu.memory_space<vmem>>, %arg8: memref<1x1x16x16xf32, #tpu.memory_space<vmem>>, %arg9: memref<1x1x16x16xf32, #tpu.memory_space<vmem>>, %arg10: memref<1x1x16x16xf32, #tpu.memory_space<vmem>>) attributes {dimension_semantics = [#tpu.dimension_semantics<parallel>, #tpu.dimension_semantics<parallel>], iteration_bounds = array<i64: 1, 1>, scalar_prefetch = 0 : i64, scratch_operands = 0 : i64, tpu.core_type = #tpu.core_type<tc>, window_params = [{pipeline_mode = #tpu.pipeline_mode<synchronous>, transform_indices = @transform_0, window_bounds = array<i64: 16, 48>}, {transform_indices = @transform_1, window_bounds = array<i64: 1, 48, 3136>}, {transform_indices = @transform_2, window_bounds = array<i64: 1, 16, 3136>}, {transform_indices = @transform_3, window_bounds = array<i64: 1, 16, 3136>}, {transform_indices = @transform_4, window_bounds = array<i64: 1, 1, 16, 1>}, {transform_indices = @transform_5, window_bounds = array<i64: 1, 1, 16, 1>}, {transform_indices = @transform_6, window_bounds = array<i64: 1, 1, 16, 16>}, {transform_indices = @transform_7, window_bounds = array<i64: 1, 1, 16, 16>}, {transform_indices = @transform_8, window_bounds = array<i64: 1, 1, 16, 16>}]} {
    %c0 = arith.constant 0 : index
    %c0_0 = arith.constant 0 : index
    %c0_1 = arith.constant 0 : index
    %0 = vector.load %arg3[%c0, %c0_0, %c0_1] : memref<1x48x3136xf32, #tpu.memory_space<vmem>>, vector<1x48x3136xf32>
    %1 = vector.shape_cast %0 : vector<1x48x3136xf32> to vector<48x3136xf32>
    %c0_2 = arith.constant 0 : index
    %c0_3 = arith.constant 0 : index
    %c0_4 = arith.constant 0 : index
    %2 = vector.load %arg4[%c0_2, %c0_3, %c0_4] : memref<1x16x3136xf32, #tpu.memory_space<vmem>>, vector<1x16x3136xf32>
    %3 = vector.shape_cast %2 : vector<1x16x3136xf32> to vector<16x3136xf32>
    %c0_5 = arith.constant 0 : index
    %c0_6 = arith.constant 0 : index
    %4 = vector.load %arg2[%c0_5, %c0_6] : memref<16x48xf32, #tpu.memory_space<vmem>>, vector<16x48xf32>
    %cst = arith.constant dense<0.000000e+00> : vector<16x3136xf32>
    %5 = tpu.matmul %4, %1, %cst {dimension_numbers = #tpu.dot_dimension_numbers<[1], [0], [0], [1], [0, 0, 1, 1], [], []>} : vector<16x48xf32>, vector<48x3136xf32>, vector<16x3136xf32> -> vector<16x3136xf32>
    %c0_7 = arith.constant 0 : index
    %c0_8 = arith.constant 0 : index
    %c0_9 = arith.constant 0 : index
    %6 = vector.load %arg5[%c0_7, %c0_8, %c0_9] : memref<1x16x3136xf32, #tpu.memory_space<vmem>>, vector<1x16x3136xf32>
    %7 = vector.shape_cast %6 : vector<1x16x3136xf32> to vector<16x3136xf32>
    %8 = vector.shape_cast %5 : vector<16x3136xf32> to vector<1x16x3136xf32>
    tpu.vector_store %arg5[%c0_7, %c0_8, %c0_9], %8 {strides = array<i32>} : memref<1x16x3136xf32, #tpu.memory_space<vmem>>, vector<1x16x3136xf32>,
    %cst_10 = arith.constant dense<0.000000e+00> : vector<16xf32>
    %9 = vector.multi_reduction <add>, %5, %cst_10 [1] : vector<16x3136xf32> to vector<16xf32>
    %10 = vector.shape_cast %9 : vector<16xf32> to vector<16x1xf32>
    %c0_11 = arith.constant 0 : index
    %c0_12 = arith.constant 0 : index
    %c0_13 = arith.constant 0 : index
    %c0_14 = arith.constant 0 : index
    %11 = vector.load %arg6[%c0_11, %c0_12, %c0_13, %c0_14] : memref<1x1x16x1xf32, #tpu.memory_space<vmem>>, vector<1x1x16x1xf32>
    %12 = vector.shape_cast %11 : vector<1x1x16x1xf32> to vector<16x1xf32>
    %13 = vector.shape_cast %10 : vector<16x1xf32> to vector<1x1x16x1xf32>
    tpu.vector_store %arg6[%c0_11, %c0_12, %c0_13, %c0_14], %13 {strides = array<i32>} : memref<1x1x16x1xf32, #tpu.memory_space<vmem>>, vector<1x1x16x1xf32>,
    %cst_15 = arith.constant dense<0.000000e+00> : vector<16xf32>
    %14 = vector.multi_reduction <add>, %3, %cst_15 [1] : vector<16x3136xf32> to vector<16xf32>
    %15 = vector.shape_cast %14 : vector<16xf32> to vector<16x1xf32>
    %c0_16 = arith.constant 0 : index
    %c0_17 = arith.constant 0 : index
    %c0_18 = arith.constant 0 : index
    %c0_19 = arith.constant 0 : index
    %16 = vector.load %arg7[%c0_16, %c0_17, %c0_18, %c0_19] : memref<1x1x16x1xf32, #tpu.memory_space<vmem>>, vector<1x1x16x1xf32>
    %17 = vector.shape_cast %16 : vector<1x1x16x1xf32> to vector<16x1xf32>
    %18 = vector.shape_cast %15 : vector<16x1xf32> to vector<1x1x16x1xf32>
    tpu.vector_store %arg7[%c0_16, %c0_17, %c0_18, %c0_19], %18 {strides = array<i32>} : memref<1x1x16x1xf32, #tpu.memory_space<vmem>>, vector<1x1x16x1xf32>,
    %cst_20 = arith.constant dense<0.000000e+00> : vector<16x16xf32>
    %19 = tpu.matmul %5, %5, %cst_20 {dimension_numbers = #tpu.dot_dimension_numbers<[1], [1], [0], [0], [0, 0, 1, 0], [], []>} : vector<16x3136xf32>, vector<16x3136xf32>, vector<16x16xf32> -> vector<16x16xf32>
    %c0_21 = arith.constant 0 : index
    %c0_22 = arith.constant 0 : index
    %c0_23 = arith.constant 0 : index
    %c0_24 = arith.constant 0 : index
    %20 = vector.load %arg8[%c0_21, %c0_22, %c0_23, %c0_24] : memref<1x1x16x16xf32, #tpu.memory_space<vmem>>, vector<1x1x16x16xf32>
    %21 = vector.shape_cast %20 : vector<1x1x16x16xf32> to vector<16x16xf32>
    %22 = vector.shape_cast %19 : vector<16x16xf32> to vector<1x1x16x16xf32>
    tpu.vector_store %arg8[%c0_21, %c0_22, %c0_23, %c0_24], %22 {strides = array<i32>} : memref<1x1x16x16xf32, #tpu.memory_space<vmem>>, vector<1x1x16x16xf32>,
    %cst_25 = arith.constant dense<0.000000e+00> : vector<16x16xf32>
    %23 = tpu.matmul %5, %3, %cst_25 {dimension_numbers = #tpu.dot_dimension_numbers<[1], [1], [0], [0], [0, 0, 1, 0], [], []>} : vector<16x3136xf32>, vector<16x3136xf32>, vector<16x16xf32> -> vector<16x16xf32>
    %c0_26 = arith.constant 0 : index
    %c0_27 = arith.constant 0 : index
    %c0_28 = arith.constant 0 : index
    %c0_29 = arith.constant 0 : index
    %24 = vector.load %arg9[%c0_26, %c0_27, %c0_28, %c0_29] : memref<1x1x16x16xf32, #tpu.memory_space<vmem>>, vector<1x1x16x16xf32>
    %25 = vector.shape_cast %24 : vector<1x1x16x16xf32> to vector<16x16xf32>
    %26 = vector.shape_cast %23 : vector<16x16xf32> to vector<1x1x16x16xf32>
    tpu.vector_store %arg9[%c0_26, %c0_27, %c0_28, %c0_29], %26 {strides = array<i32>} : memref<1x1x16x16xf32, #tpu.memory_space<vmem>>, vector<1x1x16x16xf32>,
    %cst_30 = arith.constant dense<0.000000e+00> : vector<16x16xf32>
    %27 = tpu.matmul %3, %3, %cst_30 {dimension_numbers = #tpu.dot_dimension_numbers<[1], [1], [0], [0], [0, 0, 1, 0], [], []>} : vector<16x3136xf32>, vector<16x3136xf32>, vector<16x16xf32> -> vector<16x16xf32>
    %c0_31 = arith.constant 0 : index
    %c0_32 = arith.constant 0 : index
    %c0_33 = arith.constant 0 : index
    %c0_34 = arith.constant 0 : index
    %28 = vector.load %arg10[%c0_31, %c0_32, %c0_33, %c0_34] : memref<1x1x16x16xf32, #tpu.memory_space<vmem>>, vector<1x1x16x16xf32>
    %29 = vector.shape_cast %28 : vector<1x1x16x16xf32> to vector<16x16xf32>
    %30 = vector.shape_cast %27 : vector<16x16xf32> to vector<1x1x16x16xf32>
    tpu.vector_store %arg10[%c0_31, %c0_32, %c0_33, %c0_34], %30 {strides = array<i32>} : memref<1x1x16x16xf32, #tpu.memory_space<vmem>>, vector<1x1x16x16xf32>,
    return
  }
  func.func @transform_0(%arg0: i32, %arg1: i32) -> (i32, i32) {
    %c0_i32 = arith.constant 0 : i32
    %c0_i32_0 = arith.constant 0 : i32
    %c0_i32_1 = arith.constant 0 : i32
    return %c0_i32, %c0_i32_0 : i32, i32
  }
  func.func @transform_1(%arg0: i32, %arg1: i32) -> (i32, i32, i32) {
    %c0_i32 = arith.constant 0 : i32
    %c0_i32_0 = arith.constant 0 : i32
    return %arg0, %c0_i32, %arg1 : i32, i32, i32
  }
  func.func @transform_2(%arg0: i32, %arg1: i32) -> (i32, i32, i32) {
    %c0_i32 = arith.constant 0 : i32
    %c0_i32_0 = arith.constant 0 : i32
    return %arg0, %c0_i32, %arg1 : i32, i32, i32
  }
  func.func @transform_3(%arg0: i32, %arg1: i32) -> (i32, i32, i32) {
    %c0_i32 = arith.constant 0 : i32
    %c0_i32_0 = arith.constant 0 : i32
    return %arg0, %c0_i32, %arg1 : i32, i32, i32
  }
  func.func @transform_4(%arg0: i32, %arg1: i32) -> (i32, i32, i32, i32) {
    %c0_i32 = arith.constant 0 : i32
    %c0_i32_0 = arith.constant 0 : i32
    %c0_i32_1 = arith.constant 0 : i32
    return %arg0, %arg1, %c0_i32, %c0_i32_0 : i32, i32, i32, i32
  }
  func.func @transform_5(%arg0: i32, %arg1: i32) -> (i32, i32, i32, i32) {
    %c0_i32 = arith.constant 0 : i32
    %c0_i32_0 = arith.constant 0 : i32
    %c0_i32_1 = arith.constant 0 : i32
    return %arg0, %arg1, %c0_i32, %c0_i32_0 : i32, i32, i32, i32
  }
  func.func @transform_6(%arg0: i32, %arg1: i32) -> (i32, i32, i32, i32) {
    %c0_i32 = arith.constant 0 : i32
    %c0_i32_0 = arith.constant 0 : i32
    %c0_i32_1 = arith.constant 0 : i32
    return %arg0, %arg1, %c0_i32, %c0_i32_0 : i32, i32, i32, i32
  }
  func.func @transform_7(%arg0: i32, %arg1: i32) -> (i32, i32, i32, i32) {
    %c0_i32 = arith.constant 0 : i32
    %c0_i32_0 = arith.constant 0 : i32
    %c0_i32_1 = arith.constant 0 : i32
    return %arg0, %arg1, %c0_i32, %c0_i32_0 : i32, i32, i32, i32
  }
  func.func @transform_8(%arg0: i32, %arg1: i32) -> (i32, i32, i32, i32) {
    %c0_i32 = arith.constant 0 : i32
    %c0_i32_0 = arith.constant 0 : i32
    %c0_i32_1 = arith.constant 0 : i32
    return %arg0, %arg1, %c0_i32, %c0_i32_0 : i32, i32, i32, i32
  }
}

module attributes {stable_mosaic.version = 11 : i64} {
  func.func @_apply_kernel(%arg0: i32, %arg1: i32, %arg2: memref<48x16xf32, #tpu.memory_space<vmem>>, %arg3: memref<48x16xf32, #tpu.memory_space<vmem>>, %arg4: memref<48x1xf32, #tpu.memory_space<vmem>>, %arg5: memref<1x16x3136xf32, #tpu.memory_space<vmem>>, %arg6: memref<1x16x3136xf32, #tpu.memory_space<vmem>>, %arg7: memref<1x48x3136xf32, #tpu.memory_space<vmem>>) attributes {dimension_semantics = [#tpu.dimension_semantics<parallel>, #tpu.dimension_semantics<parallel>], iteration_bounds = array<i64: 1, 1>, scalar_prefetch = 0 : i64, scratch_operands = 0 : i64, tpu.core_type = #tpu.core_type<tc>, window_params = [{pipeline_mode = #tpu.pipeline_mode<synchronous>, transform_indices = @transform_0, window_bounds = array<i64: 48, 16>}, {pipeline_mode = #tpu.pipeline_mode<synchronous>, transform_indices = @transform_1, window_bounds = array<i64: 48, 16>}, {pipeline_mode = #tpu.pipeline_mode<synchronous>, transform_indices = @transform_2, window_bounds = array<i64: 48, 1>}, {transform_indices = @transform_3, window_bounds = array<i64: 1, 16, 3136>}, {transform_indices = @transform_4, window_bounds = array<i64: 1, 16, 3136>}, {transform_indices = @transform_5, window_bounds = array<i64: 1, 48, 3136>}]} {
    %c0 = arith.constant 0 : index
    %c0_0 = arith.constant 0 : index
    %0 = vector.load %arg2[%c0, %c0_0] : memref<48x16xf32, #tpu.memory_space<vmem>>, vector<48x16xf32>
    %c0_1 = arith.constant 0 : index
    %c0_2 = arith.constant 0 : index
    %c0_3 = arith.constant 0 : index
    %1 = vector.load %arg5[%c0_1, %c0_2, %c0_3] : memref<1x16x3136xf32, #tpu.memory_space<vmem>>, vector<1x16x3136xf32>
    %2 = vector.shape_cast %1 : vector<1x16x3136xf32> to vector<16x3136xf32>
    %cst = arith.constant dense<0.000000e+00> : vector<48x3136xf32>
    %3 = tpu.matmul %0, %2, %cst {dimension_numbers = #tpu.dot_dimension_numbers<[1], [0], [0], [1], [0, 0, 1, 1], [], []>} : vector<48x16xf32>, vector<16x3136xf32>, vector<48x3136xf32> -> vector<48x3136xf32>
    %c0_4 = arith.constant 0 : index
    %c0_5 = arith.constant 0 : index
    %4 = vector.load %arg3[%c0_4, %c0_5] : memref<48x16xf32, #tpu.memory_space<vmem>>, vector<48x16xf32>
    %c0_6 = arith.constant 0 : index
    %c0_7 = arith.constant 0 : index
    %c0_8 = arith.constant 0 : index
    %5 = vector.load %arg6[%c0_6, %c0_7, %c0_8] : memref<1x16x3136xf32, #tpu.memory_space<vmem>>, vector<1x16x3136xf32>
    %6 = vector.shape_cast %5 : vector<1x16x3136xf32> to vector<16x3136xf32>
    %cst_9 = arith.constant dense<0.000000e+00> : vector<48x3136xf32>
    %7 = tpu.matmul %4, %6, %cst_9 {dimension_numbers = #tpu.dot_dimension_numbers<[1], [0], [0], [1], [0, 0, 1, 1], [], []>} : vector<48x16xf32>, vector<16x3136xf32>, vector<48x3136xf32> -> vector<48x3136xf32>
    %8 = arith.addf %3, %7 : vector<48x3136xf32>
    %c0_10 = arith.constant 0 : index
    %c0_11 = arith.constant 0 : index
    %9 = vector.load %arg4[%c0_10, %c0_11] : memref<48x1xf32, #tpu.memory_space<vmem>>, vector<48x1xf32>
    %10 = vector.broadcast %9 : vector<48x1xf32> to vector<48x3136xf32>
    %11 = arith.addf %8, %10 : vector<48x3136xf32>
    %c0_12 = arith.constant 0 : index
    %c0_13 = arith.constant 0 : index
    %c0_14 = arith.constant 0 : index
    %12 = vector.load %arg7[%c0_12, %c0_13, %c0_14] : memref<1x48x3136xf32, #tpu.memory_space<vmem>>, vector<1x48x3136xf32>
    %13 = vector.shape_cast %12 : vector<1x48x3136xf32> to vector<48x3136xf32>
    %14 = vector.shape_cast %11 : vector<48x3136xf32> to vector<1x48x3136xf32>
    tpu.vector_store %arg7[%c0_12, %c0_13, %c0_14], %14 {strides = array<i32>} : memref<1x48x3136xf32, #tpu.memory_space<vmem>>, vector<1x48x3136xf32>,
    return
  }
  func.func @transform_0(%arg0: i32, %arg1: i32) -> (i32, i32) {
    %c0_i32 = arith.constant 0 : i32
    %c0_i32_0 = arith.constant 0 : i32
    %c0_i32_1 = arith.constant 0 : i32
    return %c0_i32, %c0_i32_0 : i32, i32
  }
  func.func @transform_1(%arg0: i32, %arg1: i32) -> (i32, i32) {
    %c0_i32 = arith.constant 0 : i32
    %c0_i32_0 = arith.constant 0 : i32
    %c0_i32_1 = arith.constant 0 : i32
    return %c0_i32, %c0_i32_0 : i32, i32
  }
  func.func @transform_2(%arg0: i32, %arg1: i32) -> (i32, i32) {
    %c0_i32 = arith.constant 0 : i32
    %c0_i32_0 = arith.constant 0 : i32
    %c0_i32_1 = arith.constant 0 : i32
    return %c0_i32, %c0_i32_0 : i32, i32
  }
  func.func @transform_3(%arg0: i32, %arg1: i32) -> (i32, i32, i32) {
    %c0_i32 = arith.constant 0 : i32
    %c0_i32_0 = arith.constant 0 : i32
    return %arg0, %c0_i32, %arg1 : i32, i32, i32
  }
  func.func @transform_4(%arg0: i32, %arg1: i32) -> (i32, i32, i32) {
    %c0_i32 = arith.constant 0 : i32
    %c0_i32_0 = arith.constant 0 : i32
    return %arg0, %c0_i32, %arg1 : i32, i32, i32
  }
  func.func @transform_5(%arg0: i32, %arg1: i32) -> (i32, i32, i32) {
    %c0_i32 = arith.constant 0 : i32
    %c0_i32_0 = arith.constant 0 : i32
    return %arg0, %c0_i32, %arg1 : i32, i32, i32
  }
}

</mosaic_0001>

<bundles_post_ra>
// kernel: m_forward.2
= control target key start
LH: loop header
LB: loop body
LE: loop exit
PB: predicated region body
PF: predicated region fallthrough
CT: control target
= control target key end

     0   :  { %v4455_v3 = vmov 0.0   ;;  %vm222_vm0 = vcmask 392192   ;;  %vm1252_vm1 = vcmask 523264   ;;  %vm1333_vm2 = vcmask 7168   ;;  %s6057_s1 = inlined_call_operand.vmem [shape: f32[1,48,3136], index: 1, kind: input, shape index: {}]   ;;  %s6058_s0 = inlined_call_operand.vmem [shape: f32[16,48], index: 0, kind: input, shape index: {}]   ;;  %s6059_s3 = inlined_call_operand.vmem [shape: f32[1,16,3136], index: 3, kind: output, shape index: {0}]   ;;  %s6060_s2 = inlined_call_operand.vmem [shape: f32[1,16,3136], index: 2, kind: input, shape index: {}]   ;;  %s6061_s4 = inlined_call_operand.vmem [shape: f32[1,1,16,1], index: 4, kind: output, shape index: {1}]   ;;  %s6062_s5 = inlined_call_operand.vmem [shape: f32[1,1,16,1], index: 5, kind: output, shape index: {2}]   ;;  %s6063_s6 = inlined_call_operand.vmem [shape: f32[1,1,16,16], index: 6, kind: output, shape index: {3}]   ;;  %s6064_s7 = inlined_call_operand.vmem [shape: f32[1,1,16,16], index: 7, kind: output, shape index: {4}]   ;;  %s6065_s8 = inlined_call_operand.vmem [shape: f32[1,1,16,16], index: 8, kind: output, shape index: {5}]  }
   0x1   :  { %v146_v0 = vld [vmem:[%s6057_s1 + $0x3f0] sm:$0xff]  ;;  %v148_v1 = vld [vmem:[%s6057_s1 + $0x400] sm:$0xff]  ;;  %v145_v2 = vld [vmem:[%s6057_s1 + $0x3e8] sm:$0xff]  ;;  %293 = vmatprep.mubr.f32.mxu0 %v4455_v3  ;;  %370 = vmatprep.mubr.f32.mxu1 %v4455_v3  ;;  %vm2373_vm3 = vcmask 130048  }
   0x2   :  { %249 = vmatprep.subr.mxu0 %v146_v0  ;;  %326 = vmatprep.subr.mxu1 %v148_v1  ;;  %v147_v4 = vld [vmem:[%s6057_s1 + $0x3f8] sm:$0xff]  ;;  %v121_v5 = vld [vmem:[%s6057_s1 + $0x328] sm:$0xff]  ;;  %v120_v7 = vld [vmem:[%s6057_s1 + $0x320] sm:$0xff] }
   0x3   :  { %v123_v6 = vld [vmem:[%s6057_s1 + $0x338] sm:$0xff]  ;;  %250 = vmatpush1.msra.mxu0 %v145_v2  ;;  %327 = vmatpush1.msra.mxu1 %v147_v4  ;;  %v122_v8 = vld [vmem:[%s6057_s1 + $0x330] sm:$0xff]  ;;  %v96_v9 = vld [vmem:[%s6057_s1 + $0x260] sm:$0xff] }
   0x4   :  { %251 = vmatprep.subr.mxu0 %v121_v5  ;;  %328 = vmatprep.subr.mxu1 %v123_v6  ;;  %v98_v10 = vld [vmem:[%s6057_s1 + $0x270] sm:$0xff]  ;;  %v95_v11 = vld [vmem:[%s6057_s1 + $0x258] sm:$0xff]  ;;  %v97_v12 = vld [vmem:[%s6057_s1 + $0x268] sm:$0xff] }
   0x5   :  { %252 = vmatpush1.msra.mxu0 %v120_v7  ;;  %329 = vmatpush1.msra.mxu1 %v122_v8  ;;  %v71_v13 = vld [vmem:[%s6057_s1 + $0x198] sm:$0xff]  ;;  %v73_v14 = vld [vmem:[%s6057_s1 + $0x1a8] sm:$0xff]  ;;  %v70_v15 = vld [vmem:[%s6057_s1 + $0x190] sm:$0xff] }
   0x6   :  { %253 = vmatprep.subr.mxu0 %v96_v9  ;;  %330 = vmatprep.subr.mxu1 %v98_v10  ;;  %v72_v16 = vld [vmem:[%s6057_s1 + $0x1a0] sm:$0xff]  ;;  %v46_v17 = vld [vmem:[%s6057_s1 + $0xd0] sm:$0xff]  ;;  %v45_v19 = vld [vmem:[%s6057_s1 + $0xc8] sm:$0xff] }
   0x7   :  { %254 = vmatpush1.msra.mxu0 %v95_v11  ;;  %331 = vmatpush1.msra.mxu1 %v97_v12  ;;  %v48_v18 = vld [vmem:[%s6057_s1 + $0xe0] sm:$0xff]  ;;  %v47_v20 = vld [vmem:[%s6057_s1 + $0xd8] sm:$0xff]  ;;  %v21_v21 = vld [vmem:[%s6057_s1 + $0x8] sm:$0xff] }
   0x8   :  { %255 = vmatprep.subr.mxu0 %v71_v13  ;;  %332 = vmatprep.subr.mxu1 %v73_v14  ;;  %v23_v22 = vld [vmem:[%s6057_s1 + $0x18] sm:$0xff]  ;;  %v20_v23 = vld [vmem:[%s6057_s1] sm:$0xff]  ;;  %v22_v24 = vld [vmem:[%s6057_s1 + $0x10] sm:$0xff] }
   0x9   :  { %256 = vmatpush1.msra.mxu0 %v70_v15  ;;  %333 = vmatpush1.msra.mxu1 %v72_v16  ;;  %v4578_v25 = vld [vmem:[%s6058_s0] sm:$0xff]  ;;  %v150_v26 = vld [vmem:[%s6057_s1 + $0x410] sm:$0xff]  ;;  %v149_v28 = vld [vmem:[%s6057_s1 + $0x408] sm:$0xff] }
   0xa   :  { %257 = vmatprep.subr.mxu0 %v46_v17  ;;  %334 = vmatprep.subr.mxu1 %v48_v18  ;;  %v152_v27 = vld [vmem:[%s6057_s1 + $0x420] sm:$0xff]  ;;  %v151_v29 = vld [vmem:[%s6057_s1 + $0x418] sm:$0xff]  ;;  %v125_v30 = vld [vmem:[%s6057_s1 + $0x348] sm:$0xff] }
   0xb   :  { %258 = vmatpush1.msra.mxu0 %v45_v19  ;;  %335 = vmatpush1.msra.mxu1 %v47_v20  ;;  %v127_v31 = vld [vmem:[%s6057_s1 + $0x358] sm:$0xff]  ;;  %v124_v32 = vld [vmem:[%s6057_s1 + $0x340] sm:$0xff]  ;;  %v126_v33 = vld [vmem:[%s6057_s1 + $0x350] sm:$0xff] }
   0xc   :  { %259 = vmatprep.subr.mxu0 %v21_v21  ;;  %336 = vmatprep.subr.mxu1 %v23_v22  ;;  %v4611_v34 = vld [vmem:[%s6058_s0 + $0x8] sm:$0xff]  ;;  %v100_v35 = vld [vmem:[%s6057_s1 + $0x280] sm:$0xff]  ;;  %v102_v36 = vld [vmem:[%s6057_s1 + $0x290] sm:$0xff] }
   0xd   :  { %260 = vmatpush1.msra.mxu0 %v20_v23  ;;  %337 = vmatpush1.msra.mxu1 %v22_v24  ;;  %v99_v37 = vld [vmem:[%s6057_s1 + $0x278] sm:$0xff]  ;;  %v101_v38 = vld [vmem:[%s6057_s1 + $0x288] sm:$0xff]  ;;  %v74_v41 = vld [vmem:[%s6057_s1 + $0x1b0] sm:$0xff] }
   0xe   :  { %4360 = vmatmul.mubr.msk.f32.vlgmr.msra.gmra.mxu0 %vm222_vm0, %v4578_v25  ;;  %403 = vmatprep.subr.mxu0 %v150_v26  ;;  %v75_v39 = vld [vmem:[%s6057_s1 + $0x1b8] sm:$0xff]  ;;  %v77_v40 = vld [vmem:[%s6057_s1 + $0x1c8] sm:$0xff]  ;;  %v76_v42 = vld [vmem:[%s6057_s1 + $0x1c0] sm:$0xff] }
   0xf   :  { %480 = vmatprep.subr.mxu1 %v152_v27  ;;  %4362 = vmatmul.mubr.msk.f32.vlgmr.msra.gmra.mxu1 %vm222_vm0, %v4578_v25  ;;  %v50_v43 = vld [vmem:[%s6057_s1 + $0xf0] sm:$0xff]  ;;  %v52_v44 = vld [vmem:[%s6057_s1 + $0x100] sm:$0xff]  ;;  %v49_v45 = vld [vmem:[%s6057_s1 + $0xe8] sm:$0xff] }
  0x10   :  { %404 = vmatpush1.msra.mxu0 %v149_v28  ;;  %481 = vmatpush1.msra.mxu1 %v151_v29  ;;  %v51_v46 = vld [vmem:[%s6057_s1 + $0xf8] sm:$0xff]  ;;  %v25_v47 = vld [vmem:[%s6057_s1 + $0x28] sm:$0xff]  ;;  %v24_v49 = vld [vmem:[%s6057_s1 + $0x20] sm:$0xff] }
  0x11   :  { %405 = vmatprep.subr.mxu0 %v125_v30  ;;  %482 = vmatprep.subr.mxu1 %v127_v31  ;;  %v27_v48 = vld [vmem:[%s6057_s1 + $0x38] sm:$0xff]  ;;  %v26_v50 = vld [vmem:[%s6057_s1 + $0x30] sm:$0xff]  ;;  %v156_v52 = vld [vmem:[%s6057_s1 + $0x440] sm:$0xff] }
  0x12   :  { %299 = vmatprep.mubr.f32.mxu0 %v4455_v3  ;;  %406 = vmatpush1.msra.mxu0 %v124_v32  ;;  %v154_v51 = vld [vmem:[%s6057_s1 + $0x430] sm:$0xff]  ;;  %v153_v53 = vld [vmem:[%s6057_s1 + $0x428] sm:$0xff]  ;;  %v155_v54 = vld [vmem:[%s6057_s1 + $0x438] sm:$0xff] }
  0x13   :  { %483 = vmatpush1.msra.mxu1 %v126_v33  ;;  %4361 = vmatmul.mubr.msk.f32.gmra.mxu0 %vm222_vm0, %v4611_v34  ;;  %v129_v55 = vld [vmem:[%s6057_s1 + $0x368] sm:$0xff]  ;;  %v131_v56 = vld [vmem:[%s6057_s1 + $0x378] sm:$0xff]  ;;  %v128_v57 = vld [vmem:[%s6057_s1 + $0x360] sm:$0xff] }
  0x14   :  { %407 = vmatprep.subr.mxu0 %v100_v35  ;;  %484 = vmatprep.subr.mxu1 %v102_v36  ;;  %v130_v58 = vld [vmem:[%s6057_s1 + $0x370] sm:$0xff]  ;;  %v104_v59 = vld [vmem:[%s6057_s1 + $0x2a0] sm:$0xff]  ;;  %v103_v61 = vld [vmem:[%s6057_s1 + $0x298] sm:$0xff] }
  0x15   :  { %408 = vmatpush1.msra.mxu0 %v99_v37  ;;  %485 = vmatpush1.msra.mxu1 %v101_v38  ;;  %v106_v60 = vld [vmem:[%s6057_s1 + $0x2b0] sm:$0xff]  ;;  %v105_v62 = vld [vmem:[%s6057_s1 + $0x2a8] sm:$0xff]  ;;  %v79_v63 = vld [vmem:[%s6057_s1 + $0x1d8] sm:$0xff] }
  0x16   :  { %409 = vmatprep.subr.mxu0 %v75_v39  ;;  %486 = vmatprep.subr.mxu1 %v77_v40  ;;  %v81_v0 = vld [vmem:[%s6057_s1 + $0x1e8] sm:$0xff]  ;;  %v78_v1 = vld [vmem:[%s6057_s1 + $0x1d0] sm:$0xff]  ;;  %v80_v2 = vld [vmem:[%s6057_s1 + $0x1e0] sm:$0xff] }
  0x17   :  { %410 = vmatpush1.msra.mxu0 %v74_v41  ;;  %487 = vmatpush1.msra.mxu1 %v76_v42  ;;  %v54_v4 = vld [vmem:[%s6057_s1 + $0x110] sm:$0xff]  ;;  %v56_v5 = vld [vmem:[%s6057_s1 + $0x120] sm:$0xff]  ;;  %v53_v6 = vld [vmem:[%s6057_s1 + $0x108] sm:$0xff] }
  0x18   :  { %376 = vmatprep.mubr.f32.mxu1 %v4455_v3  ;;  %411 = vmatprep.subr.mxu0 %v50_v43  ;;  %v55_v7 = vld [vmem:[%s6057_s1 + $0x118] sm:$0xff]  ;;  %v29_v8 = vld [vmem:[%s6057_s1 + $0x48] sm:$0xff]  ;;  %v28_v10 = vld [vmem:[%s6057_s1 + $0x40] sm:$0xff] }
  0x19   :  { %488 = vmatprep.subr.mxu1 %v52_v44  ;;  %4363 = vmatmul.mubr.msk.f32.gmra.mxu1 %vm222_vm0, %v4611_v34  ;;  %v31_v9 = vld [vmem:[%s6057_s1 + $0x58] sm:$0xff]  ;;  %v30_v11 = vld [vmem:[%s6057_s1 + $0x50] sm:$0xff]  ;;  %v160_v13 = vld [vmem:[%s6057_s1 + $0x460] sm:$0xff] }
  0x1a   :  { %412 = vmatpush1.msra.mxu0 %v49_v45  ;;  %489 = vmatpush1.msra.mxu1 %v51_v46  ;;  %v158_v12 = vld [vmem:[%s6057_s1 + $0x450] sm:$0xff]  ;;  %v157_v14 = vld [vmem:[%s6057_s1 + $0x448] sm:$0xff]  ;;  %v159_v15 = vld [vmem:[%s6057_s1 + $0x458] sm:$0xff] }
  0x1b   :  { %413 = vmatprep.subr.mxu0 %v25_v47  ;;  %490 = vmatprep.subr.mxu1 %v27_v48  ;;  %v133_v16 = vld [vmem:[%s6057_s1 + $0x388] sm:$0xff]  ;;  %v135_v17 = vld [vmem:[%s6057_s1 + $0x398] sm:$0xff]  ;;  %v132_v18 = vld [vmem:[%s6057_s1 + $0x380] sm:$0xff] }
  0x1c   :  { %414 = vmatpush1.msra.mxu0 %v24_v49  ;;  %447 = vmatprep.mubr.f32.mxu0 %v4455_v3  ;;  %v134_v19 = vld [vmem:[%s6057_s1 + $0x390] sm:$0xff]  ;;  %v108_v20 = vld [vmem:[%s6057_s1 + $0x2c0] sm:$0xff]  ;;  %v107_v22 = vld [vmem:[%s6057_s1 + $0x2b8] sm:$0xff] }
  0x1d   :  { %491 = vmatpush1.msra.mxu1 %v26_v50  ;;  %4364 = vmatmul.mubr.msk.f32.vlgmr.msra.gmra.mxu0 %vm222_vm0, %v4578_v25  ;;  %v110_v21 = vld [vmem:[%s6057_s1 + $0x2d0] sm:$0xff]  ;;  %v109_v23 = vld [vmem:[%s6057_s1 + $0x2c8] sm:$0xff]  ;;  %v83_v24 = vld [vmem:[%s6057_s1 + $0x1f8] sm:$0xff] }
  0x1e   :  { %524 = vmatprep.mubr.f32.mxu1 %v4455_v3  ;;  %557 = vmatprep.subr.mxu0 %v154_v51  ;;  %v85_v26 = vld [vmem:[%s6057_s1 + $0x208] sm:$0xff]  ;;  %v82_v27 = vld [vmem:[%s6057_s1 + $0x1f0] sm:$0xff]  ;;  %v84_v28 = vld [vmem:[%s6057_s1 + $0x200] sm:$0xff] }
  0x1f   :  { %634 = vmatprep.subr.mxu1 %v156_v52  ;;  %4366 = vmatmul.mubr.msk.f32.vlgmr.msra.gmra.mxu1 %vm222_vm0, %v4578_v25  ;;  %v58_v29 = vld [vmem:[%s6057_s1 + $0x130] sm:$0xff]  ;;  %v60_v30 = vld [vmem:[%s6057_s1 + $0x140] sm:$0xff]  ;;  %v57_v31 = vld [vmem:[%s6057_s1 + $0x128] sm:$0xff] }
  0x20   :  { %558 = vmatpush1.msra.mxu0 %v153_v53  ;;  %635 = vmatpush1.msra.mxu1 %v155_v54  ;;  %v59_v32 = vld [vmem:[%s6057_s1 + $0x138] sm:$0xff]  ;;  %v33_v33 = vld [vmem:[%s6057_s1 + $0x68] sm:$0xff]  ;;  %v32_v36 = vld [vmem:[%s6057_s1 + $0x60] sm:$0xff] }
  0x21   :  { %559 = vmatprep.subr.mxu0 %v129_v55  ;;  %636 = vmatprep.subr.mxu1 %v131_v56  ;;  %v35_v35 = vld [vmem:[%s6057_s1 + $0x78] sm:$0xff]  ;;  %v34_v37 = vld [vmem:[%s6057_s1 + $0x70] sm:$0xff]  ;;  %v164_v39 = vld [vmem:[%s6057_s1 + $0x480] sm:$0xff] }
  0x22   :  { %453 = vmatprep.mubr.f32.mxu0 %v4455_v3  ;;  %560 = vmatpush1.msra.mxu0 %v128_v57  ;;  %v162_v38 = vld [vmem:[%s6057_s1 + $0x470] sm:$0xff]  ;;  %v161_v40 = vld [vmem:[%s6057_s1 + $0x468] sm:$0xff]  ;;  %v163_v41 = vld [vmem:[%s6057_s1 + $0x478] sm:$0xff] }
  0x23   :  { %637 = vmatpush1.msra.mxu1 %v130_v58  ;;  %4365 = vmatmul.mubr.msk.f32.gmra.mxu0 %vm222_vm0, %v4611_v34  ;;  %v137_v42 = vld [vmem:[%s6057_s1 + $0x3a8] sm:$0xff]  ;;  %v139_v43 = vld [vmem:[%s6057_s1 + $0x3b8] sm:$0xff]  ;;  %v136_v44 = vld [vmem:[%s6057_s1 + $0x3a0] sm:$0xff] }
  0x24   :  { %561 = vmatprep.subr.mxu0 %v104_v59  ;;  %638 = vmatprep.subr.mxu1 %v106_v60  ;;  %v138_v45 = vld [vmem:[%s6057_s1 + $0x3b0] sm:$0xff]  ;;  %v112_v46 = vld [vmem:[%s6057_s1 + $0x2e0] sm:$0xff]  ;;  %v111_v48 = vld [vmem:[%s6057_s1 + $0x2d8] sm:$0xff] }
  0x25   :  { %562 = vmatpush1.msra.mxu0 %v103_v61  ;;  %639 = vmatpush1.msra.mxu1 %v105_v62  ;;  %v114_v47 = vld [vmem:[%s6057_s1 + $0x2f0] sm:$0xff]  ;;  %v113_v49 = vld [vmem:[%s6057_s1 + $0x2e8] sm:$0xff]  ;;  %v87_v50 = vld [vmem:[%s6057_s1 + $0x218] sm:$0xff] }
  0x26   :  { %563 = vmatprep.subr.mxu0 %v79_v63  ;;  %640 = vmatprep.subr.mxu1 %v81_v0  ;;  %v89_v51 = vld [vmem:[%s6057_s1 + $0x228] sm:$0xff]  ;;  %v86_v52 = vld [vmem:[%s6057_s1 + $0x210] sm:$0xff]  ;;  %v88_v53 = vld [vmem:[%s6057_s1 + $0x220] sm:$0xff] }
  0x27   :  { %530 = vmatprep.mubr.f32.mxu1 %v4455_v3  ;;  %564 = vmatpush1.msra.mxu0 %v78_v1  ;;  %v62_v54 = vld [vmem:[%s6057_s1 + $0x150] sm:$0xff]  ;;  %v64_v55 = vld [vmem:[%s6057_s1 + $0x160] sm:$0xff]  ;;  %v61_v56 = vld [vmem:[%s6057_s1 + $0x148] sm:$0xff] }
  0x28   :  { %641 = vmatpush1.msra.mxu1 %v80_v2  ;;  %565 = vmatprep.subr.mxu0 %v54_v4  ;;  %v63_v57 = vld [vmem:[%s6057_s1 + $0x158] sm:$0xff]  ;;  %v37_v58 = vld [vmem:[%s6057_s1 + $0x88] sm:$0xff]  ;;  %v36_v60 = vld [vmem:[%s6057_s1 + $0x80] sm:$0xff] }
  0x29   :  { %4367 = vmatmul.mubr.msk.f32.gmra.mxu1 %vm222_vm0, %v4611_v34  ;;  %642 = vmatprep.subr.mxu1 %v56_v5  ;;  %v39_v59 = vld [vmem:[%s6057_s1 + $0x98] sm:$0xff]  ;;  %v38_v61 = vld [vmem:[%s6057_s1 + $0x90] sm:$0xff]  ;;  %v168_v63 = vld [vmem:[%s6057_s1 + $0x4a0] sm:$0xff] }
  0x2a   :  { %566 = vmatpush1.msra.mxu0 %v53_v6  ;;  %643 = vmatpush1.msra.mxu1 %v55_v7  ;;  %v166_v62 = vld [vmem:[%s6057_s1 + $0x490] sm:$0xff]  ;;  %v165_v0 = vld [vmem:[%s6057_s1 + $0x488] sm:$0xff]  ;;  %v167_v1 = vld [vmem:[%s6057_s1 + $0x498] sm:$0xff] }
  0x2b   :  { %567 = vmatprep.subr.mxu0 %v29_v8  ;;  %644 = vmatprep.subr.mxu1 %v31_v9  ;;  %v141_v2 = vld [vmem:[%s6057_s1 + $0x3c8] sm:$0xff]  ;;  %v143_v4 = vld [vmem:[%s6057_s1 + $0x3d8] sm:$0xff]  ;;  %v140_v5 = vld [vmem:[%s6057_s1 + $0x3c0] sm:$0xff] }
  0x2c   :  { %568 = vmatpush1.msra.mxu0 %v28_v10  ;;  %601 = vmatprep.mubr.f32.mxu0 %v4455_v3  ;;  %v142_v6 = vld [vmem:[%s6057_s1 + $0x3d0] sm:$0xff]  ;;  %v116_v7 = vld [vmem:[%s6057_s1 + $0x300] sm:$0xff]  ;;  %v115_v9 = vld [vmem:[%s6057_s1 + $0x2f8] sm:$0xff] }
  0x2d   :  { %645 = vmatpush1.msra.mxu1 %v30_v11  ;;  %678 = vmatprep.mubr.f32.mxu1 %v4455_v3  ;;  %v118_v8 = vld [vmem:[%s6057_s1 + $0x310] sm:$0xff]  ;;  %v117_v10 = vld [vmem:[%s6057_s1 + $0x308] sm:$0xff]  ;;  %v91_v11 = vld [vmem:[%s6057_s1 + $0x238] sm:$0xff] }
  0x2e   :  { %4368 = vmatmul.mubr.msk.f32.vlgmr.msra.gmra.mxu0 %vm222_vm0, %v4578_v25  ;;  %4370 = vmatmul.mubr.msk.f32.vlgmr.msra.gmra.mxu1 %vm222_vm0, %v4578_v25 }
  0x2f   :  { %711 = vmatprep.subr.mxu0 %v158_v12  ;;  %788 = vmatprep.subr.mxu1 %v160_v13  ;;  %v93_v12 = vld [vmem:[%s6057_s1 + $0x248] sm:$0xff]  ;;  %v90_v13 = vld [vmem:[%s6057_s1 + $0x230] sm:$0xff] }
  0x30   :  { %712 = vmatpush1.msra.mxu0 %v157_v14  ;;  %789 = vmatpush1.msra.mxu1 %v159_v15  ;;  %v92_v14 = vld [vmem:[%s6057_s1 + $0x240] sm:$0xff]  ;;  %v66_v15 = vld [vmem:[%s6057_s1 + $0x170] sm:$0xff] }
  0x31   :  { %713 = vmatprep.subr.mxu0 %v133_v16  ;;  %790 = vmatprep.subr.mxu1 %v135_v17  ;;  %v68_v16 = vld [vmem:[%s6057_s1 + $0x180] sm:$0xff]  ;;  %v65_v17 = vld [vmem:[%s6057_s1 + $0x168] sm:$0xff] }
  0x32   :  { %607 = vmatprep.mubr.f32.mxu0 %v4455_v3  ;;  %684 = vmatprep.mubr.f32.mxu1 %v4455_v3 }
  0x33   :  { %714 = vmatpush1.msra.mxu0 %v132_v18  ;;  %791 = vmatpush1.msra.mxu1 %v134_v19  ;;  %v67_v18 = vld [vmem:[%s6057_s1 + $0x178] sm:$0xff]  ;;  %v41_v19 = vld [vmem:[%s6057_s1 + $0xa8] sm:$0xff] }
  0x34   :  { %4369 = vmatmul.mubr.msk.f32.gmra.mxu0 %vm222_vm0, %v4611_v34  ;;  %4371 = vmatmul.mubr.msk.f32.gmra.mxu1 %vm222_vm0, %v4611_v34 }
  0x35   :  { %715 = vmatprep.subr.mxu0 %v108_v20  ;;  %792 = vmatprep.subr.mxu1 %v110_v21  ;;  %v43_v20 = vld [vmem:[%s6057_s1 + $0xb8] sm:$0xff]  ;;  %v40_v21 = vld [vmem:[%s6057_s1 + $0xa0] sm:$0xff] }
  0x36   :  { %716 = vmatpush1.msra.mxu0 %v107_v22  ;;  %793 = vmatpush1.msra.mxu1 %v109_v23  ;;  %v42_v22 = vld [vmem:[%s6057_s1 + $0xb0] sm:$0xff]  ;;  %v169_v23 = vld [vmem:[%s6057_s1 + $0x4a8] sm:$0xff] }
  0x37   :  { %717 = vmatprep.subr.mxu0 %v83_v24  ;;  %794 = vmatprep.subr.mxu1 %v85_v26  ;;  %v144_v24 = vld [vmem:[%s6057_s1 + $0x3e0] sm:$0xff]  ;;  %v119_v26 = vld [vmem:[%s6057_s1 + $0x318] sm:$0xff] }
  0x38   :  { %718 = vmatpush1.msra.mxu0 %v82_v27  ;;  %795 = vmatpush1.msra.mxu1 %v84_v28  ;;  %v94_v27 = vld [vmem:[%s6057_s1 + $0x250] sm:$0xff]  ;;  %v44_v28 = vld [vmem:[%s6057_s1 + $0xc0] sm:$0xff] }
  0x39   :  { %719 = vmatprep.subr.mxu0 %v58_v29  ;;  %796 = vmatprep.subr.mxu1 %v60_v30 }
  0x3a   :  { %720 = vmatpush1.msra.mxu0 %v57_v31  ;;  %797 = vmatpush1.msra.mxu1 %v59_v32 }
  0x3b   :  { %721 = vmatprep.subr.mxu0 %v33_v33  ;;  %798 = vmatprep.subr.mxu1 %v35_v35 }
  0x3c   :  { %722 = vmatpush1.msra.mxu0 %v32_v36  ;;  %755 = vmatprep.mubr.f32.mxu0 %v4455_v3 }
  0x3d   :  { %799 = vmatpush1.msra.mxu1 %v34_v37  ;;  %832 = vmatprep.mubr.f32.mxu1 %v4455_v3 }
  0x3e   :  { %4372 = vmatmul.mubr.msk.f32.vlgmr.msra.gmra.mxu0 %vm222_vm0, %v4578_v25  ;;  %4374 = vmatmul.mubr.msk.f32.vlgmr.msra.gmra.mxu1 %vm222_vm0, %v4578_v25 }
  0x3f   :  { %865 = vmatprep.subr.mxu0 %v162_v38  ;;  %942 = vmatprep.subr.mxu1 %v164_v39 }
  0x40   :  { %866 = vmatpush1.msra.mxu0 %v161_v40  ;;  %943 = vmatpush1.msra.mxu1 %v163_v41 }
  0x41   :  { %867 = vmatprep.subr.mxu0 %v137_v42  ;;  %944 = vmatprep.subr.mxu1 %v139_v43 }
  0x42   :  { %761 = vmatprep.mubr.f32.mxu0 %v4455_v3  ;;  %838 = vmatprep.mubr.f32.mxu1 %v4455_v3 }
  0x43   :  { %868 = vmatpush1.msra.mxu0 %v136_v44  ;;  %945 = vmatpush1.msra.mxu1 %v138_v45 }
  0x44   :  { %4373 = vmatmul.mubr.msk.f32.gmra.mxu0 %vm222_vm0, %v4611_v34  ;;  %4375 = vmatmul.mubr.msk.f32.gmra.mxu1 %vm222_vm0, %v4611_v34 }
  0x45   :  { %869 = vmatprep.subr.mxu0 %v112_v46  ;;  %946 = vmatprep.subr.mxu1 %v114_v47 }
  0x46   :  { %870 = vmatpush1.msra.mxu0 %v111_v48  ;;  %947 = vmatpush1.msra.mxu1 %v113_v49 }
  0x47   :  { %871 = vmatprep.subr.mxu0 %v87_v50  ;;  %948 = vmatprep.subr.mxu1 %v89_v51 }
  0x48   :  { %872 = vmatpush1.msra.mxu0 %v86_v52  ;;  %949 = vmatpush1.msra.mxu1 %v88_v53 }
  0x49   :  { %873 = vmatprep.subr.mxu0 %v62_v54  ;;  %950 = vmatprep.subr.mxu1 %v64_v55 }
  0x4a   :  { %874 = vmatpush1.msra.mxu0 %v61_v56  ;;  %951 = vmatpush1.msra.mxu1 %v63_v57 }
  0x4b   :  { %875 = vmatprep.subr.mxu0 %v37_v58  ;;  %952 = vmatprep.subr.mxu1 %v39_v59 }
  0x4c   :  { %876 = vmatpush1.msra.mxu0 %v36_v60  ;;  %909 = vmatprep.mubr.f32.mxu0 %v4455_v3 }
  0x4d   :  { %953 = vmatpush1.msra.mxu1 %v38_v61  ;;  %986 = vmatprep.mubr.f32.mxu1 %v4455_v3 }
  0x4e   :  { %4376 = vmatmul.mubr.msk.f32.vlgmr.msra.gmra.mxu0 %vm222_vm0, %v4578_v25  ;;  %4378 = vmatmul.mubr.msk.f32.vlgmr.msra.gmra.mxu1 %vm222_vm0, %v4578_v25 }
  0x4f   :  { %1019 = vmatprep.subr.mxu0 %v166_v62  ;;  %1096 = vmatprep.subr.mxu1 %v168_v63 }
  0x50   :  { %1020 = vmatpush1.msra.mxu0 %v165_v0  ;;  %1097 = vmatpush1.msra.mxu1 %v167_v1 }
  0x51   :  { %1021 = vmatprep.subr.mxu0 %v141_v2  ;;  %1098 = vmatprep.subr.mxu1 %v143_v4 }
  0x52   :  { %915 = vmatprep.mubr.f32.mxu0 %v4455_v3  ;;  %992 = vmatprep.mubr.f32.mxu1 %v4455_v3 }
  0x53   :  { %1022 = vmatpush1.msra.mxu0 %v140_v5  ;;  %1099 = vmatpush1.msra.mxu1 %v142_v6 }
  0x54   :  { %4377 = vmatmul.mubr.msk.f32.gmra.mxu0 %vm222_vm0, %v4611_v34  ;;  %4379 = vmatmul.mubr.msk.f32.gmra.mxu1 %vm222_vm0, %v4611_v34 }
  0x55   :  { %1023 = vmatprep.subr.mxu0 %v116_v7  ;;  %1100 = vmatprep.subr.mxu1 %v118_v8 }
  0x56   :  { %1024 = vmatpush1.msra.mxu0 %v115_v9  ;;  %1101 = vmatpush1.msra.mxu1 %v117_v10 }
  0x57   :  { %1025 = vmatprep.subr.mxu0 %v91_v11  ;;  %1102 = vmatprep.subr.mxu1 %v93_v12 }
  0x58   :  { %1026 = vmatpush1.msra.mxu0 %v90_v13  ;;  %1103 = vmatpush1.msra.mxu1 %v92_v14 }
  0x59   :  { %1027 = vmatprep.subr.mxu0 %v66_v15  ;;  %1104 = vmatprep.subr.mxu1 %v68_v16 }
  0x5a   :  { %1028 = vmatpush1.msra.mxu0 %v65_v17  ;;  %1105 = vmatpush1.msra.mxu1 %v67_v18 }
  0x5b   :  { %1029 = vmatprep.subr.mxu0 %v41_v19  ;;  %1106 = vmatprep.subr.mxu1 %v43_v20 }
  0x5c   :  { %1030 = vmatpush1.msra.mxu0 %v40_v21  ;;  %1063 = vmatprep.mubr.f32.mxu0 %v4455_v3 }
  0x5d   :  { %1107 = vmatpush1.msra.mxu1 %v42_v22  ;;  %1140 = vmatprep.mubr.f32.mxu1 %v4455_v3  ;;  %v5315_v22 = vld [vmem:[%s6060_s2 + $0x8] sm:$0xff] }
  0x5e   :  { %4380 = vmatmul.mubr.msk.f32.vlgmr.msra.gmra.mxu0 %vm222_vm0, %v4578_v25  ;;  %4382 = vmatmul.mubr.msk.f32.vlgmr.msra.gmra.mxu1 %vm222_vm0, %v4578_v25 }
  0x5f   :  { %4418 = vmatprep.subr.mxu0 %v169_v23  ;;  %1069 = vmatprep.mubr.f32.mxu0 %v4455_v3 }
  0x60   :  { %4419 = vmatpush3.msra.mxu0 %v169_v23  ;;  %1146 = vmatprep.mubr.f32.mxu1 %v4455_v3  ;;  %v69_v3 = vld [vmem:[%s6057_s1 + $0x188] sm:$0xff]  ;;  %v5320_v23 = vld [vmem:[%s6060_s2] sm:$0xff] }
  0x61   :  { %4420 = vmatprep.subr.mxu0 %v144_v24  ;;  %6075 = vst [vmem:[#allocation2_spill] sm:$0xff] %v5320_v23 }
  0x62   :  { %4421 = vmatpush3.msra.mxu0 %v144_v24  ;;  %4383 = vmatmul.mubr.msk.f32.gmra.mxu1 %vm222_vm0, %v4611_v34 }
  0x63   :  { %4381 = vmatmul.mubr.msk.f32.gmra.mxu0 %vm222_vm0, %v4611_v34  ;;  %4422 = vmatprep.subr.mxu0 %v119_v26 }
  0x64   :  { %4423 = vmatpush3.msra.mxu0 %v119_v26  ;;  %4430 = vmatprep.mubr.msk.f32.mxu0 %vm222_vm0, %v4578_v25  ;;  %v1336_v26 = vadd.f32 %v5315_v22, %v5320_v23 }
  0x65   :  { %4424 = vmatprep.subr.mxu0 %v94_v27 }
  0x66   :  { %4425 = vmatpush3.msra.mxu0 %v94_v27 }
  0x67   :  { %4426 = vmatprep.subr.mxu0 %v69_v3 }
  0x68   :  { %4427 = vmatpush3.msra.mxu0 %v69_v3 }
  0x69   :  { %4428 = vmatprep.subr.mxu0 %v44_v28 }
  0x6a   :  { %4429 = vmatpush3.msra.mxu0 %v44_v28 }
  0x6b   :  { %4431 = vmatmul.mubr.msk.f32.vlgmr.msra.gmra.mxu0 %vm222_vm0, %v4611_v34 }
  0xce   :  { %v5037_v29 = vpop.f32.mrf.mxu0 }
  0xcf   :  { %1228 = vst [vmem:[%s6059_s3] sm:$0xff] %v5037_v29  ;;  %v5043_v25 = vpop.f32.mrf.mxu1 }
  0xd0   :  { %v5045_v30 = vpop.f32.mrf.mxu0  ;;  %1230 = vst [vmem:[%s6059_s3 + $0x10] sm:$0xff] %v5043_v25 }
  0xd1   :  { %1229 = vst [vmem:[%s6059_s3 + $0x8] sm:$0xff] %v5045_v30  ;;  %1462 = vmatprep.mubr.f32.mxu1 %v5045_v30  ;;  %v5056_v34 = vpop.f32.mrf.mxu1  ;;  %v1279_v37 = vadd.f32 %v5045_v30, %v5037_v29 }
  0xd2   :  { %1231 = vst [vmem:[%s6059_s3 + $0x18] sm:$0xff] %v5056_v34 }
  0xd3   :  { %v5062_v31 = vpop.f32.mrf.mxu0  ;;  %v1280_v42 = vadd.f32 %v1279_v37, %v5043_v25  ;;  %v5345_v37 = vld [vmem:[%s6060_s2 + $0x10] sm:$0xff] }
  0xd4   :  { %1254 = vst [vmem:[%s6059_s3 + $0xc8] sm:$0xff] %v5062_v31 }
  0xd5   :  { %v5068_v32 = vpop.f32.mrf.mxu0  ;;  %v1281_v46 = vadd.f32 %v1280_v42, %v5056_v34 }
  0xd6   :  { %1255 = vst [vmem:[%s6059_s3 + $0xd0] sm:$0xff] %v5068_v32  ;;  %1426 = vmatprep.subr.mxu1 %v5068_v32  ;;  %v1306_v40 = vadd.f32 %v5068_v32, %v5062_v31 }
  0xd7   :  { %1427 = vmatpush1.xpose.msra.mxu1 %v5062_v31 }
  0xd8   :  { %1428 = vmatprep.subr.mxu1 %v5045_v30 }
  0xd9   :  { %v5077_v33 = vpop.f32.mrf.mxu1 }
  0xda   :  { %1256 = vst [vmem:[%s6059_s3 + $0xd8] sm:$0xff] %v5077_v33  ;;  %v1307_v44 = vadd.f32 %v1306_v40, %v5077_v33 }
  0xdb   :  { %1429 = vmatpush1.xpose.msra.mxu1 %v5037_v29  ;;  %v5084_v35 = vpop.f32.mrf.mxu1 }
  0xdc   :  { %1257 = vst [vmem:[%s6059_s3 + $0xe0] sm:$0xff] %v5084_v35  ;;  %1501 = vmatprep.subr.mxu1 %v5084_v35  ;;  %v1308_v47 = vadd.f32 %v1307_v44, %v5084_v35 }
  0xdd   :  { %v5091_v36 = vpop.f32.mrf.mxu0 }
  0xde   :  { %1232 = vst [vmem:[%s6059_s3 + $0x20] sm:$0xff] %v5091_v36  ;;  %1463 = vmatmul.mubr.f32.vlgmr.msra.gmra.mxu1 %v5037_v29  ;;  %v1282_v48 = vadd.f32 %v1281_v46, %v5091_v36  ;;  %v1337_v46 = vadd.f32 %v1336_v26, %v5345_v37  ;;  %v5443_v26 = vld [vmem:[%s6060_s2 + $0x30] sm:$0xff] }
  0xdf   :  { %v5100_v38 = vpop.f32.mrf.mxu0  ;;  %v5102_v39 = vpop.f32.mrf.mxu1  ;;  %1467 = vmatprep.mubr.f32.mxu1 %v5068_v32  ;;  %1502 = vmatpush1.xpose.msra.mxu1 %v5077_v33 }
  0xe0   :  { %1233 = vst [vmem:[%s6059_s3 + $0x28] sm:$0xff] %v5100_v38  ;;  %1234 = vst [vmem:[%s6059_s3 + $0x30] sm:$0xff] %v5102_v39  ;;  %1612 = vmatprep.mubr.f32.mxu0 %v5100_v38  ;;  %1503 = vmatprep.subr.mxu1 %v5056_v34  ;;  %v1283_v52 = vadd.f32 %v1282_v48, %v5100_v38 }
  0xe1   :  { %v5118_v41 = vpop.f32.mrf.mxu1 }
  0xe2   :  { %1235 = vst [vmem:[%s6059_s3 + $0x38] sm:$0xff] %v5118_v41  ;;  %1468 = vmatmul.mubr.f32.gmra.mxu1 %v5062_v31  ;;  %v1284_v58 = vadd.f32 %v1283_v52, %v5102_v39 }
  0xe3   :  { %v5126_v43 = vpop.f32.mrf.mxu0  ;;  %1504 = vmatpush1.xpose.msra.mxu1 %v5043_v25  ;;  %1537 = vmatprep.mubr.f32.mxu1 %v5056_v34 }
  0xe4   :  { %1258 = vst [vmem:[%s6059_s3 + $0xe8] sm:$0xff] %v5126_v43  ;;  %v1309_v51 = vadd.f32 %v1308_v47, %v5126_v43  ;;  %v1285_v62 = vadd.f32 %v1284_v58, %v5118_v41 }
  0xe5   :  { %v5135_v45 = vpop.f32.mrf.mxu0 }
  0xe6   :  { %1259 = vst [vmem:[%s6059_s3 + $0xf0] sm:$0xff] %v5135_v45  ;;  %1576 = vmatprep.subr.mxu0 %v5135_v45  ;;  %1538 = vmatmul.mubr.f32.vlgmr.msra.gmra.mxu1 %v5043_v25  ;;  %v1310_v55 = vadd.f32 %v1309_v51, %v5135_v45  ;;  %v5370_v51 = vld [vmem:[%s6060_s2 + $0x18] sm:$0xff] }
  0xe7   :  { %1577 = vmatpush1.xpose.msra.mxu0 %v5126_v43  ;;  %1542 = vmatprep.mubr.f32.mxu1 %v5084_v35 }
  0xe8   :  { %1578 = vmatprep.subr.mxu0 %v5100_v38 }
  0xe9   :  { %v5149_v49 = vpop.f32.mrf.mxu1 }
  0xea   :  { %1260 = vst [vmem:[%s6059_s3 + $0xf8] sm:$0xff] %v5149_v49  ;;  %1543 = vmatmul.mubr.f32.gmra.mxu1 %v5077_v33  ;;  %v1311_v59 = vadd.f32 %v1310_v55, %v5149_v49 }
  0xeb   :  { %v5156_v50 = vpop.f32.mrf.mxu1  ;;  %1579 = vmatpush1.xpose.msra.mxu0 %v5091_v36  ;;  %1687 = vmatprep.mubr.f32.mxu1 %v5118_v41 }
  0xec   :  { %1261 = vst [vmem:[%s6059_s3 + $0x100] sm:$0xff] %v5156_v50  ;;  %1651 = vmatprep.subr.mxu1 %v5156_v50  ;;  %v1312_v2 = vadd.f32 %v1311_v59, %v5156_v50  ;;  %v1338_v59 = vadd.f32 %v1337_v46, %v5370_v51 }
  0xed   :  { %1652 = vmatpush1.xpose.msra.mxu1 %v5149_v49 }
  0xee   :  { %v5168_v53 = vpop.f32.mrf.mxu0  ;;  %v5170_v54 = vpop.f32.mrf.mxu1  ;;  %1653 = vmatprep.subr.mxu1 %v5118_v41  ;;  %1613 = vmatmul.mubr.f32.vlgmr.msra.gmra.mxu0 %v5091_v36 }
  0xef   :  { %1236 = vst [vmem:[%s6059_s3 + $0x40] sm:$0xff] %v5168_v53  ;;  %1238 = vst [vmem:[%s6059_s3 + $0x50] sm:$0xff] %v5170_v54  ;;  %1617 = vmatprep.mubr.f32.mxu0 %v5135_v45  ;;  %v1286_v1 = vadd.f32 %v1285_v62, %v5168_v53 }
  0xf0   :  { %v5184_v56 = vpop.f32.mrf.mxu0  ;;  %v5186_v57 = vpop.f32.mrf.mxu1 }
  0xf1   :  { %1237 = vst [vmem:[%s6059_s3 + $0x48] sm:$0xff] %v5184_v56  ;;  %1239 = vst [vmem:[%s6059_s3 + $0x58] sm:$0xff] %v5186_v57  ;;  %1654 = vmatpush1.xpose.msra.mxu1 %v5102_v39  ;;  %v1287_v5 = vadd.f32 %v1286_v1, %v5184_v56 }
  0xf2   :  { %1618 = vmatmul.mubr.f32.gmra.mxu0 %v5126_v43 }
  0xf3   :  { %1762 = vmatprep.mubr.f32.mxu0 %v5184_v56  ;;  %v1288_v9 = vadd.f32 %v1287_v5, %v5170_v54  ;;  %v5407_v5 = vld [vmem:[%s6060_s2 + $0x20] sm:$0xff] }
  0xf4   :  { %v5201_v60 = vpop.f32.mrf.mxu0  ;;  %v5203_v61 = vpop.f32.mrf.mxu1  ;;  %1688 = vmatmul.mubr.f32.vlgmr.msra.gmra.mxu1 %v5102_v39 }
  0xf5   :  { %1262 = vst [vmem:[%s6059_s3 + $0x108] sm:$0xff] %v5201_v60  ;;  %1264 = vst [vmem:[%s6059_s3 + $0x118] sm:$0xff] %v5203_v61  ;;  %1692 = vmatprep.mubr.f32.mxu1 %v5156_v50  ;;  %v1313_v4 = vadd.f32 %v1312_v2, %v5201_v60  ;;  %v1289_v13 = vadd.f32 %v1288_v9, %v5186_v57 }
  0xf6   :  { %v5216_v63 = vpop.f32.mrf.mxu0  ;;  %v5218_v0 = vpop.f32.mrf.mxu1 }
  0xf7   :  { %1263 = vst [vmem:[%s6059_s3 + $0x110] sm:$0xff] %v5216_v63  ;;  %1265 = vst [vmem:[%s6059_s3 + $0x120] sm:$0xff] %v5218_v0  ;;  %1726 = vmatprep.subr.mxu0 %v5216_v63  ;;  %1801 = vmatprep.subr.mxu1 %v5218_v0  ;;  %v1314_v6 = vadd.f32 %v1313_v4, %v5216_v63 }
  0xf8   :  { %1727 = vmatpush1.xpose.msra.mxu0 %v5201_v60  ;;  %1802 = vmatpush1.xpose.msra.mxu1 %v5203_v61 }
  0xf9   :  { %1728 = vmatprep.subr.mxu0 %v5184_v56  ;;  %1803 = vmatprep.subr.mxu1 %v5186_v57  ;;  %v1315_v12 = vadd.f32 %v1314_v6, %v5203_v61  ;;  %v1339_v6 = vadd.f32 %v1338_v59, %v5407_v5 }
  0xfa   :  { %1693 = vmatmul.mubr.f32.gmra.mxu1 %v5149_v49 }
  0xfb   :  { %1837 = vmatprep.mubr.f32.mxu1 %v5186_v57  ;;  %v1316_v17 = vadd.f32 %v1315_v12, %v5218_v0 }
  0xfc   :  { %1729 = vmatpush1.xpose.msra.mxu0 %v5168_v53  ;;  %1804 = vmatpush1.xpose.msra.mxu1 %v5170_v54 }
  0xfe   :  { %v5243_v7 = vpop.f32.mrf.mxu0  ;;  %v5245_v8 = vpop.f32.mrf.mxu1 }
  0xff   :  { %1240 = vst [vmem:[%s6059_s3 + $0x60] sm:$0xff] %v5243_v7  ;;  %1242 = vst [vmem:[%s6059_s3 + $0x70] sm:$0xff] %v5245_v8  ;;  %1763 = vmatmul.mubr.f32.vlgmr.msra.gmra.mxu0 %v5168_v53  ;;  %1838 = vmatmul.mubr.f32.vlgmr.msra.gmra.mxu1 %v5170_v54  ;;  %v1290_v16 = vadd.f32 %v1289_v13, %v5243_v7  ;;  %v5419_v13 = vld [vmem:[%s6060_s2 + $0x28] sm:$0xff] }
 0x100   :  { %v5258_v10 = vpop.f32.mrf.mxu0  ;;  %v5260_v11 = vpop.f32.mrf.mxu1  ;;  %1767 = vmatprep.mubr.f32.mxu0 %v5216_v63  ;;  %1842 = vmatprep.mubr.f32.mxu1 %v5218_v0 }
 0x101   :  { %1241 = vst [vmem:[%s6059_s3 + $0x68] sm:$0xff] %v5258_v10  ;;  %1243 = vst [vmem:[%s6059_s3 + $0x78] sm:$0xff] %v5260_v11  ;;  %v1291_v21 = vadd.f32 %v1290_v16, %v5258_v10  ;;  %v1340_v16 = vadd.f32 %v1339_v6, %v5419_v13 }
 0x103   :  { %1768 = vmatmul.mubr.f32.gmra.mxu0 %v5201_v60  ;;  %1843 = vmatmul.mubr.f32.gmra.mxu1 %v5203_v61  ;;  %v1292_v27 = vadd.f32 %v1291_v21, %v5245_v8  ;;  %v1341_v46 = vadd.f32 %v1340_v16, %v5443_v26 }
 0x104   :  { %v5276_v14 = vpop.f32.mrf.mxu0  ;;  %v5278_v15 = vpop.f32.mrf.mxu1  ;;  %1912 = vmatprep.mubr.f32.mxu0 %v5258_v10  ;;  %1987 = vmatprep.mubr.f32.mxu1 %v5260_v11 }
 0x105   :  { %1266 = vst [vmem:[%s6059_s3 + $0x128] sm:$0xff] %v5276_v14  ;;  %1268 = vst [vmem:[%s6059_s3 + $0x138] sm:$0xff] %v5278_v15  ;;  %v1317_v20 = vadd.f32 %v1316_v17, %v5276_v14  ;;  %v1293_v47 = vadd.f32 %v1292_v27, %v5260_v11 }
 0x106   :  { %v5292_v18 = vpop.f32.mrf.mxu0  ;;  %v5294_v19 = vpop.f32.mrf.mxu1 }
 0x107   :  { %1267 = vst [vmem:[%s6059_s3 + $0x130] sm:$0xff] %v5292_v18  ;;  %1269 = vst [vmem:[%s6059_s3 + $0x140] sm:$0xff] %v5294_v19  ;;  %1876 = vmatprep.subr.mxu0 %v5292_v18  ;;  %1951 = vmatprep.subr.mxu1 %v5294_v19  ;;  %v1318_v24 = vadd.f32 %v1317_v20, %v5292_v18 }
 0x108   :  { %1877 = vmatpush1.xpose.msra.mxu0 %v5276_v14  ;;  %1952 = vmatpush1.xpose.msra.mxu1 %v5278_v15 }
 0x109   :  { %1878 = vmatprep.subr.mxu0 %v5258_v10  ;;  %1953 = vmatprep.subr.mxu1 %v5260_v11  ;;  %v1319_v40 = vadd.f32 %v1318_v24, %v5278_v15 }
 0x10b   :  { %v1320_v52 = vadd.f32 %v1319_v40, %v5294_v19 }
 0x10c   :  { %1879 = vmatpush1.xpose.msra.mxu0 %v5243_v7  ;;  %1954 = vmatpush1.xpose.msra.mxu1 %v5245_v8 }
 0x10e   :  { %v5328_v3 = vpop.f32.mrf.mxu0  ;;  %v5330_v28 = vpop.f32.mrf.mxu1 }
 0x10f   :  { %6076 = vst [vmem:[#allocation3_spill] sm:$0xff] %v5330_v28  ;;  %1244 = vst [vmem:[%s6059_s3 + $0x80] sm:$0xff] %v5328_v3  ;;  %1913 = vmatmul.mubr.f32.vlgmr.msra.gmra.mxu0 %v5243_v7  ;;  %1988 = vmatmul.mubr.f32.vlgmr.msra.gmra.mxu1 %v5245_v8  ;;  %v1294_v48 = vadd.f32 %v1293_v47, %v5328_v3 }
 0x110   :  { %1246 = vst [vmem:[%s6059_s3 + $0x90] sm:$0xff] %v5330_v28  ;;  %v5348_v42 = vpop.f32.mrf.mxu0  ;;  %v5350_v44 = vpop.f32.mrf.mxu1  ;;  %1917 = vmatprep.mubr.f32.mxu0 %v5292_v18  ;;  %1992 = vmatprep.mubr.f32.mxu1 %v5294_v19 }
 0x111   :  { %1245 = vst [vmem:[%s6059_s3 + $0x88] sm:$0xff] %v5348_v42  ;;  %1247 = vst [vmem:[%s6059_s3 + $0x98] sm:$0xff] %v5350_v44  ;;  %v1295_v4 = vadd.f32 %v1294_v48, %v5348_v42 }
 0x113   :  { %1918 = vmatmul.mubr.f32.gmra.mxu0 %v5276_v14  ;;  %1993 = vmatmul.mubr.f32.gmra.mxu1 %v5278_v15  ;;  %v1296_v12 = vadd.f32 %v1295_v4, %v5330_v28 }
 0x114   :  { %v5373_v55 = vpop.f32.mrf.mxu0  ;;  %v5375_v58 = vpop.f32.mrf.mxu1  ;;  %2062 = vmatprep.mubr.f32.mxu0 %v5348_v42  ;;  %2137 = vmatprep.mubr.f32.mxu1 %v5350_v44 }
 0x115   :  { %6077 = vst [vmem:[#allocation4_spill] sm:$0xff] %v5375_v58  ;;  %1270 = vst [vmem:[%s6059_s3 + $0x148] sm:$0xff] %v5373_v55  ;;  %v1321_v62 = vadd.f32 %v1320_v52, %v5373_v55  ;;  %v1297_v24 = vadd.f32 %v1296_v12, %v5350_v44 }
 0x116   :  { %1272 = vst [vmem:[%s6059_s3 + $0x158] sm:$0xff] %v5375_v58  ;;  %v5389_v1 = vpop.f32.mrf.mxu0  ;;  %v5391_v2 = vpop.f32.mrf.mxu1 }
 0x117   :  { %6078 = vst [vmem:[#allocation5_spill] sm:$0xff] %v5391_v2  ;;  %1271 = vst [vmem:[%s6059_s3 + $0x150] sm:$0xff] %v5389_v1  ;;  %2026 = vmatprep.subr.mxu0 %v5389_v1  ;;  %2101 = vmatprep.subr.mxu1 %v5391_v2  ;;  %v1322_v9 = vadd.f32 %v1321_v62, %v5389_v1  ;;  %v5475_v62 = vld [vmem:[%s6060_s2 + $0x38] sm:$0xff] }
 0x118   :  { %1273 = vst [vmem:[%s6059_s3 + $0x160] sm:$0xff] %v5391_v2  ;;  %2027 = vmatpush1.xpose.msra.mxu0 %v5373_v55  ;;  %2102 = vmatpush1.xpose.msra.mxu1 %v5375_v58 }
 0x119   :  { %2028 = vmatprep.subr.mxu0 %v5348_v42  ;;  %2103 = vmatprep.subr.mxu1 %v5350_v44  ;;  %v1323_v17 = vadd.f32 %v1322_v9, %v5375_v58  ;;  %v1342_v9 = vadd.f32 %v1341_v46, %v5475_v62  ;;  %v5513_v46 = vld [vmem:[%s6060_s2 + $0xd0] sm:$0xff] }
 0x11b   :  { %v1324_v48 = vadd.f32 %v1323_v17, %v5391_v2 }
 0x11c   :  { %2029 = vmatpush1.xpose.msra.mxu0 %v5328_v3  ;;  %2104 = vmatpush1.xpose.msra.mxu1 %v5330_v28 }
 0x11e   :  { %v5425_v20 = vpop.f32.mrf.mxu0  ;;  %v5427_v21 = vpop.f32.mrf.mxu1 }
 0x11f   :  { %6079 = vst [vmem:[#allocation6_spill] sm:$0xff] %v5425_v20  ;;  %6080 = vst [vmem:[#allocation7_spill] sm:$0xff] %v5427_v21  ;;  %2063 = vmatmul.mubr.f32.vlgmr.msra.gmra.mxu0 %v5328_v3  ;;  %2138 = vmatmul.mubr.f32.vlgmr.msra.gmra.mxu1 %v5330_v28  ;;  %v1298_v47 = vadd.f32 %v1297_v24, %v5425_v20  ;;  %v5507_v24 = vld [vmem:[%s6060_s2 + $0x40] sm:$0xff] }
 0x120   :  { %1248 = vst [vmem:[%s6059_s3 + $0xa0] sm:$0xff] %v5425_v20  ;;  %1250 = vst [vmem:[%s6059_s3 + $0xb0] sm:$0xff] %v5427_v21  ;;  %v5445_v27 = vpop.f32.mrf.mxu0  ;;  %v5447_v40 = vpop.f32.mrf.mxu1  ;;  %2067 = vmatprep.mubr.f32.mxu0 %v5389_v1  ;;  %2142 = vmatprep.mubr.f32.mxu1 %v5391_v2  ;;  %v5526_v2 = vld [vmem:[%s6060_s2 + $0x48] sm:$0xff] }
 0x121   :  { %6081 = vst [vmem:[#allocation8_spill] sm:$0xff] %v5447_v40  ;;  %1249 = vst [vmem:[%s6059_s3 + $0xa8] sm:$0xff] %v5445_v27  ;;  %v1299_v16 = vadd.f32 %v1298_v47, %v5445_v27  ;;  %v1343_v47 = vadd.f32 %v1342_v9, %v5507_v24 }
 0x122   :  { %1251 = vst [vmem:[%s6059_s3 + $0xb8] sm:$0xff] %v5447_v40  ;;  %v5462_v52 = vpop.f32.mrf.mxu1 }
 0x123   :  { %v5464_v59 = vpop.f32.mrf.mxu0  ;;  %1276 = vst [vmem:[%s6059_s3 + $0x178] sm:$0xff] %v5462_v52  ;;  %2068 = vmatmul.mubr.f32.gmra.mxu0 %v5373_v55  ;;  %2143 = vmatmul.mubr.f32.gmra.mxu1 %v5375_v58  ;;  %v1344_v9 = vadd.f32 %v1343_v47, %v5526_v2 }
 0x124   :  { %1274 = vst [vmem:[%s6059_s3 + $0x168] sm:$0xff] %v5464_v59  ;;  %v1325_v4 = vadd.f32 %v1324_v48, %v5464_v59  ;;  %v5482_v6 = vpop.f32.mrf.mxu1  ;;  %2212 = vmatprep.mubr.f32.mxu0 %v5445_v27  ;;  %2287 = vmatprep.mubr.f32.mxu1 %v5447_v40  ;;  %v1300_v48 = vadd.f32 %v1299_v16, %v5427_v21 }
 0x125   :  { %v5487_v12 = vpop.f32.mrf.mxu0  ;;  %1277 = vst [vmem:[%s6059_s3 + $0x180] sm:$0xff] %v5482_v6  ;;  %2251 = vmatprep.subr.mxu1 %v5482_v6 }
 0x126   :  { %6082 = vst [vmem:[#allocation9_spill] sm:$0xff] %v5487_v12  ;;  %1275 = vst [vmem:[%s6059_s3 + $0x170] sm:$0xff] %v5487_v12  ;;  %2176 = vmatprep.subr.mxu0 %v5487_v12  ;;  %2252 = vmatpush1.xpose.msra.mxu1 %v5462_v52  ;;  %v1326_v17 = vadd.f32 %v1325_v4, %v5487_v12  ;;  %v1301_v28 = vadd.f32 %v1300_v48, %v5447_v40 }
 0x127   :  { %2177 = vmatpush1.xpose.msra.mxu0 %v5464_v59  ;;  %2253 = vmatprep.subr.mxu1 %v5447_v40  ;;  %v5561_v40 = vld [vmem:[%s6060_s2 + $0x50] sm:$0xff] }
 0x128   :  { %2178 = vmatprep.subr.mxu0 %v5445_v27  ;;  %v1327_v4 = vadd.f32 %v1326_v17, %v5462_v52  ;;  %v5542_v17 = vld [vmem:[%s6060_s2 + $0xc8] sm:$0xff] }
 0x12a   :  { %2254 = vmatpush1.xpose.msra.mxu1 %v5427_v21  ;;  %v1328_v48 = vadd.f32 %v1327_v4, %v5482_v6 }
 0x12b   :  { %v5518_v58 = vpop.f32.mrf.mxu0  ;;  %2179 = vmatpush1.xpose.msra.mxu0 %v5425_v20  ;;  %2410 = vmatprep.subr.mxu1 %v5513_v46 }
 0x12c   :  { %1278 = vst.msk [vmem:[%s6059_s3 + $0x188] sm:$0xff] %vm1252_vm1, %v5518_v58  ;;  %4433 = vmatprep.subr.msk.mxu0 %vm1252_vm1, %v5518_v58 }
 0x12d   :  { %v5536_v16 = vpop.f32.mrf.mxu0  ;;  %2288 = vmatmul.mubr.f32.vlgmr.msra.gmra.mxu1 %v5427_v21 }
 0x12e   :  { %1253 = vst.msk [vmem:[%s6059_s3 + $0xc0] sm:$0xff] %vm1252_vm1, %v5536_v16  ;;  %2213 = vmatmul.mubr.f32.vlgmr.msra.gmra.mxu0 %v5425_v20  ;;  %2292 = vmatprep.mubr.f32.mxu1 %v5482_v6  ;;  %v1302_v47 = vsel %vm1252_vm1, %v5536_v16, 0.0  ;;  %v1329_v20 = vsel %vm1252_vm1, %v5518_v58, 0.0 }
 0x12f   :  { %2217 = vmatprep.mubr.f32.mxu0 %v5487_v12  ;;  %4434 = vmatpush3.xpose.msk.msra.mxu0 %vm1252_vm1, %v5518_v58  ;;  %v1303_v21 = vadd.f32 %v1302_v47, %v1301_v28  ;;  %v1345_v12 = vadd.f32 %v1344_v9, %v5561_v40  ;;  %v5575_v28 = vld [vmem:[%s6060_s2 + $0xe0] sm:$0xff]  ;;  %v1330_v4 = vadd.f32 %v1329_v20, %v1328_v48  ;;  %v5589_v9 = vld [vmem:[%s6060_s2 + $0x58] sm:$0xff] }
 0x130   :  { %2411 = vmatpush1.xpose.msra.mxu1 %v5542_v17  ;;  %4435 = vmatprep.subr.msk.mxu0 %vm1252_vm1, %v5536_v16  ;;  %v5596_v47 = vld [vmem:[%s6060_s2 + $0xd8] sm:$0xff]  ;;  %v1363_v48 = vadd.f32 %v5513_v46, %v5542_v17 }
 0x131   :  { %1304 = vadd.xlane.f32.xlu0 %v1303_v21  ;;  %2293 = vmatmul.mubr.f32.gmra.mxu1 %v5462_v52  ;;  %v5584_v21 = vld [vmem:[%s6060_s2 + $0xf0] sm:$0xff]  ;;  %v1346_v20 = vadd.f32 %v1345_v12, %v5589_v9  ;;  %v5615_v12 = vld [vmem:[%s6060_s2 + $0x60] sm:$0xff] }
 0x132   :  { %2218 = vmatmul.mubr.f32.gmra.mxu0 %v5464_v59  ;;  %2412 = vmatprep.subr.mxu1 %v5315_v22 }
 0x133   :  { %4436 = vmatpush3.xpose.msk.msra.mxu0 %vm1252_vm1, %v5536_v16  ;;  %4437 = vmatprep.mubr.msk.f32.mxu0 %vm1252_vm1, %v5536_v16 }
 0x134   :  { %2413 = vmatpush1.xpose.msra.mxu1 %v5320_v23  ;;  %2446 = vmatprep.mubr.f32.mxu1 %v5045_v30  ;;  %v5608_v30 = vld [vmem:[%s6060_s2 + $0xe8] sm:$0xff]  ;;  %v1364_v23 = vadd.f32 %v1363_v48, %v5596_v47 }
 0x135   :  { %1331 = vadd.xlane.f32.xlu0 %v1330_v4  ;;  %2485 = vmatprep.subr.mxu0 %v5575_v28  ;;  %v1347_v4 = vadd.f32 %v1346_v20, %v5615_v12 }
 0x136   :  { %4438 = vmatmul.mubr.msk.f32.vlgmr.msra.gmra.mxu0 %vm1252_vm1, %v5518_v58  ;;  %2560 = vmatprep.subr.mxu1 %v5584_v21  ;;  %v1365_v48 = vadd.f32 %v1364_v23, %v5575_v28 }
 0x137   :  { %2447 = vmatmul.mubr.f32.vlgmr.msra.gmra.mxu1 %v5037_v29  ;;  %2486 = vmatpush1.xpose.msra.mxu0 %v5596_v47  ;;  %v5625_v29 = vld [vmem:[%s6060_s2 + $0x100] sm:$0xff] }
 0x138   :  { %2451 = vmatprep.mubr.f32.mxu1 %v5068_v32  ;;  %2521 = vmatprep.mubr.f32.mxu0 %v5056_v34  ;;  %v5634_v34 = vld [vmem:[%s6060_s2 + $0x110] sm:$0xff]  ;;  %v5639_v32 = vld [vmem:[%s6060_s2 + $0x68] sm:$0xff]  ;;  %v1366_v23 = vadd.f32 %v1365_v48, %v5608_v30  ;;  %v5713_v48 = vld [vmem:[%s6060_s2 + $0x80] sm:$0xff] }
 0x139   :  { %2561 = vmatpush1.xpose.msra.mxu1 %v5608_v30  ;;  %2487 = vmatprep.subr.mxu0 %v5370_v51  ;;  %v1348_v20 = vadd.f32 %v1347_v4, %v5639_v32  ;;  %v5663_v4 = vld [vmem:[%s6060_s2 + $0x70] sm:$0xff] }
 0x13a   :  { %2562 = vmatprep.subr.mxu1 %v5419_v13 }
 0x13b   :  { %2452 = vmatmul.mubr.f32.gmra.mxu1 %v5062_v31  ;;  %2488 = vmatpush1.xpose.msra.mxu0 %v5345_v37  ;;  %v5646_v31 = vld [vmem:[%s6060_s2 + $0xf8] sm:$0xff] }
 0x13c   :  { %2596 = vmatprep.mubr.f32.mxu1 %v5100_v38  ;;  %2635 = vmatprep.subr.mxu0 %v5625_v29  ;;  %v5656_v38 = vld [vmem:[%s6060_s2 + $0x108] sm:$0xff] }
 0x13d   :  { %2563 = vmatpush1.xpose.msra.mxu1 %v5407_v5 }
 0x13e   :  { %2522 = vmatmul.mubr.f32.vlgmr.msra.gmra.mxu0 %v5043_v25  ;;  %2710 = vmatprep.subr.mxu1 %v5634_v34  ;;  %v1349_v25 = vadd.f32 %v1348_v20, %v5663_v4  ;;  %v1367_v20 = vadd.f32 %v1366_v23, %v5584_v21  ;;  %v5763_v23 = vld [vmem:[%s6060_s2 + $0x90] sm:$0xff] }
 0x13f   :  { %2526 = vmatprep.mubr.f32.mxu0 %v5084_v35  ;;  %2636 = vmatpush1.xpose.msra.mxu0 %v5646_v31  ;;  %v5673_v35 = vld [vmem:[%s6060_s2 + $0x120] sm:$0xff] }
 0x140   :  { %2597 = vmatmul.mubr.f32.vlgmr.msra.gmra.mxu1 %v5091_v36  ;;  %2637 = vmatprep.subr.mxu0 %v5475_v62  ;;  %v5683_v36 = vld [vmem:[%s6060_s2 + $0x130] sm:$0xff] }
 0x141   :  { %2601 = vmatprep.mubr.f32.mxu1 %v5135_v45  ;;  %2711 = vmatpush1.xpose.msra.mxu1 %v5656_v38  ;;  %v5688_v45 = vld [vmem:[%s6060_s2 + $0x78] sm:$0xff] }
 0x142   :  { %2527 = vmatmul.mubr.f32.gmra.mxu0 %v5077_v33  ;;  %2712 = vmatprep.subr.mxu1 %v5526_v2  ;;  %v5695_v33 = vld [vmem:[%s6060_s2 + $0x118] sm:$0xff] }
 0x143   :  { %2638 = vmatpush1.xpose.msra.mxu0 %v5443_v26  ;;  %2671 = vmatprep.mubr.f32.mxu0 %v5118_v41  ;;  %v1350_v41 = vadd.f32 %v1349_v25, %v5688_v45 }
 0x144   :  { %2602 = vmatmul.mubr.f32.gmra.mxu1 %v5126_v43  ;;  %2785 = vmatprep.subr.mxu0 %v5673_v35  ;;  %v5706_v43 = vld [vmem:[%s6060_s2 + $0x128] sm:$0xff] }
 0x145   :  { %2713 = vmatpush1.xpose.msra.mxu1 %v5507_v24  ;;  %2746 = vmatprep.mubr.f32.mxu1 %v5184_v56  ;;  %v1368_v56 = vadd.f32 %v1367_v20, %v5646_v31  ;;  %v5813_v20 = vld [vmem:[%s6060_s2 + $0xa8] sm:$0xff] }
 0x146   :  { %2672 = vmatmul.mubr.f32.vlgmr.msra.gmra.mxu0 %v5102_v39  ;;  %2860 = vmatprep.subr.mxu1 %v5683_v36  ;;  %v1351_v39 = vadd.f32 %v1350_v41, %v5713_v48 }
 0x147   :  { %2676 = vmatprep.mubr.f32.mxu0 %v5156_v50  ;;  %2786 = vmatpush1.xpose.msra.mxu0 %v5695_v33  ;;  %v5723_v50 = vld [vmem:[%s6060_s2 + $0x140] sm:$0xff]  ;;  %v1369_v25 = vadd.f32 %v1368_v56, %v5625_v29  ;;  %v6083_v56 = vld [vmem:[#allocation3_spill] sm:$0xff] }
 0x148   :  { %2747 = vmatmul.mubr.f32.vlgmr.msra.gmra.mxu1 %v5168_v53  ;;  %2787 = vmatprep.subr.mxu0 %v5589_v9  ;;  %v5733_v53 = vld [vmem:[%s6060_s2 + $0x150] sm:$0xff] }
 0x149   :  { %2751 = vmatprep.mubr.f32.mxu1 %v5216_v63  ;;  %2861 = vmatpush1.xpose.msra.mxu1 %v5706_v43  ;;  %v5738_v63 = vld [vmem:[%s6060_s2 + $0x88] sm:$0xff] }
 0x14a   :  { %2677 = vmatmul.mubr.f32.gmra.mxu0 %v5149_v49  ;;  %2862 = vmatprep.subr.mxu1 %v5639_v32  ;;  %v5745_v49 = vld [vmem:[%s6060_s2 + $0x138] sm:$0xff] }
 0x14b   :  { %2788 = vmatpush1.xpose.msra.mxu0 %v5561_v40  ;;  %2821 = vmatprep.mubr.f32.mxu0 %v5186_v57  ;;  %v1352_v57 = vadd.f32 %v1351_v39, %v5738_v63 }
 0x14c   :  { %2752 = vmatmul.mubr.f32.gmra.mxu1 %v5201_v60  ;;  %2935 = vmatprep.subr.mxu0 %v5723_v50  ;;  %v5756_v60 = vld [vmem:[%s6060_s2 + $0x148] sm:$0xff] }
 0x14d   :  { %2863 = vmatpush1.xpose.msra.mxu1 %v5615_v12  ;;  %2896 = vmatprep.mubr.f32.mxu1 %v5258_v10  ;;  %v1370_v10 = vadd.f32 %v1369_v25, %v5656_v38  ;;  %v5869_v25 = vld [vmem:[%s6060_s2 + $0xb0] sm:$0xff] }
 0x14e   :  { %2822 = vmatmul.mubr.f32.vlgmr.msra.gmra.mxu0 %v5170_v54  ;;  %3010 = vmatprep.subr.mxu1 %v5733_v53  ;;  %v1353_v54 = vadd.f32 %v1352_v57, %v5763_v23  ;;  %v6084_v57 = vld [vmem:[#allocation5_spill] sm:$0xff] }
 0x14f   :  { %2826 = vmatprep.mubr.f32.mxu0 %v5218_v0  ;;  %2936 = vmatpush1.xpose.msra.mxu0 %v5745_v49  ;;  %v5773_v0 = vld [vmem:[%s6060_s2 + $0x160] sm:$0xff]  ;;  %v1371_v41 = vadd.f32 %v1370_v10, %v5634_v34 }
 0x150   :  { %2897 = vmatmul.mubr.f32.vlgmr.msra.gmra.mxu1 %v5243_v7  ;;  %2937 = vmatprep.subr.mxu0 %v5688_v45  ;;  %v5783_v7 = vld [vmem:[%s6060_s2 + $0x170] sm:$0xff] }
 0x151   :  { %2901 = vmatprep.mubr.f32.mxu1 %v5292_v18  ;;  %3011 = vmatpush1.xpose.msra.mxu1 %v5756_v60  ;;  %v5788_v18 = vld [vmem:[%s6060_s2 + $0x98] sm:$0xff]  ;;  %v1372_v39 = vadd.f32 %v1371_v41, %v5695_v33 }
 0x152   :  { %2827 = vmatmul.mubr.f32.gmra.mxu0 %v5203_v61  ;;  %3012 = vmatprep.subr.mxu1 %v5738_v63  ;;  %v5795_v61 = vld [vmem:[%s6060_s2 + $0x158] sm:$0xff] }
 0x153   :  { %2938 = vmatpush1.xpose.msra.mxu0 %v5663_v4  ;;  %2971 = vmatprep.mubr.f32.mxu0 %v5260_v11  ;;  %v1354_v11 = vadd.f32 %v1353_v54, %v5788_v18  ;;  %v6085_v54 = vld [vmem:[#allocation6_spill] sm:$0xff] }
 0x154   :  { %2902 = vmatmul.mubr.f32.gmra.mxu1 %v5276_v14  ;;  %3085 = vmatprep.subr.mxu0 %v5773_v0  ;;  %v5806_v14 = vld [vmem:[%s6060_s2 + $0x168] sm:$0xff] }
 0x155   :  { %3013 = vmatpush1.xpose.msra.mxu1 %v5713_v48  ;;  %3046 = vmatprep.mubr.f32.mxu1 %v5348_v42 }
 0x156   :  { %2972 = vmatmul.mubr.f32.vlgmr.msra.gmra.mxu0 %v5245_v8  ;;  %3160 = vmatprep.subr.mxu1 %v5783_v7  ;;  %v5818_v8 = vld [vmem:[%s6060_s2 + $0xa0] sm:$0xff] }
 0x157   :  { %2976 = vmatprep.mubr.f32.mxu0 %v5294_v19  ;;  %3086 = vmatpush1.xpose.msra.mxu0 %v5795_v61  ;;  %v1355_v42 = vadd.f32 %v1354_v11, %v5818_v8  ;;  %v5828_v19 = vld [vmem:[%s6060_s2 + $0x180] sm:$0xff]  ;;  %v6086_v11 = vld [vmem:[#allocation9_spill] sm:$0xff] }
 0x158   :  { %3047 = vmatmul.mubr.f32.vlgmr.msra.gmra.mxu1 %v5328_v3  ;;  %3087 = vmatprep.subr.mxu0 %v5788_v18  ;;  %v5838_v3 = vld [vmem:[%s6060_s2 + $0x188] sm:$0xff] }
 0x159   :  { %3051 = vmatprep.mubr.f32.mxu1 %v5389_v1  ;;  %3161 = vmatpush1.xpose.msra.mxu1 %v5806_v14  ;;  %v5845_v1 = vld [vmem:[%s6060_s2 + $0x178] sm:$0xff] }
 0x15a   :  { %2977 = vmatmul.mubr.f32.gmra.mxu0 %v5278_v15  ;;  %3162 = vmatprep.subr.mxu1 %v5813_v20  ;;  %v1356_v15 = vadd.f32 %v1355_v42, %v5813_v20  ;;  %v6087_v42 = vld [vmem:[#allocation4_spill] sm:$0xff] }
 0x15b   :  { %3088 = vmatpush1.xpose.msra.mxu0 %v5763_v23  ;;  %3121 = vmatprep.mubr.f32.mxu0 %v5350_v44  ;;  %v5853_v44 = vld [vmem:[%s6060_s2 + $0xb8] sm:$0xff] }
 0x15c   :  { %3052 = vmatmul.mubr.f32.gmra.mxu1 %v5373_v55  ;;  %3235 = vmatprep.subr.mxu0 %v5828_v19  ;;  %v1373_v55 = vadd.f32 %v1372_v39, %v5673_v35  ;;  %v1357_v10 = vadd.f32 %v1356_v15, %v5869_v25  ;;  %v6088_v39 = vld [vmem:[#allocation8_spill] sm:$0xff] }
 0x15d   :  { %3163 = vmatpush1.xpose.msra.mxu1 %v5818_v8  ;;  %3196 = vmatprep.mubr.f32.mxu1 %v5445_v27  ;;  %v5864_v27 = vld [vmem:[%s6060_s2 + $0xc0] sm:$0xff] }
 0x15e   :  { %3122 = vmatmul.mubr.f32.vlgmr.msra.gmra.mxu0 %v6083_v56  ;;  %4440 = vmatprep.subr.msk.mxu1 %vm1252_vm1, %v5838_v3  ;;  %v1374_v41 = vadd.f32 %v1373_v55, %v5706_v43  ;;  %v1358_v15 = vadd.f32 %v1357_v10, %v5853_v44  ;;  %v1359_v55 = vsel %vm1252_vm1, %v5864_v27, 0.0 }
 0x15f   :  { %3126 = vmatprep.mubr.f32.mxu0 %v6084_v57  ;;  %3236 = vmatpush1.xpose.msra.mxu0 %v5845_v1  ;;  %v6089_v57 = vld [vmem:[#allocation7_spill] sm:$0xff] }
 0x160   :  { %3197 = vmatmul.mubr.f32.vlgmr.msra.gmra.mxu1 %v6085_v54  ;;  %3237 = vmatprep.subr.mxu0 %v5853_v44  ;;  %v1375_v56 = vadd.f32 %v1374_v41, %v5683_v36  ;;  %v6090_v54 = vld [vmem:[#allocation2_spill] sm:$0xff] }
 0x161   :  { %3201 = vmatprep.mubr.f32.mxu1 %v6086_v11  ;;  %4441 = vmatpush3.xpose.msk.msra.mxu1 %vm1252_vm1, %v5838_v3 }
 0x162   :  { %3127 = vmatmul.mubr.f32.gmra.mxu0 %v6087_v42  ;;  %4442 = vmatprep.subr.msk.mxu1 %vm1252_vm1, %v5864_v27 }
 0x163   :  { %3238 = vmatpush1.xpose.msra.mxu0 %v5869_v25  ;;  %3271 = vmatprep.mubr.f32.mxu0 %v6088_v39 }
 0x164   :  { %3202 = vmatmul.mubr.f32.gmra.mxu1 %v5464_v59  ;;  %3387 = vmatprep.subr.mxu0 %v5513_v46  ;;  %v1360_v59 = vadd.f32 %v1359_v55, %v1358_v15 }
 0x165   :  { %4443 = vmatpush3.xpose.msk.msra.mxu1 %vm1252_vm1, %v5864_v27  ;;  %4444 = vmatprep.mubr.msk.f32.mxu1 %vm1252_vm1, %v5536_v16  ;;  %v1376_v16 = vadd.f32 %v1375_v56, %v5745_v49 }
 0x166   :  { %3272 = vmatmul.mubr.f32.vlgmr.msra.gmra.mxu0 %v6089_v57  ;;  %3462 = vmatprep.subr.mxu1 %v5575_v28 }
 0x167   :  { %3276 = vmatprep.mubr.f32.mxu0 %v5482_v6  ;;  %3388 = vmatpush1.xpose.msra.mxu0 %v5542_v17 }
 0x168   :  { %4445 = vmatmul.mubr.msk.f32.vlgmr.msra.gmra.mxu1 %vm1252_vm1, %v5518_v58  ;;  %3389 = vmatprep.subr.mxu0 %v5315_v22  ;;  %v1377_v58 = vadd.f32 %v1376_v16, %v5723_v50 }
 0x169   :  { %3463 = vmatpush1.xpose.msra.mxu1 %v5596_v47  ;;  %3498 = vmatprep.mubr.f32.mxu1 %v5370_v51 }
 0x16a   :  { %3277 = vmatmul.mubr.f32.gmra.mxu0 %v5462_v52  ;;  %3464 = vmatprep.subr.mxu1 %v5370_v51  ;;  %v1386_v52 = vsel %vm1252_vm1, %v5838_v3, 0.0 }
 0x16b   :  { %3390 = vmatpush1.xpose.msra.mxu0 %v6090_v54  ;;  %3423 = vmatprep.mubr.f32.mxu0 %v5315_v22  ;;  %v1378_v22 = vadd.f32 %v1377_v58, %v5756_v60 }
 0x16c   :  { %3537 = vmatprep.subr.mxu0 %v5584_v21  ;;  %1361 = vadd.xlane.f32.xlu1 %v1360_v59 }
 0x16d   :  { %3465 = vmatpush1.xpose.msra.mxu1 %v5345_v37 }
 0x16e   :  { %3424 = vmatmul.mubr.f32.vlgmr.msra.gmra.mxu0 %v6090_v54  ;;  %3612 = vmatprep.subr.mxu1 %v5625_v29 }
 0x16f   :  { %3538 = vmatpush1.xpose.msra.mxu0 %v5608_v30  ;;  %3428 = vmatprep.mubr.f32.mxu0 %v5513_v46 }
 0x170   :  { %3499 = vmatmul.mubr.f32.vlgmr.msra.gmra.mxu1 %v5345_v37  ;;  %3539 = vmatprep.subr.mxu0 %v5419_v13  ;;  %v1379_v37 = vadd.f32 %v1378_v22, %v5733_v53 }
 0x171   :  { %3613 = vmatpush1.xpose.msra.mxu1 %v5646_v31  ;;  %3503 = vmatprep.mubr.f32.mxu1 %v5575_v28 }
 0x172   :  { %3429 = vmatmul.mubr.f32.gmra.mxu0 %v5542_v17  ;;  %3614 = vmatprep.subr.mxu1 %v5475_v62  ;;  %v1380_v51 = vadd.f32 %v1379_v37, %v5795_v61 }
 0x173   :  { %3540 = vmatpush1.xpose.msra.mxu0 %v5407_v5  ;;  %3573 = vmatprep.mubr.f32.mxu0 %v5419_v13 }
 0x174   :  { %3504 = vmatmul.mubr.f32.gmra.mxu1 %v5596_v47  ;;  %3687 = vmatprep.subr.mxu0 %v5634_v34 }
 0x175   :  { %3615 = vmatpush1.xpose.msra.mxu1 %v5443_v26  ;;  %3648 = vmatprep.mubr.f32.mxu1 %v5475_v62 }
 0x176   :  { %3574 = vmatmul.mubr.f32.vlgmr.msra.gmra.mxu0 %v5407_v5  ;;  %3762 = vmatprep.subr.mxu1 %v5673_v35  ;;  %v1381_v5 = vadd.f32 %v1380_v51, %v5773_v0 }
 0x177   :  { %3688 = vmatpush1.xpose.msra.mxu0 %v5656_v38  ;;  %3578 = vmatprep.mubr.f32.mxu0 %v5584_v21 }
 0x178   :  { %3649 = vmatmul.mubr.f32.vlgmr.msra.gmra.mxu1 %v5443_v26  ;;  %3689 = vmatprep.subr.mxu0 %v5526_v2 }
 0x179   :  { %3763 = vmatpush1.xpose.msra.mxu1 %v5695_v33  ;;  %3653 = vmatprep.mubr.f32.mxu1 %v5625_v29 }
 0x17a   :  { %3579 = vmatmul.mubr.f32.gmra.mxu0 %v5608_v30  ;;  %3764 = vmatprep.subr.mxu1 %v5589_v9 }
 0x17b   :  { %3690 = vmatpush1.xpose.msra.mxu0 %v5507_v24  ;;  %3723 = vmatprep.mubr.f32.mxu0 %v5526_v2  ;;  %v1382_v2 = vadd.f32 %v1381_v5, %v5806_v14 }
 0x17c   :  { %3654 = vmatmul.mubr.f32.gmra.mxu1 %v5646_v31  ;;  %3837 = vmatprep.subr.mxu0 %v5683_v36 }
 0x17d   :  { %3765 = vmatpush1.xpose.msra.mxu1 %v5561_v40  ;;  %3798 = vmatprep.mubr.f32.mxu1 %v5589_v9  ;;  %v1383_v13 = vadd.f32 %v1382_v2, %v5783_v7 }
 0x17e   :  { %3724 = vmatmul.mubr.f32.vlgmr.msra.gmra.mxu0 %v5507_v24  ;;  %3912 = vmatprep.subr.mxu1 %v5723_v50 }
 0x17f   :  { %3838 = vmatpush1.xpose.msra.mxu0 %v5706_v43  ;;  %3728 = vmatprep.mubr.f32.mxu0 %v5634_v34  ;;  %v1384_v26 = vadd.f32 %v1383_v13, %v5845_v1 }
 0x180   :  { %3799 = vmatmul.mubr.f32.vlgmr.msra.gmra.mxu1 %v5561_v40  ;;  %3839 = vmatprep.subr.mxu0 %v5639_v32 }
 0x181   :  { %3913 = vmatpush1.xpose.msra.mxu1 %v5745_v49  ;;  %3803 = vmatprep.mubr.f32.mxu1 %v5673_v35  ;;  %v1385_v40 = vadd.f32 %v1384_v26, %v5828_v19 }
 0x182   :  { %3729 = vmatmul.mubr.f32.gmra.mxu0 %v5656_v38  ;;  %3914 = vmatprep.subr.mxu1 %v5688_v45 }
 0x183   :  { %3840 = vmatpush1.xpose.msra.mxu0 %v5615_v12  ;;  %3873 = vmatprep.mubr.f32.mxu0 %v5639_v32  ;;  %v1387_v62 = vadd.f32 %v1386_v52, %v1385_v40 }
 0x184   :  { %3804 = vmatmul.mubr.f32.gmra.mxu1 %v5695_v33  ;;  %3987 = vmatprep.subr.mxu0 %v5733_v53 }
 0x185   :  { %3915 = vmatpush1.xpose.msra.mxu1 %v5663_v4  ;;  %3948 = vmatprep.mubr.f32.mxu1 %v5688_v45 }
 0x186   :  { %3874 = vmatmul.mubr.f32.vlgmr.msra.gmra.mxu0 %v5615_v12  ;;  %4062 = vmatprep.subr.mxu1 %v5773_v0 }
 0x187   :  { %3988 = vmatpush1.xpose.msra.mxu0 %v5756_v60  ;;  %3878 = vmatprep.mubr.f32.mxu0 %v5683_v36 }
 0x188   :  { %3949 = vmatmul.mubr.f32.vlgmr.msra.gmra.mxu1 %v5663_v4  ;;  %3989 = vmatprep.subr.mxu0 %v5738_v63 }
 0x189   :  { %4063 = vmatpush1.xpose.msra.mxu1 %v5795_v61  ;;  %3953 = vmatprep.mubr.f32.mxu1 %v5723_v50 }
 0x18a   :  { %3879 = vmatmul.mubr.f32.gmra.mxu0 %v5706_v43  ;;  %4064 = vmatprep.subr.mxu1 %v5788_v18 }
 0x18b   :  { %3990 = vmatpush1.xpose.msra.mxu0 %v5713_v48  ;;  %4023 = vmatprep.mubr.f32.mxu0 %v5738_v63 }
 0x18c   :  { %3954 = vmatmul.mubr.f32.gmra.mxu1 %v5745_v49  ;;  %4137 = vmatprep.subr.mxu0 %v5783_v7 }
 0x18d   :  { %4065 = vmatpush1.xpose.msra.mxu1 %v5763_v23  ;;  %4098 = vmatprep.mubr.f32.mxu1 %v5788_v18 }
 0x18e   :  { %4024 = vmatmul.mubr.f32.vlgmr.msra.gmra.mxu0 %v5713_v48  ;;  %4212 = vmatprep.subr.mxu1 %v5828_v19 }
 0x18f   :  { %4138 = vmatpush1.xpose.msra.mxu0 %v5806_v14  ;;  %4028 = vmatprep.mubr.f32.mxu0 %v5733_v53 }
 0x190   :  { %4099 = vmatmul.mubr.f32.vlgmr.msra.gmra.mxu1 %v5763_v23  ;;  %4139 = vmatprep.subr.mxu0 %v5813_v20 }
 0x191   :  { %4213 = vmatpush1.xpose.msra.mxu1 %v5845_v1  ;;  %4103 = vmatprep.mubr.f32.mxu1 %v5773_v0 }
 0x192   :  { %4029 = vmatmul.mubr.f32.gmra.mxu0 %v5756_v60  ;;  %4214 = vmatprep.subr.mxu1 %v5853_v44 }
 0x193   :  { %4140 = vmatpush1.xpose.msra.mxu0 %v5818_v8  ;;  %4173 = vmatprep.mubr.f32.mxu0 %v5813_v20 }
 0x194   :  { %4104 = vmatmul.mubr.f32.gmra.mxu1 %v5795_v61  ;;  %4447 = vmatprep.subr.msk.mxu0 %vm1252_vm1, %v5838_v3 }
 0x195   :  { %4215 = vmatpush1.xpose.msra.mxu1 %v5869_v25  ;;  %4248 = vmatprep.mubr.f32.mxu1 %v5853_v44 }
 0x196   :  { %4174 = vmatmul.mubr.f32.vlgmr.msra.gmra.mxu0 %v5818_v8  ;;  %1388 = vadd.xlane.f32.xlu1 %v1387_v62 }
 0x197   :  { %4448 = vmatpush3.xpose.msk.msra.mxu0 %vm1252_vm1, %v5838_v3  ;;  %4178 = vmatprep.mubr.f32.mxu0 %v5783_v7 }
 0x198   :  { %4249 = vmatmul.mubr.f32.vlgmr.msra.gmra.mxu1 %v5869_v25  ;;  %4449 = vmatprep.subr.msk.mxu0 %vm1252_vm1, %v5864_v27 }
 0x199   :  { %4253 = vmatprep.mubr.f32.mxu1 %v5828_v19 }
 0x19a   :  { %4179 = vmatmul.mubr.f32.gmra.mxu0 %v5806_v14 }
 0x19b   :  { %4450 = vmatpush3.xpose.msk.msra.mxu0 %vm1252_vm1, %v5864_v27  ;;  %4451 = vmatprep.mubr.msk.f32.mxu0 %vm1252_vm1, %v5864_v27 }
 0x19c   :  { %4254 = vmatmul.mubr.f32.gmra.mxu1 %v5845_v1 }
 0x19e   :  { %4452 = vmatmul.mubr.msk.f32.vlgmr.msra.gmra.mxu0 %vm1252_vm1, %v5838_v3  ;;  %v1464_v6 = vpop.f32.mrf.mxu1 }
 0x1a0   :  { %v1466_v24 = vpop.f32.mrf.mxu1 }
 0x1a2   :  { %v1469_v46 = vpop.f32.mrf.mxu1 }
 0x1a4   :  { %v1471_v17 = vpop.f32.mrf.mxu1 }
 0x1a6   :  { %v1539_v28 = vpop.f32.mrf.mxu1 }
 0x1a7   :  { %v1540_v8 = vadd.f32 %v1539_v28, %v1464_v6 }
 0x1a8   :  { %v1541_v21 = vpop.f32.mrf.mxu1 }
 0x1aa   :  { %v1544_v9 = vpop.f32.mrf.mxu1 }
 0x1ab   :  { %v1545_v19 = vadd.f32 %v1544_v9, %v1469_v46 }
 0x1ac   :  { %v1546_v47 = vpop.f32.mrf.mxu1 }
 0x1ae   :  { %v1614_v30 = vpop.f32.mrf.mxu0 }
 0x1af   :  { %v1615_v3 = vadd.f32 %v1614_v30, %v1540_v8 }
 0x1b0   :  { %v1616_v12 = vpop.f32.mrf.mxu0 }
 0x1b2   :  { %v1619_v29 = vpop.f32.mrf.mxu0 }
 0x1b3   :  { %v1620_v1 = vadd.f32 %v1619_v29, %v1545_v19 }
 0x1b4   :  { %v1689_v34 = vpop.f32.mrf.mxu1  ;;  %v1621_v32 = vpop.f32.mrf.mxu0 }
 0x1b5   :  { %v1690_v44 = vadd.f32 %v1689_v34, %v1615_v3 }
 0x1b6   :  { %v1691_v31 = vpop.f32.mrf.mxu1 }
 0x1ba   :  { %v1305_v38 = vpop.xlane.xlu0 %1304  ;;  %v1694_v4 = vpop.f32.mrf.mxu1 }
 0x1bb   :  { %1334 = vst.msk [vmem:[%s6061_s4] sm:$0xff] %vm1333_vm2, %v1305_v38  ;;  %v1695_v27 = vadd.f32 %v1694_v4, %v1620_v1 }
 0x1bc   :  { %v1696_v35 = vpop.f32.mrf.mxu1 }
 0x1be   :  { %v1332_v36 = vpop.xlane.xlu0 %1331 }
 0x1bf   :  { %1335 = vst.msk [vmem:[%s6061_s4 + $0x8] sm:$0xff] %vm1333_vm2, %v1332_v36  ;;  %v1764_v45 = vpop.f32.mrf.mxu0  ;;  %v1839_v33 = vpop.f32.mrf.mxu1 }
 0x1c0   :  { %v1765_v11 = vadd.f32 %v1764_v45, %v1690_v44 }
 0x1c1   :  { %v1766_v43 = vpop.f32.mrf.mxu0  ;;  %v1841_v48 = vpop.f32.mrf.mxu1 }
 0x1c2   :  { %v1840_v56 = vadd.f32 %v1839_v33, %v1765_v11 }
 0x1c3   :  { %v1769_v50 = vpop.f32.mrf.mxu0  ;;  %v1844_v53 = vpop.f32.mrf.mxu1 }
 0x1c4   :  { %v1770_v41 = vadd.f32 %v1769_v50, %v1695_v27 }
 0x1c5   :  { %v1771_v63 = vpop.f32.mrf.mxu0  ;;  %v1846_v49 = vpop.f32.mrf.mxu1 }
 0x1c6   :  { %v1845_v57 = vadd.f32 %v1844_v53, %v1770_v41 }
 0x1cf   :  { %v1914_v60 = vpop.f32.mrf.mxu0  ;;  %v1989_v23 = vpop.f32.mrf.mxu1 }
 0x1d0   :  { %v1915_v54 = vadd.f32 %v1914_v60, %v1840_v56 }
 0x1d1   :  { %v1916_v0 = vpop.f32.mrf.mxu0  ;;  %v1991_v7 = vpop.f32.mrf.mxu1 }
 0x1d2   :  { %v1990_v22 = vadd.f32 %v1989_v23, %v1915_v54 }
 0x1d3   :  { %v1919_v18 = vpop.f32.mrf.mxu0  ;;  %v1994_v61 = vpop.f32.mrf.mxu1 }
 0x1d4   :  { %v1920_v58 = vadd.f32 %v1919_v18, %v1845_v57 }
 0x1d5   :  { %v1921_v14 = vpop.f32.mrf.mxu0  ;;  %v1996_v20 = vpop.f32.mrf.mxu1 }
 0x1d6   :  { %v1995_v37 = vadd.f32 %v1994_v61, %v1920_v58 }
 0x1df   :  { %v2064_v25 = vpop.f32.mrf.mxu0  ;;  %v2139_v10 = vpop.f32.mrf.mxu1 }
 0x1e0   :  { %v2065_v51 = vadd.f32 %v2064_v25, %v1990_v22 }
 0x1e1   :  { %v2066_v42 = vpop.f32.mrf.mxu0  ;;  %v2141_v39 = vpop.f32.mrf.mxu1 }
 0x1e2   :  { %v2140_v52 = vadd.f32 %v2139_v10, %v2065_v51 }
 0x1e3   :  { %v2069_v15 = vpop.f32.mrf.mxu0  ;;  %v2144_v55 = vpop.f32.mrf.mxu1 }
 0x1e4   :  { %v2070_v5 = vadd.f32 %v2069_v15, %v1995_v37 }
 0x1e5   :  { %v2071_v59 = vpop.f32.mrf.mxu0  ;;  %v2146_v16 = vpop.f32.mrf.mxu1 }
 0x1e6   :  { %v2145_v62 = vadd.f32 %v2144_v55, %v2070_v5 }
 0x1ed   :  { %v2289_v2 = vpop.f32.mrf.mxu1 }
 0x1ee   :  { %v2214_v13 = vpop.f32.mrf.mxu0 }
 0x1ef   :  { %v2291_v26 = vpop.f32.mrf.mxu1  ;;  %v2215_v46 = vadd.f32 %v2214_v13, %v2140_v52 }
 0x1f0   :  { %v2216_v40 = vpop.f32.mrf.mxu0 }
 0x1f1   :  { %v2294_v6 = vpop.f32.mrf.mxu1  ;;  %v2290_v12 = vadd.f32 %v2289_v2, %v2215_v46 }
 0x1f2   :  { %v2219_v24 = vpop.f32.mrf.mxu0 }
 0x1f3   :  { %v2220_v17 = vadd.f32 %v2219_v24, %v2145_v62  ;;  %v2296_v28 = vpop.f32.mrf.mxu1 }
 0x1f4   :  { %v2221_v21 = vpop.f32.mrf.mxu0 }
 0x1f5   :  { %v2295_v9 = vadd.f32 %v2294_v6, %v2220_v17  ;;  %v1362_v47 = vpop.xlane.xlu1 %1361 }
 0x1f6   :  { %v4439_v30 = vpop.f32.mrf.mxu0  ;;  %1390 = vst.msk [vmem:[%s6062_s5] sm:$0xff] %vm1333_vm2, %v1362_v47 }
 0x1f7   :  { %v2370_v29 = vadd.f32 %v4439_v30, %v2295_v9  ;;  %v2448_v34 = vpop.f32.mrf.mxu1 }
 0x1f8   :  { %v2364_v32 = vpop.f32.mrf.mxu0 }
 0x1f9   :  { %2375 = vst.msk [vmem:[%s6063_s6 + $0x8] sm:$0xff] %vm2373_vm3, %v2370_v29  ;;  %v2365_v31 = vadd.f32 %v2364_v32, %v2290_v12  ;;  %v2450_v38 = vpop.f32.mrf.mxu1 }
 0x1fb   :  { %2374 = vst.msk [vmem:[%s6063_s6] sm:$0xff] %vm2373_vm3, %v2365_v31  ;;  %v2453_v4 = vpop.f32.mrf.mxu1 }
 0x1fd   :  { %v2455_v35 = vpop.f32.mrf.mxu1 }
 0x1fe   :  { %v2523_v36 = vpop.f32.mrf.mxu0 }
 0x1ff   :  { %v2524_v0 = vadd.f32 %v2523_v36, %v2448_v34 }
 0x200   :  { %v2598_v45 = vpop.f32.mrf.mxu1  ;;  %v2525_v33 = vpop.f32.mrf.mxu0 }
 0x201   :  { %v2599_v20 = vadd.f32 %v2598_v45, %v2524_v0 }
 0x202   :  { %v2600_v43 = vpop.f32.mrf.mxu1  ;;  %v2528_v48 = vpop.f32.mrf.mxu0 }
 0x203   :  { %v2529_v8 = vadd.f32 %v2528_v48, %v2453_v4 }
 0x204   :  { %v2603_v50 = vpop.f32.mrf.mxu1  ;;  %v2530_v53 = vpop.f32.mrf.mxu0 }
 0x205   :  { %v2604_v25 = vadd.f32 %v2603_v50, %v2529_v8 }
 0x206   :  { %v2605_v63 = vpop.f32.mrf.mxu1  ;;  %v2673_v49 = vpop.f32.mrf.mxu0 }
 0x207   :  { %v2674_v1 = vadd.f32 %v2673_v49, %v2599_v20 }
 0x208   :  { %v2748_v60 = vpop.f32.mrf.mxu1  ;;  %v2675_v23 = vpop.f32.mrf.mxu0 }
 0x209   :  { %v2749_v41 = vadd.f32 %v2748_v60, %v2674_v1 }
 0x20a   :  { %v2750_v7 = vpop.f32.mrf.mxu1  ;;  %v2678_v18 = vpop.f32.mrf.mxu0 }
 0x20b   :  { %v2679_v42 = vadd.f32 %v2678_v18, %v2604_v25 }
 0x20c   :  { %v2753_v61 = vpop.f32.mrf.mxu1  ;;  %v2680_v14 = vpop.f32.mrf.mxu0 }
 0x20d   :  { %v2754_v59 = vadd.f32 %v2753_v61, %v2679_v42 }
 0x20e   :  { %v2755_v19 = vpop.f32.mrf.mxu1  ;;  %v2823_v3 = vpop.f32.mrf.mxu0 }
 0x20f   :  { %v2824_v55 = vadd.f32 %v2823_v3, %v2749_v41 }
 0x210   :  { %v2898_v44 = vpop.f32.mrf.mxu1  ;;  %v2825_v27 = vpop.f32.mrf.mxu0 }
 0x211   :  { %v2899_v58 = vadd.f32 %v2898_v44, %v2824_v55 }
 0x212   :  { %v2900_v10 = vpop.f32.mrf.mxu1  ;;  %v2828_v11 = vpop.f32.mrf.mxu0 }
 0x213   :  { %v2829_v22 = vadd.f32 %v2828_v11, %v2754_v59 }
 0x214   :  { %v2903_v39 = vpop.f32.mrf.mxu1  ;;  %v2830_v15 = vpop.f32.mrf.mxu0 }
 0x215   :  { %v2904_v26 = vadd.f32 %v2903_v39, %v2829_v22 }
 0x216   :  { %v2905_v56 = vpop.f32.mrf.mxu1  ;;  %v2973_v57 = vpop.f32.mrf.mxu0 }
 0x217   :  { %v2974_v5 = vadd.f32 %v2973_v57, %v2899_v58 }
 0x218   :  { %v3048_v16 = vpop.f32.mrf.mxu1  ;;  %v2975_v54 = vpop.f32.mrf.mxu0 }
 0x219   :  { %v3049_v62 = vadd.f32 %v3048_v16, %v2974_v5 }
 0x21a   :  { %v3050_v37 = vpop.f32.mrf.mxu1  ;;  %v2978_v51 = vpop.f32.mrf.mxu0 }
 0x21b   :  { %v2979_v6 = vadd.f32 %v2978_v51, %v2904_v26 }
 0x21c   :  { %v3053_v2 = vpop.f32.mrf.mxu1  ;;  %v2980_v13 = vpop.f32.mrf.mxu0 }
 0x21d   :  { %v3054_v47 = vadd.f32 %v3053_v2, %v2979_v6 }
 0x21e   :  { %v3055_v40 = vpop.f32.mrf.mxu1  ;;  %v3123_v52 = vpop.f32.mrf.mxu0 }
 0x21f   :  { %v1389_v24 = vpop.xlane.xlu1 %1388  ;;  %v3124_v28 = vadd.f32 %v3123_v52, %v3049_v62 }
 0x220   :  { %v3198_v46 = vpop.f32.mrf.mxu1  ;;  %v3125_v17 = vpop.f32.mrf.mxu0  ;;  %1391 = vst.msk [vmem:[%s6062_s5 + $0x8] sm:$0xff] %vm1333_vm2, %v1389_v24 }
 0x221   :  { %v3199_v29 = vadd.f32 %v3198_v46, %v3124_v28 }
 0x222   :  { %v3200_v21 = vpop.f32.mrf.mxu1  ;;  %v3128_v9 = vpop.f32.mrf.mxu0 }
 0x223   :  { %v3129_v34 = vadd.f32 %v3128_v9, %v3054_v47 }
 0x224   :  { %v3203_v30 = vpop.f32.mrf.mxu1  ;;  %v3130_v12 = vpop.f32.mrf.mxu0 }
 0x225   :  { %v3204_v36 = vadd.f32 %v3203_v30, %v3129_v34 }
 0x226   :  { %v3205_v32 = vpop.f32.mrf.mxu1  ;;  %v3273_v31 = vpop.f32.mrf.mxu0 }
 0x227   :  { %v3274_v38 = vadd.f32 %v3273_v31, %v3199_v29 }
 0x228   :  { %v4446_v4 = vpop.f32.mrf.mxu1  ;;  %v3275_v35 = vpop.f32.mrf.mxu0 }
 0x22a   :  { %v3348_v45 = vpop.f32.mrf.mxu1  ;;  %v3278_v33 = vpop.f32.mrf.mxu0 }
 0x22b   :  { %v3349_v43 = vadd.f32 %v3348_v45, %v3274_v38  ;;  %v3279_v48 = vadd.f32 %v3278_v33, %v3204_v36 }
 0x22c   :  { %v3280_v50 = vpop.f32.mrf.mxu0 }
 0x22d   :  { %3357 = vst.msk [vmem:[%s6064_s7] sm:$0xff] %vm2373_vm3, %v3349_v43  ;;  %v3354_v53 = vadd.f32 %v4446_v4, %v3279_v48 }
 0x22e   :  { %v3425_v63 = vpop.f32.mrf.mxu0 }
 0x22f   :  { %3358 = vst.msk [vmem:[%s6064_s7 + $0x8] sm:$0xff] %vm2373_vm3, %v3354_v53 }
 0x230   :  { %v3500_v49 = vpop.f32.mrf.mxu1  ;;  %v3427_v60 = vpop.f32.mrf.mxu0 }
 0x231   :  { %v3501_v41 = vadd.f32 %v3500_v49, %v3425_v63 }
 0x232   :  { %v3502_v23 = vpop.f32.mrf.mxu1  ;;  %v3430_v0 = vpop.f32.mrf.mxu0 }
 0x234   :  { %v3505_v7 = vpop.f32.mrf.mxu1  ;;  %v3432_v18 = vpop.f32.mrf.mxu0 }
 0x235   :  { %v3506_v42 = vadd.f32 %v3505_v7, %v3430_v0 }
 0x236   :  { %v3507_v61 = vpop.f32.mrf.mxu1  ;;  %v3575_v14 = vpop.f32.mrf.mxu0 }
 0x237   :  { %v3576_v55 = vadd.f32 %v3575_v14, %v3501_v41 }
 0x238   :  { %v3577_v20 = vpop.f32.mrf.mxu0  ;;  %v3650_v8 = vpop.f32.mrf.mxu1 }
 0x239   :  { %v3651_v58 = vadd.f32 %v3650_v8, %v3576_v55 }
 0x23a   :  { %v3580_v19 = vpop.f32.mrf.mxu0  ;;  %v3652_v3 = vpop.f32.mrf.mxu1 }
 0x23b   :  { %v3581_v56 = vadd.f32 %v3580_v19, %v3506_v42 }
 0x23c   :  { %v3582_v1 = vpop.f32.mrf.mxu0  ;;  %v3655_v44 = vpop.f32.mrf.mxu1 }
 0x23d   :  { %v3656_v22 = vadd.f32 %v3655_v44, %v3581_v56 }
 0x23e   :  { %v3657_v27 = vpop.f32.mrf.mxu1  ;;  %v3725_v25 = vpop.f32.mrf.mxu0 }
 0x23f   :  { %v3726_v5 = vadd.f32 %v3725_v25, %v3651_v58 }
 0x240   :  { %v3727_v10 = vpop.f32.mrf.mxu0  ;;  %v3800_v11 = vpop.f32.mrf.mxu1 }
 0x241   :  { %v3801_v62 = vadd.f32 %v3800_v11, %v3726_v5 }
 0x242   :  { %v3730_v39 = vpop.f32.mrf.mxu0  ;;  %v3802_v15 = vpop.f32.mrf.mxu1 }
 0x243   :  { %v3731_v2 = vadd.f32 %v3730_v39, %v3656_v22 }
 0x244   :  { %v3732_v57 = vpop.f32.mrf.mxu0  ;;  %v3805_v59 = vpop.f32.mrf.mxu1 }
 0x245   :  { %v3806_v6 = vadd.f32 %v3805_v59, %v3731_v2 }
 0x246   :  { %v3807_v16 = vpop.f32.mrf.mxu1  ;;  %v3875_v54 = vpop.f32.mrf.mxu0 }
 0x247   :  { %v3876_v17 = vadd.f32 %v3875_v54, %v3801_v62 }
 0x248   :  { %v3877_v37 = vpop.f32.mrf.mxu0  ;;  %v3950_v51 = vpop.f32.mrf.mxu1 }
 0x249   :  { %v3951_v12 = vadd.f32 %v3950_v51, %v3876_v17 }
 0x24a   :  { %v3880_v13 = vpop.f32.mrf.mxu0  ;;  %v3952_v26 = vpop.f32.mrf.mxu1 }
 0x24b   :  { %v3881_v28 = vadd.f32 %v3880_v13, %v3806_v6 }
 0x24c   :  { %v3882_v40 = vpop.f32.mrf.mxu0  ;;  %v3955_v52 = vpop.f32.mrf.mxu1 }
 0x24d   :  { %v3956_v29 = vadd.f32 %v3955_v52, %v3881_v28 }
 0x24e   :  { %v3957_v24 = vpop.f32.mrf.mxu1  ;;  %v4025_v46 = vpop.f32.mrf.mxu0 }
 0x24f   :  { %v4026_v31 = vadd.f32 %v4025_v46, %v3951_v12 }
 0x250   :  { %v4027_v21 = vpop.f32.mrf.mxu0  ;;  %v4100_v9 = vpop.f32.mrf.mxu1 }
 0x251   :  { %v4101_v33 = vadd.f32 %v4100_v9, %v4026_v31 }
 0x252   :  { %v4030_v47 = vpop.f32.mrf.mxu0  ;;  %v4102_v30 = vpop.f32.mrf.mxu1 }
 0x253   :  { %v4031_v38 = vadd.f32 %v4030_v47, %v3956_v29 }
 0x254   :  { %v4032_v34 = vpop.f32.mrf.mxu0  ;;  %v4105_v32 = vpop.f32.mrf.mxu1 }
 0x255   :  { %v4106_v43 = vadd.f32 %v4105_v32, %v4031_v38 }
 0x256   :  { %v4107_v4 = vpop.f32.mrf.mxu1  ;;  %v4175_v35 = vpop.f32.mrf.mxu0 }
 0x257   :  { %v4176_v53 = vadd.f32 %v4175_v35, %v4101_v33 }
 0x258   :  { %v4177_v36 = vpop.f32.mrf.mxu0  ;;  %v4250_v45 = vpop.f32.mrf.mxu1 }
 0x259   :  { %v4251_v18 = vadd.f32 %v4250_v45, %v4176_v53 }
 0x25a   :  { %v4180_v48 = vpop.f32.mrf.mxu0  ;;  %v4252_v50 = vpop.f32.mrf.mxu1 }
 0x25b   :  { %v4181_v63 = vadd.f32 %v4180_v48, %v4106_v43 }
 0x25c   :  { %v4182_v49 = vpop.f32.mrf.mxu0  ;;  %v4255_v60 = vpop.f32.mrf.mxu1 }
 0x25d   :  { %v4256_v23 = vadd.f32 %v4255_v60, %v4181_v63 }
 0x25e   :  { %v4453_v0 = vpop.f32.mrf.mxu0  ;;  %v4257_v7 = vpop.f32.mrf.mxu1 }
 0x25f   :  { %v4331_v61 = vadd.f32 %v4453_v0, %v4256_v23 }
 0x260   :  { %v4325_v14 = vpop.f32.mrf.mxu0 }
 0x261   :  { %4335 = vst.msk [vmem:[%s6065_s8 + $0x8] sm:$0xff] %vm2373_vm3, %v4331_v61  ;;  %v4326_v20 = vadd.f32 %v4325_v14, %v4251_v18 }
 0x263   :  { %4334 = vst.msk [vmem:[%s6065_s8] sm:$0xff] %vm2373_vm3, %v4326_v20 }

// kernel: m_forward.3
= control target key start
LH: loop header
LB: loop body
LE: loop exit
PB: predicated region body
PF: predicated region fallthrough
CT: control target
= control target key end

     0   :  { %v5266_v3 = vmov 0.0   ;;  %vm132_vm0 = vcmask 130048   ;;  %v3327_v49 = vmov 0   ;;  %vm2993_vm1 = vcmask 523264   ;;  %s5260_s4 = inlined_call_operand.vmem [shape: f32[1,16,3136], index: 4, kind: input, shape index: {}]   ;;  %s5261_s1 = inlined_call_operand.vmem [shape: f32[48,16], index: 1, kind: input, shape index: {}]   ;;  %s5262_s2 = inlined_call_operand.vmem [shape: f32[48,1], index: 2, kind: input, shape index: {}]   ;;  %s5263_s3 = inlined_call_operand.vmem [shape: f32[1,16,3136], index: 3, kind: input, shape index: {}]   ;;  %s5264_s0 = inlined_call_operand.vmem [shape: f32[48,16], index: 0, kind: input, shape index: {}]   ;;  %s5265_s5 = inlined_call_operand.vmem [shape: f32[1,48,3136], index: 5, kind: output, shape index: {}]  }
   0x1   :  { %v108_v0 = vld [vmem:[%s5260_s4 + $0xd0] sm:$0xff]  ;;  %v110_v1 = vld [vmem:[%s5260_s4 + $0xe0] sm:$0xff]  ;;  %v107_v2 = vld [vmem:[%s5260_s4 + $0xc8] sm:$0xff]  ;;  %215 = vmatprep.mubr.f32.mxu0 %v5266_v3  ;;  %316 = vmatprep.mubr.f32.mxu1 %v5266_v3 }
   0x2   :  { %179 = vmatprep.subr.mxu0 %v108_v0  ;;  %280 = vmatprep.subr.mxu1 %v110_v1  ;;  %v109_v4 = vld [vmem:[%s5260_s4 + $0xd8] sm:$0xff]  ;;  %v83_v5 = vld [vmem:[%s5260_s4 + $0x8] sm:$0xff]  ;;  %v82_v7 = vld [vmem:[%s5260_s4] sm:$0xff] }
   0x3   :  { %v85_v6 = vld [vmem:[%s5260_s4 + $0x18] sm:$0xff]  ;;  %180 = vmatpush1.msra.mxu0 %v107_v2  ;;  %281 = vmatpush1.msra.mxu1 %v109_v4  ;;  %v84_v8 = vld [vmem:[%s5260_s4 + $0x10] sm:$0xff]  ;;  %v3387_v9 = vld [vmem:[%s5261_s1] sm:$0xff] }
   0x4   :  { %181 = vmatprep.subr.mxu0 %v83_v5  ;;  %282 = vmatprep.subr.mxu1 %v85_v6  ;;  %v112_v10 = vld [vmem:[%s5260_s4 + $0xf0] sm:$0xff]  ;;  %v114_v11 = vld [vmem:[%s5260_s4 + $0x100] sm:$0xff]  ;;  %v111_v12 = vld [vmem:[%s5260_s4 + $0xe8] sm:$0xff] }
   0x5   :  { %182 = vmatpush1.msra.mxu0 %v82_v7  ;;  %283 = vmatpush1.msra.mxu1 %v84_v8  ;;  %v113_v13 = vld [vmem:[%s5260_s4 + $0xf8] sm:$0xff]  ;;  %v3408_v14 = vld [vmem:[%s5261_s1 + $0x8] sm:$0xff]  ;;  %v86_v17 = vld [vmem:[%s5260_s4 + $0x20] sm:$0xff] }
   0x6   :  { %3124 = vmatmul.mubr.msk.f32.vlgmr.msra.gmra.mxu0 %vm132_vm0, %v3387_v9  ;;  %3130 = vmatmul.mubr.msk.f32.vlgmr.msra.gmra.mxu1 %vm132_vm0, %v3387_v9  ;;  %v87_v15 = vld [vmem:[%s5260_s4 + $0x28] sm:$0xff]  ;;  %v89_v16 = vld [vmem:[%s5260_s4 + $0x38] sm:$0xff]  ;;  %v88_v18 = vld [vmem:[%s5260_s4 + $0x30] sm:$0xff] }
   0x7   :  { %381 = vmatprep.subr.mxu0 %v112_v10  ;;  %482 = vmatprep.subr.mxu1 %v114_v11  ;;  %v3433_v19 = vld [vmem:[%s5261_s1 + $0x10] sm:$0xff]  ;;  %v118_v21 = vld [vmem:[%s5260_s4 + $0x120] sm:$0xff]  ;;  %v3450_v22 = vld [vmem:[%s5261_s1 + $0x18] sm:$0xff] }
   0x8   :  { %382 = vmatpush1.msra.mxu0 %v111_v12  ;;  %483 = vmatpush1.msra.mxu1 %v113_v13  ;;  %v116_v20 = vld [vmem:[%s5260_s4 + $0x110] sm:$0xff]  ;;  %v3461_v23 = vld [vmem:[%s5261_s1 + $0x20] sm:$0xff]  ;;  %v3472_v24 = vld [vmem:[%s5261_s1 + $0x28] sm:$0xff] }
   0x9   :  { %221 = vmatprep.mubr.f32.mxu0 %v5266_v3  ;;  %322 = vmatprep.mubr.f32.mxu1 %v5266_v3  ;;  %v115_v25 = vld [vmem:[%s5260_s4 + $0x108] sm:$0xff]  ;;  %v117_v26 = vld [vmem:[%s5260_s4 + $0x118] sm:$0xff]  ;;  %v90_v29 = vld [vmem:[%s5260_s4 + $0x40] sm:$0xff] }
   0xa   :  { %3125 = vmatmul.mubr.msk.f32.gmra.mxu0 %vm132_vm0, %v3408_v14  ;;  %3131 = vmatmul.mubr.msk.f32.gmra.mxu1 %vm132_vm0, %v3408_v14  ;;  %v91_v27 = vld [vmem:[%s5260_s4 + $0x48] sm:$0xff]  ;;  %v93_v28 = vld [vmem:[%s5260_s4 + $0x58] sm:$0xff]  ;;  %v92_v30 = vld [vmem:[%s5260_s4 + $0x50] sm:$0xff] }
   0xb   :  { %227 = vmatprep.mubr.f32.mxu0 %v5266_v3  ;;  %328 = vmatprep.mubr.f32.mxu1 %v5266_v3  ;;  %v120_v31 = vld [vmem:[%s5260_s4 + $0x130] sm:$0xff]  ;;  %v122_v32 = vld [vmem:[%s5260_s4 + $0x140] sm:$0xff]  ;;  %v119_v33 = vld [vmem:[%s5260_s4 + $0x128] sm:$0xff] }
   0xc   :  { %383 = vmatprep.subr.mxu0 %v87_v15  ;;  %484 = vmatprep.subr.mxu1 %v89_v16  ;;  %v121_v34 = vld [vmem:[%s5260_s4 + $0x138] sm:$0xff]  ;;  %v95_v35 = vld [vmem:[%s5260_s4 + $0x68] sm:$0xff]  ;;  %v94_v37 = vld [vmem:[%s5260_s4 + $0x60] sm:$0xff] }
   0xd   :  { %384 = vmatpush1.msra.mxu0 %v86_v17  ;;  %485 = vmatpush1.msra.mxu1 %v88_v18  ;;  %v97_v36 = vld [vmem:[%s5260_s4 + $0x78] sm:$0xff]  ;;  %v96_v38 = vld [vmem:[%s5260_s4 + $0x70] sm:$0xff]  ;;  %v126_v40 = vld [vmem:[%s5260_s4 + $0x160] sm:$0xff] }
   0xe   :  { %3126 = vmatmul.mubr.msk.f32.gmra.mxu0 %vm132_vm0, %v3433_v19  ;;  %3132 = vmatmul.mubr.msk.f32.gmra.mxu1 %vm132_vm0, %v3433_v19  ;;  %v124_v39 = vld [vmem:[%s5260_s4 + $0x150] sm:$0xff]  ;;  %v123_v41 = vld [vmem:[%s5260_s4 + $0x148] sm:$0xff]  ;;  %v125_v42 = vld [vmem:[%s5260_s4 + $0x158] sm:$0xff] }
   0xf   :  { %233 = vmatprep.mubr.f32.mxu0 %v5266_v3  ;;  %334 = vmatprep.mubr.f32.mxu1 %v5266_v3  ;;  %v99_v43 = vld [vmem:[%s5260_s4 + $0x88] sm:$0xff]  ;;  %v101_v44 = vld [vmem:[%s5260_s4 + $0x98] sm:$0xff]  ;;  %v98_v45 = vld [vmem:[%s5260_s4 + $0x80] sm:$0xff] }
  0x10   :  { %583 = vmatprep.subr.mxu0 %v116_v20  ;;  %684 = vmatprep.subr.mxu1 %v118_v21  ;;  %v100_v46 = vld [vmem:[%s5260_s4 + $0x90] sm:$0xff]  ;;  %v130_v48 = vld [vmem:[%s5260_s4 + $0x180] sm:$0xff]  ;;  %v2784_v51 = vld [vmem:[%s5262_s2 + $0x8] sm:$0xff] }
  0x11   :  { %v128_v47 = vld [vmem:[%s5260_s4 + $0x170] sm:$0xff]  ;;  %3324 = vset.pattern.permute.xlu0 %v3327_v49  ;;  %v2783_v50 = vld [vmem:[%s5262_s2] sm:$0xff]  ;;  %3325 = vset.pattern.permute.xlu1 %v3327_v49  ;;  %v127_v52 = vld [vmem:[%s5260_s4 + $0x168] sm:$0xff] }
  0x12   :  { %3127 = vmatmul.mubr.msk.f32.gmra.mxu0 %vm132_vm0, %v3450_v22  ;;  %3133 = vmatmul.mubr.msk.f32.gmra.mxu1 %vm132_vm0, %v3450_v22  ;;  %v129_v53 = vld [vmem:[%s5260_s4 + $0x178] sm:$0xff]  ;;  %v2785_v54 = vld [vmem:[%s5262_s2 + $0x10] sm:$0xff]  ;;  %v103_v55 = vld [vmem:[%s5260_s4 + $0xa8] sm:$0xff] }
  0x13   :  { %239 = vmatprep.mubr.f32.mxu0 %v5266_v3  ;;  %340 = vmatprep.mubr.f32.mxu1 %v5266_v3  ;;  %v105_v56 = vld [vmem:[%s5260_s4 + $0xb8] sm:$0xff]  ;;  %v102_v57 = vld [vmem:[%s5260_s4 + $0xa0] sm:$0xff]  ;;  %v104_v58 = vld [vmem:[%s5260_s4 + $0xb0] sm:$0xff] }
  0x14   :  { %2791 = vperm.xlu0 %3324, %v2783_v50   ;;  %2801 = vperm.xlu1 %3325, %v2785_v54   ;;  %v131_v59 = vld [vmem:[%s5260_s4 + $0x188] sm:$0xff]  ;;  %v52_v60 = vld [vmem:[%s5263_s3 + $0xd0] sm:$0xff]  ;;  %v2786_v61 = vld [vmem:[%s5262_s2 + $0x18] sm:$0xff] }
  0x15   :  { %v2787_v62 = vld [vmem:[%s5262_s2 + $0x20] sm:$0xff]  ;;  %v2788_v63 = vld [vmem:[%s5262_s2 + $0x28] sm:$0xff]  ;;  %v56_v6 = vld [vmem:[%s5263_s3 + $0xf0] sm:$0xff] }
  0x16   :  { %3128 = vmatmul.mubr.msk.f32.gmra.mxu0 %vm132_vm0, %v3461_v23  ;;  %3134 = vmatmul.mubr.msk.f32.gmra.mxu1 %vm132_vm0, %v3461_v23  ;;  %v51_v0 = vld [vmem:[%s5263_s3 + $0xc8] sm:$0xff]  ;;  %v106_v1 = vld [vmem:[%s5260_s4 + $0xc0] sm:$0xff]  ;;  %v53_v8 = vld [vmem:[%s5263_s3 + $0xd8] sm:$0xff] }
  0x17   :  { %245 = vmatprep.mubr.f32.mxu0 %v5266_v3  ;;  %346 = vmatprep.mubr.f32.mxu1 %v5266_v3  ;;  %v27_v2 = vld [vmem:[%s5263_s3 + $0x8] sm:$0xff]  ;;  %v26_v4 = vld [vmem:[%s5263_s3] sm:$0xff]  ;;  %v28_v13 = vld [vmem:[%s5263_s3 + $0x10] sm:$0xff] }
  0x18   :  { %2796 = vperm.xlu0 %3324, %v2784_v51   ;;  %2806 = vperm.xlu1 %3325, %v2786_v61   ;;  %v54_v5 = vld [vmem:[%s5263_s3 + $0xe0] sm:$0xff]  ;;  %v55_v10 = vld [vmem:[%s5263_s3 + $0xe8] sm:$0xff]  ;;  %v60_v16 = vld [vmem:[%s5263_s3 + $0x110] sm:$0xff] }
  0x19   :  { %v3796_v7 = vld [vmem:[%s5264_s0] sm:$0xff]  ;;  %v31_v11 = vld [vmem:[%s5263_s3 + $0x28] sm:$0xff]  ;;  %v3844_v17 = vld [vmem:[%s5264_s0 + $0x10] sm:$0xff] }
  0x1a   :  { %3129 = vmatmul.mubr.msk.f32.gmra.mxu0 %vm132_vm0, %v3472_v24  ;;  %3135 = vmatmul.mubr.msk.f32.gmra.mxu1 %vm132_vm0, %v3472_v24  ;;  %v3817_v12 = vld [vmem:[%s5264_s0 + $0x8] sm:$0xff]  ;;  %v58_v15 = vld [vmem:[%s5263_s3 + $0x100] sm:$0xff]  ;;  %v3855_v18 = vld [vmem:[%s5264_s0 + $0x18] sm:$0xff] }
  0x1b   :  { %417 = vmatprep.mubr.f32.mxu0 %v5266_v3  ;;  %518 = vmatprep.mubr.f32.mxu1 %v5266_v3  ;;  %v33_v20 = vld [vmem:[%s5263_s3 + $0x38] sm:$0xff]  ;;  %v32_v21 = vld [vmem:[%s5263_s3 + $0x30] sm:$0xff] }
  0x1c   :  { %2811 = vperm.xlu0 %3324, %v2787_v62   ;;  %2816 = vperm.xlu1 %3325, %v2788_v63   ;;  %v65_v49 = vld [vmem:[%s5263_s3 + $0x138] sm:$0xff] }
  0x1d   :  { %v41_v50 = vld [vmem:[%s5263_s3 + $0x78] sm:$0xff] }
  0x1e   :  { %3136 = vmatmul.mubr.msk.f32.vlgmr.msra.gmra.mxu0 %vm132_vm0, %v3387_v9  ;;  %3142 = vmatmul.mubr.msk.f32.vlgmr.msra.gmra.mxu1 %vm132_vm0, %v3387_v9 }
  0x1f   :  { %584 = vmatpush1.msra.mxu0 %v115_v25  ;;  %685 = vmatpush1.msra.mxu1 %v117_v26  ;;  %v59_v25 = vld [vmem:[%s5263_s3 + $0x108] sm:$0xff] }
  0x20   :  { %423 = vmatprep.mubr.f32.mxu0 %v5266_v3  ;;  %524 = vmatprep.mubr.f32.mxu1 %v5266_v3  ;;  %v35_v26 = vld [vmem:[%s5263_s3 + $0x48] sm:$0xff] }
  0x21   :  { %585 = vmatprep.subr.mxu0 %v91_v27  ;;  %686 = vmatprep.subr.mxu1 %v93_v28  ;;  %v34_v27 = vld [vmem:[%s5263_s3 + $0x40] sm:$0xff]  ;;  %v64_v28 = vld [vmem:[%s5263_s3 + $0x130] sm:$0xff] }
  0x22   :  { %3137 = vmatmul.mubr.msk.f32.gmra.mxu0 %vm132_vm0, %v3408_v14  ;;  %3143 = vmatmul.mubr.msk.f32.gmra.mxu1 %vm132_vm0, %v3408_v14 }
  0x23   :  { %429 = vmatprep.mubr.f32.mxu0 %v5266_v3  ;;  %530 = vmatprep.mubr.f32.mxu1 %v5266_v3 }
  0x24   :  { %586 = vmatpush1.msra.mxu0 %v90_v29  ;;  %687 = vmatpush1.msra.mxu1 %v92_v30  ;;  %v61_v29 = vld [vmem:[%s5263_s3 + $0x118] sm:$0xff] }
  0x25   :  { %785 = vmatprep.subr.mxu0 %v120_v31  ;;  %886 = vmatprep.subr.mxu1 %v122_v32  ;;  %v37_v30 = vld [vmem:[%s5263_s3 + $0x58] sm:$0xff]  ;;  %v36_v31 = vld [vmem:[%s5263_s3 + $0x50] sm:$0xff]  ;;  %v66_v32 = vld [vmem:[%s5263_s3 + $0x140] sm:$0xff] }
  0x26   :  { %3138 = vmatmul.mubr.msk.f32.gmra.mxu0 %vm132_vm0, %v3433_v19  ;;  %3144 = vmatmul.mubr.msk.f32.gmra.mxu1 %vm132_vm0, %v3433_v19 }
  0x27   :  { %435 = vmatprep.mubr.f32.mxu0 %v5266_v3  ;;  %536 = vmatprep.mubr.f32.mxu1 %v5266_v3 }
  0x2a   :  { %3139 = vmatmul.mubr.msk.f32.gmra.mxu0 %vm132_vm0, %v3450_v22  ;;  %3145 = vmatmul.mubr.msk.f32.gmra.mxu1 %vm132_vm0, %v3450_v22 }
  0x2b   :  { %441 = vmatprep.mubr.f32.mxu0 %v5266_v3  ;;  %542 = vmatprep.mubr.f32.mxu1 %v5266_v3 }
  0x2e   :  { %3140 = vmatmul.mubr.msk.f32.gmra.mxu0 %vm132_vm0, %v3461_v23  ;;  %3146 = vmatmul.mubr.msk.f32.gmra.mxu1 %vm132_vm0, %v3461_v23 }
  0x2f   :  { %447 = vmatprep.mubr.f32.mxu0 %v5266_v3  ;;  %548 = vmatprep.mubr.f32.mxu1 %v5266_v3 }
  0x32   :  { %3141 = vmatmul.mubr.msk.f32.gmra.mxu0 %vm132_vm0, %v3472_v24  ;;  %3147 = vmatmul.mubr.msk.f32.gmra.mxu1 %vm132_vm0, %v3472_v24 }
  0x33   :  { %619 = vmatprep.mubr.f32.mxu0 %v5266_v3  ;;  %720 = vmatprep.mubr.f32.mxu1 %v5266_v3 }
  0x36   :  { %3148 = vmatmul.mubr.msk.f32.vlgmr.msra.gmra.mxu0 %vm132_vm0, %v3387_v9  ;;  %3154 = vmatmul.mubr.msk.f32.vlgmr.msra.gmra.mxu1 %vm132_vm0, %v3387_v9 }
  0x37   :  { %786 = vmatpush1.msra.mxu0 %v119_v33  ;;  %887 = vmatpush1.msra.mxu1 %v121_v34  ;;  %v63_v33 = vld [vmem:[%s5263_s3 + $0x128] sm:$0xff] }
  0x38   :  { %625 = vmatprep.mubr.f32.mxu0 %v5266_v3  ;;  %726 = vmatprep.mubr.f32.mxu1 %v5266_v3  ;;  %v39_v34 = vld [vmem:[%s5263_s3 + $0x68] sm:$0xff] }
  0x39   :  { %787 = vmatprep.subr.mxu0 %v95_v35  ;;  %888 = vmatprep.subr.mxu1 %v97_v36 }
  0x3a   :  { %3149 = vmatmul.mubr.msk.f32.gmra.mxu0 %vm132_vm0, %v3408_v14  ;;  %3155 = vmatmul.mubr.msk.f32.gmra.mxu1 %vm132_vm0, %v3408_v14 }
  0x3b   :  { %631 = vmatprep.mubr.f32.mxu0 %v5266_v3  ;;  %732 = vmatprep.mubr.f32.mxu1 %v5266_v3 }
  0x3c   :  { %788 = vmatpush1.msra.mxu0 %v94_v37  ;;  %889 = vmatpush1.msra.mxu1 %v96_v38  ;;  %v38_v37 = vld [vmem:[%s5263_s3 + $0x60] sm:$0xff] }
  0x3d   :  { %987 = vmatprep.subr.mxu0 %v124_v39  ;;  %1088 = vmatprep.subr.mxu1 %v126_v40  ;;  %v68_v40 = vld [vmem:[%s5263_s3 + $0x150] sm:$0xff] }
  0x3e   :  { %3150 = vmatmul.mubr.msk.f32.gmra.mxu0 %vm132_vm0, %v3433_v19  ;;  %3156 = vmatmul.mubr.msk.f32.gmra.mxu1 %vm132_vm0, %v3433_v19 }
  0x3f   :  { %637 = vmatprep.mubr.f32.mxu0 %v5266_v3  ;;  %738 = vmatprep.mubr.f32.mxu1 %v5266_v3 }
  0x42   :  { %3151 = vmatmul.mubr.msk.f32.gmra.mxu0 %vm132_vm0, %v3450_v22  ;;  %3157 = vmatmul.mubr.msk.f32.gmra.mxu1 %vm132_vm0, %v3450_v22 }
  0x43   :  { %643 = vmatprep.mubr.f32.mxu0 %v5266_v3  ;;  %744 = vmatprep.mubr.f32.mxu1 %v5266_v3 }
  0x46   :  { %3152 = vmatmul.mubr.msk.f32.gmra.mxu0 %vm132_vm0, %v3461_v23  ;;  %3158 = vmatmul.mubr.msk.f32.gmra.mxu1 %vm132_vm0, %v3461_v23 }
  0x47   :  { %649 = vmatprep.mubr.f32.mxu0 %v5266_v3  ;;  %750 = vmatprep.mubr.f32.mxu1 %v5266_v3 }
  0x4a   :  { %3153 = vmatmul.mubr.msk.f32.gmra.mxu0 %vm132_vm0, %v3472_v24  ;;  %3159 = vmatmul.mubr.msk.f32.gmra.mxu1 %vm132_vm0, %v3472_v24 }
  0x4b   :  { %821 = vmatprep.mubr.f32.mxu0 %v5266_v3  ;;  %922 = vmatprep.mubr.f32.mxu1 %v5266_v3 }
  0x4e   :  { %3160 = vmatmul.mubr.msk.f32.vlgmr.msra.gmra.mxu0 %vm132_vm0, %v3387_v9  ;;  %3166 = vmatmul.mubr.msk.f32.vlgmr.msra.gmra.mxu1 %vm132_vm0, %v3387_v9 }
  0x4f   :  { %988 = vmatpush1.msra.mxu0 %v123_v41  ;;  %1089 = vmatpush1.msra.mxu1 %v125_v42 }
  0x50   :  { %827 = vmatprep.mubr.f32.mxu0 %v5266_v3  ;;  %928 = vmatprep.mubr.f32.mxu1 %v5266_v3 }
  0x51   :  { %989 = vmatprep.subr.mxu0 %v99_v43  ;;  %1090 = vmatprep.subr.mxu1 %v101_v44 }
  0x52   :  { %3161 = vmatmul.mubr.msk.f32.gmra.mxu0 %vm132_vm0, %v3408_v14  ;;  %3167 = vmatmul.mubr.msk.f32.gmra.mxu1 %vm132_vm0, %v3408_v14 }
  0x53   :  { %833 = vmatprep.mubr.f32.mxu0 %v5266_v3  ;;  %934 = vmatprep.mubr.f32.mxu1 %v5266_v3 }
  0x54   :  { %990 = vmatpush1.msra.mxu0 %v98_v45  ;;  %1091 = vmatpush1.msra.mxu1 %v100_v46 }
  0x55   :  { %1189 = vmatprep.subr.mxu0 %v128_v47  ;;  %1290 = vmatprep.subr.mxu1 %v130_v48 }
  0x56   :  { %3162 = vmatmul.mubr.msk.f32.gmra.mxu0 %vm132_vm0, %v3433_v19  ;;  %3168 = vmatmul.mubr.msk.f32.gmra.mxu1 %vm132_vm0, %v3433_v19 }
  0x57   :  { %839 = vmatprep.mubr.f32.mxu0 %v5266_v3  ;;  %940 = vmatprep.mubr.f32.mxu1 %v5266_v3 }
  0x5a   :  { %3163 = vmatmul.mubr.msk.f32.gmra.mxu0 %vm132_vm0, %v3450_v22  ;;  %3169 = vmatmul.mubr.msk.f32.gmra.mxu1 %vm132_vm0, %v3450_v22 }
  0x5b   :  { %845 = vmatprep.mubr.f32.mxu0 %v5266_v3  ;;  %946 = vmatprep.mubr.f32.mxu1 %v5266_v3 }
  0x5e   :  { %3164 = vmatmul.mubr.msk.f32.gmra.mxu0 %vm132_vm0, %v3461_v23  ;;  %3170 = vmatmul.mubr.msk.f32.gmra.mxu1 %vm132_vm0, %v3461_v23 }
  0x5f   :  { %851 = vmatprep.mubr.f32.mxu0 %v5266_v3  ;;  %952 = vmatprep.mubr.f32.mxu1 %v5266_v3 }
  0x62   :  { %3165 = vmatmul.mubr.msk.f32.gmra.mxu0 %vm132_vm0, %v3472_v24  ;;  %3171 = vmatmul.mubr.msk.f32.gmra.mxu1 %vm132_vm0, %v3472_v24 }
  0x63   :  { %1023 = vmatprep.mubr.f32.mxu0 %v5266_v3  ;;  %1124 = vmatprep.mubr.f32.mxu1 %v5266_v3 }
  0x66   :  { %3172 = vmatmul.mubr.msk.f32.vlgmr.msra.gmra.mxu0 %vm132_vm0, %v3387_v9  ;;  %3178 = vmatmul.mubr.msk.f32.vlgmr.msra.gmra.mxu1 %vm132_vm0, %v3387_v9 }
  0x67   :  { %1190 = vmatpush1.msra.mxu0 %v127_v52  ;;  %1291 = vmatpush1.msra.mxu1 %v129_v53  ;;  %v40_v53 = vld [vmem:[%s5263_s3 + $0x70] sm:$0xff] }
  0x68   :  { %1029 = vmatprep.mubr.f32.mxu0 %v5266_v3  ;;  %1130 = vmatprep.mubr.f32.mxu1 %v5266_v3 }
  0x69   :  { %1191 = vmatprep.subr.mxu0 %v103_v55  ;;  %1292 = vmatprep.subr.mxu1 %v105_v56  ;;  %v70_v56 = vld [vmem:[%s5263_s3 + $0x160] sm:$0xff] }
  0x6a   :  { %3173 = vmatmul.mubr.msk.f32.gmra.mxu0 %vm132_vm0, %v3408_v14  ;;  %3179 = vmatmul.mubr.msk.f32.gmra.mxu1 %vm132_vm0, %v3408_v14 }
  0x6b   :  { %1035 = vmatprep.mubr.f32.mxu0 %v5266_v3  ;;  %1136 = vmatprep.mubr.f32.mxu1 %v5266_v3 }
  0x6c   :  { %1192 = vmatpush1.msra.mxu0 %v102_v57  ;;  %1293 = vmatpush1.msra.mxu1 %v104_v58 }
  0x6d   :  { %3296 = vmatprep.subr.mxu0 %v131_v59  ;;  %1504 = vmatprep.subr.mxu1 %v52_v60 }
  0x6e   :  { %3174 = vmatmul.mubr.msk.f32.gmra.mxu0 %vm132_vm0, %v3433_v19  ;;  %3180 = vmatmul.mubr.msk.f32.gmra.mxu1 %vm132_vm0, %v3433_v19 }
  0x6f   :  { %1041 = vmatprep.mubr.f32.mxu0 %v5266_v3  ;;  %1142 = vmatprep.mubr.f32.mxu1 %v5266_v3 }
  0x72   :  { %3175 = vmatmul.mubr.msk.f32.gmra.mxu0 %vm132_vm0, %v3450_v22  ;;  %3181 = vmatmul.mubr.msk.f32.gmra.mxu1 %vm132_vm0, %v3450_v22 }
  0x73   :  { %1047 = vmatprep.mubr.f32.mxu0 %v5266_v3  ;;  %1148 = vmatprep.mubr.f32.mxu1 %v5266_v3 }
  0x76   :  { %3176 = vmatmul.mubr.msk.f32.gmra.mxu0 %vm132_vm0, %v3461_v23  ;;  %3182 = vmatmul.mubr.msk.f32.gmra.mxu1 %vm132_vm0, %v3461_v23 }
  0x77   :  { %1053 = vmatprep.mubr.f32.mxu0 %v5266_v3  ;;  %1154 = vmatprep.mubr.f32.mxu1 %v5266_v3 }
  0x7a   :  { %3177 = vmatmul.mubr.msk.f32.gmra.mxu0 %vm132_vm0, %v3472_v24  ;;  %3183 = vmatmul.mubr.msk.f32.gmra.mxu1 %vm132_vm0, %v3472_v24 }
  0x7b   :  { %1225 = vmatprep.mubr.f32.mxu0 %v5266_v3  ;;  %1326 = vmatprep.mubr.f32.mxu1 %v5266_v3 }
  0x7e   :  { %3184 = vmatmul.mubr.msk.f32.vlgmr.msra.gmra.mxu0 %vm132_vm0, %v3387_v9  ;;  %3190 = vmatmul.mubr.msk.f32.vlgmr.msra.gmra.mxu1 %vm132_vm0, %v3387_v9 }
  0x7f   :  { %3297 = vmatpush3.msra.mxu0 %v131_v59  ;;  %1505 = vmatpush1.msra.mxu1 %v51_v0 }
  0x80   :  { %1231 = vmatprep.mubr.f32.mxu0 %v5266_v3  ;;  %1332 = vmatprep.mubr.f32.mxu1 %v5266_v3 }
  0x81   :  { %3298 = vmatprep.subr.mxu0 %v106_v1  ;;  %1506 = vmatprep.subr.mxu1 %v27_v2  ;;  %v43_v2 = vld [vmem:[%s5263_s3 + $0x88] sm:$0xff] }
  0x82   :  { %3185 = vmatmul.mubr.msk.f32.gmra.mxu0 %vm132_vm0, %v3408_v14  ;;  %3191 = vmatmul.mubr.msk.f32.gmra.mxu1 %vm132_vm0, %v3408_v14 }
  0x83   :  { %1237 = vmatprep.mubr.f32.mxu0 %v5266_v3  ;;  %1338 = vmatprep.mubr.f32.mxu1 %v5266_v3 }
  0x84   :  { %3299 = vmatpush3.msra.mxu0 %v106_v1  ;;  %1507 = vmatpush1.msra.mxu1 %v26_v4  ;;  %v67_v1 = vld [vmem:[%s5263_s3 + $0x148] sm:$0xff] }
  0x85   :  { %1605 = vmatprep.subr.mxu0 %v54_v5  ;;  %1706 = vmatprep.subr.mxu1 %v56_v6  ;;  %v42_v6 = vld [vmem:[%s5263_s3 + $0x80] sm:$0xff] }
  0x86   :  { %3186 = vmatmul.mubr.msk.f32.gmra.mxu0 %vm132_vm0, %v3433_v19  ;;  %3192 = vmatmul.mubr.msk.f32.gmra.mxu1 %vm132_vm0, %v3433_v19 }
  0x87   :  { %1243 = vmatprep.mubr.f32.mxu0 %v5266_v3  ;;  %1344 = vmatprep.mubr.f32.mxu1 %v5266_v3 }
  0x8a   :  { %3187 = vmatmul.mubr.msk.f32.gmra.mxu0 %vm132_vm0, %v3450_v22  ;;  %3193 = vmatmul.mubr.msk.f32.gmra.mxu1 %vm132_vm0, %v3450_v22 }
  0x8b   :  { %1249 = vmatprep.mubr.f32.mxu0 %v5266_v3  ;;  %1350 = vmatprep.mubr.f32.mxu1 %v5266_v3 }
  0x8e   :  { %3188 = vmatmul.mubr.msk.f32.gmra.mxu0 %vm132_vm0, %v3461_v23  ;;  %3194 = vmatmul.mubr.msk.f32.gmra.mxu1 %vm132_vm0, %v3461_v23 }
  0x8f   :  { %1255 = vmatprep.mubr.f32.mxu0 %v5266_v3  ;;  %1356 = vmatprep.mubr.f32.mxu1 %v5266_v3 }
  0x92   :  { %3189 = vmatmul.mubr.msk.f32.gmra.mxu0 %vm132_vm0, %v3472_v24  ;;  %3195 = vmatmul.mubr.msk.f32.gmra.mxu1 %vm132_vm0, %v3472_v24 }
  0x93   :  { %3300 = vmatprep.mubr.msk.f32.mxu0 %vm132_vm0, %v3387_v9  ;;  %1540 = vmatprep.mubr.f32.mxu1 %v5266_v3  ;;  %v29_v9 = vld [vmem:[%s5263_s3 + $0x18] sm:$0xff] }
  0x96   :  { %3301 = vmatmul.mubr.msk.f32.vlgmr.msra.gmra.mxu0 %vm132_vm0, %v3408_v14  ;;  %3202 = vmatmul.mubr.msk.f32.vlgmr.msra.gmra.mxu1 %vm132_vm0, %v3796_v7  ;;  %v30_v14 = vld [vmem:[%s5263_s3 + $0x20] sm:$0xff] }
  0x97   :  { %1606 = vmatpush1.msra.mxu0 %v53_v8  ;;  %1707 = vmatpush1.msra.mxu1 %v55_v10 }
  0x98   :  { %3303 = vmatprep.mubr.msk.f32.mxu0 %vm132_vm0, %v3433_v19  ;;  %1546 = vmatprep.mubr.f32.mxu1 %v5266_v3  ;;  %v57_v19 = vld [vmem:[%s5263_s3 + $0xf8] sm:$0xff] }
  0x99   :  { %1607 = vmatprep.subr.mxu0 %v29_v9  ;;  %1708 = vmatprep.subr.mxu1 %v31_v11  ;;  %v72_v9 = vld [vmem:[%s5263_s3 + $0x170] sm:$0xff] }
  0x9a   :  { %3304 = vmatmul.mubr.msk.f32.gmra.mxu0 %vm132_vm0, %v3450_v22  ;;  %3203 = vmatmul.mubr.msk.f32.gmra.mxu1 %vm132_vm0, %v3817_v12  ;;  %v3874_v22 = vld [vmem:[%s5264_s0 + $0x20] sm:$0xff] }
  0x9b   :  { %3306 = vmatprep.mubr.msk.f32.mxu0 %vm132_vm0, %v3461_v23  ;;  %1552 = vmatprep.mubr.f32.mxu1 %v5266_v3  ;;  %v62_v23 = vld [vmem:[%s5263_s3 + $0x120] sm:$0xff] }
  0x9c   :  { %1608 = vmatpush1.msra.mxu0 %v28_v13  ;;  %1709 = vmatpush1.msra.mxu1 %v30_v14 }
  0x9d   :  { %1807 = vmatprep.subr.mxu0 %v58_v15  ;;  %1908 = vmatprep.subr.mxu1 %v60_v16 }
  0x9e   :  { %3307 = vmatmul.mubr.msk.f32.gmra.mxu0 %vm132_vm0, %v3472_v24  ;;  %3204 = vmatmul.mubr.msk.f32.gmra.mxu1 %vm132_vm0, %v3844_v17  ;;  %v3889_v24 = vld [vmem:[%s5264_s0 + $0x28] sm:$0xff] }
  0x9f   :  { %1558 = vmatprep.mubr.f32.mxu1 %v5266_v3  ;;  %1641 = vmatprep.mubr.f32.mxu0 %v5266_v3 }
  0xa2   :  { %3205 = vmatmul.mubr.msk.f32.gmra.mxu1 %vm132_vm0, %v3855_v18  ;;  %3208 = vmatmul.mubr.msk.f32.vlgmr.msra.gmra.mxu0 %vm132_vm0, %v3796_v7 }
  0xa3   :  { %1808 = vmatpush1.msra.mxu0 %v57_v19  ;;  %1564 = vmatprep.mubr.f32.mxu1 %v5266_v3 }
  0xa4   :  { %1647 = vmatprep.mubr.f32.mxu0 %v5266_v3  ;;  %1809 = vmatprep.subr.mxu0 %v33_v20 }
  0xa5   :  { %1810 = vmatpush1.msra.mxu0 %v32_v21 }
  0xa6   :  { %3206 = vmatmul.mubr.msk.f32.gmra.mxu1 %vm132_vm0, %v3874_v22  ;;  %3209 = vmatmul.mubr.msk.f32.gmra.mxu0 %vm132_vm0, %v3817_v12 }
  0xa7   :  { %1570 = vmatprep.mubr.f32.mxu1 %v5266_v3  ;;  %1653 = vmatprep.mubr.f32.mxu0 %v5266_v3 }
  0xa8   :  { %2009 = vmatprep.subr.mxu0 %v62_v23  ;;  %v69_v23 = vld [vmem:[%s5263_s3 + $0x158] sm:$0xff] }
  0xaa   :  { %3207 = vmatmul.mubr.msk.f32.gmra.mxu1 %vm132_vm0, %v3889_v24  ;;  %3210 = vmatmul.mubr.msk.f32.gmra.mxu0 %vm132_vm0, %v3844_v17 }
  0xab   :  { %1659 = vmatprep.mubr.f32.mxu0 %v5266_v3  ;;  %1742 = vmatprep.mubr.f32.mxu1 %v5266_v3 }
  0xae   :  { %3211 = vmatmul.mubr.msk.f32.gmra.mxu0 %vm132_vm0, %v3855_v18  ;;  %3214 = vmatmul.mubr.msk.f32.vlgmr.msra.gmra.mxu1 %vm132_vm0, %v3796_v7 }
  0xaf   :  { %1909 = vmatpush1.msra.mxu1 %v59_v25  ;;  %1665 = vmatprep.mubr.f32.mxu0 %v5266_v3  ;;  %v45_v25 = vld [vmem:[%s5263_s3 + $0x98] sm:$0xff] }
  0xb0   :  { %1748 = vmatprep.mubr.f32.mxu1 %v5266_v3  ;;  %1910 = vmatprep.subr.mxu1 %v35_v26 }
  0xb1   :  { %1911 = vmatpush1.msra.mxu1 %v34_v27 }
  0xb2   :  { %3212 = vmatmul.mubr.msk.f32.gmra.mxu0 %vm132_vm0, %v3874_v22  ;;  %3215 = vmatmul.mubr.msk.f32.gmra.mxu1 %vm132_vm0, %v3817_v12 }
  0xb3   :  { %1671 = vmatprep.mubr.f32.mxu0 %v5266_v3  ;;  %1754 = vmatprep.mubr.f32.mxu1 %v5266_v3 }
  0xb4   :  { %2110 = vmatprep.subr.mxu1 %v64_v28  ;;  %v44_v28 = vld [vmem:[%s5263_s3 + $0x90] sm:$0xff] }
  0xb6   :  { %3213 = vmatmul.mubr.msk.f32.gmra.mxu0 %vm132_vm0, %v3889_v24  ;;  %3216 = vmatmul.mubr.msk.f32.gmra.mxu1 %vm132_vm0, %v3844_v17 }
  0xb7   :  { %1760 = vmatprep.mubr.f32.mxu1 %v5266_v3  ;;  %1843 = vmatprep.mubr.f32.mxu0 %v5266_v3 }
  0xba   :  { %3217 = vmatmul.mubr.msk.f32.gmra.mxu1 %vm132_vm0, %v3855_v18  ;;  %3220 = vmatmul.mubr.msk.f32.vlgmr.msra.gmra.mxu0 %vm132_vm0, %v3796_v7 }
  0xbb   :  { %2010 = vmatpush1.msra.mxu0 %v61_v29  ;;  %1766 = vmatprep.mubr.f32.mxu1 %v5266_v3 }
  0xbc   :  { %1849 = vmatprep.mubr.f32.mxu0 %v5266_v3  ;;  %2011 = vmatprep.subr.mxu0 %v37_v30 }
  0xbd   :  { %2012 = vmatpush1.msra.mxu0 %v36_v31  ;;  %v74_v31 = vld [vmem:[%s5263_s3 + $0x180] sm:$0xff] }
  0xbe   :  { %3218 = vmatmul.mubr.msk.f32.gmra.mxu1 %vm132_vm0, %v3874_v22  ;;  %3221 = vmatmul.mubr.msk.f32.gmra.mxu0 %vm132_vm0, %v3817_v12 }
  0xbf   :  { %1772 = vmatprep.mubr.f32.mxu1 %v5266_v3  ;;  %1855 = vmatprep.mubr.f32.mxu0 %v5266_v3 }
  0xc0   :  { %2211 = vmatprep.subr.mxu0 %v66_v32 }
  0xc2   :  { %3219 = vmatmul.mubr.msk.f32.gmra.mxu1 %vm132_vm0, %v3889_v24  ;;  %3222 = vmatmul.mubr.msk.f32.gmra.mxu0 %vm132_vm0, %v3844_v17 }
  0xc3   :  { %1861 = vmatprep.mubr.f32.mxu0 %v5266_v3  ;;  %1944 = vmatprep.mubr.f32.mxu1 %v5266_v3 }
  0xc6   :  { %v3963_v35 = vpop.f32.mrf.mxu0  ;;  %v3965_v36 = vpop.f32.mrf.mxu1  ;;  %3223 = vmatmul.mubr.msk.f32.gmra.mxu0 %vm132_vm0, %v3855_v18  ;;  %3226 = vmatmul.mubr.msk.f32.vlgmr.msra.gmra.mxu1 %vm132_vm0, %v3796_v7 }
  0xc7   :  { %2111 = vmatpush1.msra.mxu1 %v63_v33  ;;  %1867 = vmatprep.mubr.f32.mxu0 %v5266_v3 }
  0xc8   :  { %v3975_v38 = vpop.f32.mrf.mxu0  ;;  %v3977_v39 = vpop.f32.mrf.mxu1  ;;  %1950 = vmatprep.mubr.f32.mxu1 %v5266_v3  ;;  %2112 = vmatprep.subr.mxu1 %v39_v34 }
  0xc9   :  { %2113 = vmatpush1.msra.mxu1 %v38_v37 }
  0xca   :  { %v3983_v41 = vpop.f32.mrf.mxu0  ;;  %v3985_v42 = vpop.f32.mrf.mxu1  ;;  %3224 = vmatmul.mubr.msk.f32.gmra.mxu0 %vm132_vm0, %v3874_v22  ;;  %3227 = vmatmul.mubr.msk.f32.gmra.mxu1 %vm132_vm0, %v3817_v12 }
  0xcb   :  { %1873 = vmatprep.mubr.f32.mxu0 %v5266_v3  ;;  %1956 = vmatprep.mubr.f32.mxu1 %v5266_v3 }
  0xcc   :  { %v3993_v43 = vpop.f32.mrf.mxu0  ;;  %v3995_v44 = vpop.f32.mrf.mxu1  ;;  %2312 = vmatprep.subr.mxu1 %v68_v40 }
  0xce   :  { %v3997_v45 = vpop.f32.mrf.mxu0  ;;  %v3999_v46 = vpop.f32.mrf.mxu1  ;;  %3225 = vmatmul.mubr.msk.f32.gmra.mxu0 %vm132_vm0, %v3889_v24  ;;  %3228 = vmatmul.mubr.msk.f32.gmra.mxu1 %vm132_vm0, %v3844_v17 }
  0xcf   :  { %1962 = vmatprep.mubr.f32.mxu1 %v5266_v3  ;;  %2045 = vmatprep.mubr.f32.mxu0 %v5266_v3 }
  0xd0   :  { %v4007_v47 = vpop.f32.mrf.mxu0  ;;  %v4009_v48 = vpop.f32.mrf.mxu1 }
  0xd2   :  { %v4017_v51 = vpop.f32.mrf.mxu0  ;;  %v4019_v52 = vpop.f32.mrf.mxu1  ;;  %3229 = vmatmul.mubr.msk.f32.gmra.mxu1 %vm132_vm0, %v3855_v18  ;;  %3232 = vmatmul.mubr.msk.f32.vlgmr.msra.gmra.mxu0 %vm132_vm0, %v3796_v7 }
  0xd3   :  { %2212 = vmatpush1.msra.mxu0 %v65_v49  ;;  %1968 = vmatprep.mubr.f32.mxu1 %v5266_v3 }
  0xd4   :  { %v4029_v54 = vpop.f32.mrf.mxu0  ;;  %v4031_v55 = vpop.f32.mrf.mxu1  ;;  %2051 = vmatprep.mubr.f32.mxu0 %v5266_v3  ;;  %2213 = vmatprep.subr.mxu0 %v41_v50 }
  0xd5   :  { %2214 = vmatpush1.msra.mxu0 %v40_v53 }
  0xd6   :  { %v4037_v57 = vpop.f32.mrf.mxu0  ;;  %v4039_v58 = vpop.f32.mrf.mxu1  ;;  %3230 = vmatmul.mubr.msk.f32.gmra.mxu1 %vm132_vm0, %v3874_v22  ;;  %3233 = vmatmul.mubr.msk.f32.gmra.mxu0 %vm132_vm0, %v3817_v12 }
  0xd7   :  { %1974 = vmatprep.mubr.f32.mxu1 %v5266_v3  ;;  %2057 = vmatprep.mubr.f32.mxu0 %v5266_v3 }
  0xd8   :  { %v4047_v59 = vpop.f32.mrf.mxu0  ;;  %v4049_v60 = vpop.f32.mrf.mxu1  ;;  %2413 = vmatprep.subr.mxu0 %v70_v56  ;;  %v71_v56 = vld [vmem:[%s5263_s3 + $0x168] sm:$0xff] }
  0xda   :  { %v4051_v61 = vpop.f32.mrf.mxu0  ;;  %v4053_v62 = vpop.f32.mrf.mxu1  ;;  %3231 = vmatmul.mubr.msk.f32.gmra.mxu1 %vm132_vm0, %v3889_v24  ;;  %3234 = vmatmul.mubr.msk.f32.gmra.mxu0 %vm132_vm0, %v3844_v17 }
  0xdb   :  { %2063 = vmatprep.mubr.f32.mxu0 %v5266_v3  ;;  %2146 = vmatprep.mubr.f32.mxu1 %v5266_v3 }
  0xdc   :  { %v4061_v63 = vpop.f32.mrf.mxu0  ;;  %v4063_v0 = vpop.f32.mrf.mxu1 }
  0xde   :  { %v4071_v4 = vpop.f32.mrf.mxu0  ;;  %v4073_v5 = vpop.f32.mrf.mxu1  ;;  %3235 = vmatmul.mubr.msk.f32.gmra.mxu0 %vm132_vm0, %v3855_v18  ;;  %3238 = vmatmul.mubr.msk.f32.vlgmr.msra.gmra.mxu1 %vm132_vm0, %v3796_v7 }
  0xdf   :  { %2313 = vmatpush1.msra.mxu1 %v67_v1  ;;  %2069 = vmatprep.mubr.f32.mxu0 %v5266_v3  ;;  %v47_v1 = vld [vmem:[%s5263_s3 + $0xa8] sm:$0xff] }
  0xe0   :  { %v4083_v8 = vpop.f32.mrf.mxu0  ;;  %v4085_v10 = vpop.f32.mrf.mxu1  ;;  %2152 = vmatprep.mubr.f32.mxu1 %v5266_v3  ;;  %2314 = vmatprep.subr.mxu1 %v43_v2 }
  0xe1   :  { %2315 = vmatpush1.msra.mxu1 %v42_v6 }
  0xe2   :  { %v4091_v11 = vpop.f32.mrf.mxu0  ;;  %v4093_v13 = vpop.f32.mrf.mxu1  ;;  %3236 = vmatmul.mubr.msk.f32.gmra.mxu0 %vm132_vm0, %v3874_v22  ;;  %3239 = vmatmul.mubr.msk.f32.gmra.mxu1 %vm132_vm0, %v3817_v12 }
  0xe3   :  { %2075 = vmatprep.mubr.f32.mxu0 %v5266_v3  ;;  %2158 = vmatprep.mubr.f32.mxu1 %v5266_v3 }
  0xe4   :  { %v4101_v14 = vpop.f32.mrf.mxu0  ;;  %v4103_v15 = vpop.f32.mrf.mxu1  ;;  %2514 = vmatprep.subr.mxu1 %v72_v9  ;;  %v46_v9 = vld [vmem:[%s5263_s3 + $0xa0] sm:$0xff] }
  0xe6   :  { %v4105_v16 = vpop.f32.mrf.mxu0  ;;  %v4107_v19 = vpop.f32.mrf.mxu1  ;;  %3237 = vmatmul.mubr.msk.f32.gmra.mxu0 %vm132_vm0, %v3889_v24  ;;  %3240 = vmatmul.mubr.msk.f32.gmra.mxu1 %vm132_vm0, %v3844_v17 }
  0xe7   :  { %2164 = vmatprep.mubr.f32.mxu1 %v5266_v3  ;;  %2247 = vmatprep.mubr.f32.mxu0 %v5266_v3 }
  0xe8   :  { %v4115_v20 = vpop.f32.mrf.mxu0  ;;  %v4117_v21 = vpop.f32.mrf.mxu1 }
  0xea   :  { %v4125_v26 = vpop.f32.mrf.mxu0  ;;  %v4127_v27 = vpop.f32.mrf.mxu1  ;;  %3241 = vmatmul.mubr.msk.f32.gmra.mxu1 %vm132_vm0, %v3855_v18  ;;  %3244 = vmatmul.mubr.msk.f32.vlgmr.msra.gmra.mxu0 %vm132_vm0, %v3796_v7 }
  0xeb   :  { %2414 = vmatpush1.msra.mxu0 %v69_v23  ;;  %2170 = vmatprep.mubr.f32.mxu1 %v5266_v3 }
  0xec   :  { %v4137_v29 = vpop.f32.mrf.mxu0  ;;  %v4139_v30 = vpop.f32.mrf.mxu1  ;;  %2253 = vmatprep.mubr.f32.mxu0 %v5266_v3  ;;  %2415 = vmatprep.subr.mxu0 %v45_v25 }
  0xed   :  { %2416 = vmatpush1.msra.mxu0 %v44_v28  ;;  %v75_v28 = vld [vmem:[%s5263_s3 + $0x188] sm:$0xff] }
  0xee   :  { %v4145_v32 = vpop.f32.mrf.mxu0  ;;  %v4147_v33 = vpop.f32.mrf.mxu1  ;;  %3242 = vmatmul.mubr.msk.f32.gmra.mxu1 %vm132_vm0, %v3874_v22  ;;  %3245 = vmatmul.mubr.msk.f32.gmra.mxu0 %vm132_vm0, %v3817_v12 }
  0xef   :  { %2176 = vmatprep.mubr.f32.mxu1 %v5266_v3  ;;  %2259 = vmatprep.mubr.f32.mxu0 %v5266_v3 }
  0xf0   :  { %v4155_v34 = vpop.f32.mrf.mxu0  ;;  %v4157_v37 = vpop.f32.mrf.mxu1  ;;  %2615 = vmatprep.subr.mxu0 %v74_v31 }
  0xf2   :  { %v4159_v40 = vpop.f32.mrf.mxu0  ;;  %v4161_v49 = vpop.f32.mrf.mxu1  ;;  %3243 = vmatmul.mubr.msk.f32.gmra.mxu1 %vm132_vm0, %v3889_v24  ;;  %3246 = vmatmul.mubr.msk.f32.gmra.mxu0 %vm132_vm0, %v3844_v17 }
  0xf3   :  { %5268 = vst [vmem:[#allocation2_spill] sm:$0xff] %v4161_v49  ;;  %2265 = vmatprep.mubr.f32.mxu0 %v5266_v3  ;;  %2348 = vmatprep.mubr.f32.mxu1 %v5266_v3 }
  0xf4   :  { %v4169_v50 = vpop.f32.mrf.mxu0  ;;  %v4171_v53 = vpop.f32.mrf.mxu1 }
  0xf5   :  { %5269 = vst [vmem:[#allocation3_spill] sm:$0xff] %v4171_v53 }
  0xf6   :  { %v4179_v2 = vpop.f32.mrf.mxu0  ;;  %v4181_v6 = vpop.f32.mrf.mxu1  ;;  %3247 = vmatmul.mubr.msk.f32.gmra.mxu0 %vm132_vm0, %v3855_v18  ;;  %3250 = vmatmul.mubr.msk.f32.vlgmr.msra.gmra.mxu1 %vm132_vm0, %v3796_v7 }
  0xf7   :  { %5270 = vst [vmem:[#allocation4_spill] sm:$0xff] %v4181_v6  ;;  %2515 = vmatpush1.msra.mxu1 %v71_v56  ;;  %2271 = vmatprep.mubr.f32.mxu0 %v5266_v3 }
  0xf8   :  { %v4191_v23 = vpop.f32.mrf.mxu0  ;;  %v4193_v25 = vpop.f32.mrf.mxu1  ;;  %2354 = vmatprep.mubr.f32.mxu1 %v5266_v3  ;;  %2516 = vmatprep.subr.mxu1 %v47_v1 }
  0xf9   :  { %5271 = vst [vmem:[#allocation5_spill] sm:$0xff] %v4193_v25  ;;  %2517 = vmatpush1.msra.mxu1 %v46_v9 }
  0xfa   :  { %v4199_v31 = vpop.f32.mrf.mxu0  ;;  %v4201_v6 = vpop.f32.mrf.mxu1  ;;  %3248 = vmatmul.mubr.msk.f32.gmra.mxu0 %vm132_vm0, %v3874_v22  ;;  %3251 = vmatmul.mubr.msk.f32.gmra.mxu1 %vm132_vm0, %v3817_v12 }
  0xfb   :  { %5272 = vst [vmem:[#allocation6_spill] sm:$0xff] %v4201_v6  ;;  %2277 = vmatprep.mubr.f32.mxu0 %v5266_v3  ;;  %2360 = vmatprep.mubr.f32.mxu1 %v5266_v3 }
  0xfc   :  { %v4209_v56 = vpop.f32.mrf.mxu0  ;;  %v4211_v1 = vpop.f32.mrf.mxu1  ;;  %3309 = vmatprep.subr.mxu1 %v75_v28 }
  0xfd   :  { %5273 = vst [vmem:[#allocation7_spill] sm:$0xff] %v4209_v56  ;;  %5274 = vst [vmem:[#allocation8_spill] sm:$0xff] %v4211_v1  ;;  %v73_v1 = vld [vmem:[%s5263_s3 + $0x178] sm:$0xff] }
  0xfe   :  { %v4213_v9 = vpop.f32.mrf.mxu0  ;;  %v4215_v25 = vpop.f32.mrf.mxu1  ;;  %3249 = vmatmul.mubr.msk.f32.gmra.mxu0 %vm132_vm0, %v3889_v24  ;;  %3252 = vmatmul.mubr.msk.f32.gmra.mxu1 %vm132_vm0, %v3844_v17 }
  0xff   :  { %5275 = vst [vmem:[#allocation9_spill] sm:$0xff] %v4213_v9  ;;  %5276 = vst [vmem:[#allocation10_spill] sm:$0xff] %v4215_v25  ;;  %2366 = vmatprep.mubr.f32.mxu1 %v5266_v3  ;;  %2449 = vmatprep.mubr.f32.mxu0 %v5266_v3  ;;  %v49_v25 = vld [vmem:[%s5263_s3 + $0xb8] sm:$0xff]  ;;  %v48_v3 = vld [vmem:[%s5263_s3 + $0xb0] sm:$0xff] }
 0x100   :  { %v4223_v6 = vpop.f32.mrf.mxu0  ;;  %v4225_v53 = vpop.f32.mrf.mxu1 }
 0x101   :  { %5277 = vst [vmem:[#allocation11_spill] sm:$0xff] %v4223_v6  ;;  %5278 = vst [vmem:[#allocation12_spill] sm:$0xff] %v4225_v53  ;;  %v5281_v53 = vmov 0.0  }
 0x102   :  { %v4233_v9 = vpop.f32.mrf.mxu0  ;;  %v4235_v49 = vpop.f32.mrf.mxu1  ;;  %3253 = vmatmul.mubr.msk.f32.gmra.mxu1 %vm132_vm0, %v3855_v18  ;;  %3256 = vmatmul.mubr.msk.f32.vlgmr.msra.gmra.mxu0 %vm132_vm0, %v3796_v7 }
 0x103   :  { %5279 = vst [vmem:[#allocation13_spill] sm:$0xff] %v4233_v9  ;;  %5280 = vst [vmem:[#allocation14_spill] sm:$0xff] %v4235_v49  ;;  %2616 = vmatpush1.msra.mxu0 %v73_v1  ;;  %2372 = vmatprep.mubr.f32.mxu1 %v5281_v53 }
 0x104   :  { %v4245_v6 = vpop.f32.mrf.mxu0  ;;  %v4247_v56 = vpop.f32.mrf.mxu1  ;;  %2455 = vmatprep.mubr.f32.mxu0 %v5281_v53  ;;  %2617 = vmatprep.subr.mxu0 %v49_v25 }
 0x105   :  { %5282 = vst [vmem:[#allocation15_spill] sm:$0xff] %v4247_v56  ;;  %2618 = vmatpush1.msra.mxu0 %v48_v3 }
 0x106   :  { %v4250_v49 = vpop.f32.mrf.mxu0  ;;  %v4252_v9 = vpop.f32.mrf.mxu1  ;;  %3254 = vmatmul.mubr.msk.f32.gmra.mxu1 %vm132_vm0, %v3874_v22  ;;  %3257 = vmatmul.mubr.msk.f32.gmra.mxu0 %vm132_vm0, %v3817_v12 }
 0x107   :  { %5283 = vst [vmem:[#allocation16_spill] sm:$0xff] %v4250_v49  ;;  %5284 = vst [vmem:[#allocation17_spill] sm:$0xff] %v4252_v9  ;;  %2378 = vmatprep.mubr.f32.mxu1 %v5281_v53  ;;  %2461 = vmatprep.mubr.f32.mxu0 %v5281_v53 }
 0x108   :  { %v4260_v1 = vpop.f32.mrf.mxu0  ;;  %v4262_v56 = vpop.f32.mrf.mxu1 }
 0x109   :  { %5285 = vst [vmem:[#allocation18_spill] sm:$0xff] %v4262_v56  ;;  %v50_v56 = vld [vmem:[%s5263_s3 + $0xc0] sm:$0xff] }
 0x10a   :  { %v4264_v25 = vpop.f32.mrf.mxu0  ;;  %v4266_v3 = vpop.f32.mrf.mxu1  ;;  %3255 = vmatmul.mubr.msk.f32.gmra.mxu1 %vm132_vm0, %v3889_v24  ;;  %3258 = vmatmul.mubr.msk.f32.gmra.mxu0 %vm132_vm0, %v3844_v17 }
 0x10b   :  { %5286 = vst [vmem:[#allocation19_spill] sm:$0xff] %v4264_v25  ;;  %5287 = vst [vmem:[#allocation20_spill] sm:$0xff] %v4266_v3  ;;  %2467 = vmatprep.mubr.f32.mxu0 %v5281_v53  ;;  %2550 = vmatprep.mubr.f32.mxu1 %v5281_v53 }
 0x10c   :  { %v4274_v9 = vpop.f32.mrf.mxu0  ;;  %v4276_v49 = vpop.f32.mrf.mxu1 }
 0x10d   :  { %5288 = vst [vmem:[#allocation21_spill] sm:$0xff] %v4274_v9  ;;  %5289 = vst [vmem:[#allocation22_spill] sm:$0xff] %v4276_v49 }
 0x10e   :  { %v4281_v25 = vpop.f32.mrf.mxu0  ;;  %v4283_v3 = vpop.f32.mrf.mxu1  ;;  %3259 = vmatmul.mubr.msk.f32.gmra.mxu0 %vm132_vm0, %v3855_v18  ;;  %3262 = vmatmul.mubr.msk.f32.vlgmr.msra.gmra.mxu1 %vm132_vm0, %v3796_v7 }
 0x10f   :  { %5290 = vst [vmem:[#allocation23_spill] sm:$0xff] %v4281_v25  ;;  %5291 = vst [vmem:[#allocation24_spill] sm:$0xff] %v4283_v3  ;;  %3310 = vmatpush3.msra.mxu1 %v75_v28  ;;  %2473 = vmatprep.mubr.f32.mxu0 %v5281_v53 }
 0x110   :  { %v4290_v9 = vpop.f32.mrf.mxu0  ;;  %v4292_v49 = vpop.f32.mrf.mxu1  ;;  %2556 = vmatprep.mubr.f32.mxu1 %v5281_v53  ;;  %3311 = vmatprep.subr.mxu1 %v50_v56 }
 0x111   :  { %5292 = vst [vmem:[#allocation25_spill] sm:$0xff] %v4290_v9  ;;  %5293 = vst [vmem:[#allocation26_spill] sm:$0xff] %v4292_v49  ;;  %3312 = vmatpush3.msra.mxu1 %v50_v56 }
 0x112   :  { %v4295_v25 = vpop.f32.mrf.mxu0  ;;  %v4297_v3 = vpop.f32.mrf.mxu1  ;;  %3260 = vmatmul.mubr.msk.f32.gmra.mxu0 %vm132_vm0, %v3874_v22  ;;  %3263 = vmatmul.mubr.msk.f32.gmra.mxu1 %vm132_vm0, %v3817_v12 }
 0x113   :  { %5294 = vst [vmem:[#allocation27_spill] sm:$0xff] %v4295_v25  ;;  %5295 = vst [vmem:[#allocation28_spill] sm:$0xff] %v4297_v3  ;;  %2479 = vmatprep.mubr.f32.mxu0 %v5281_v53  ;;  %2562 = vmatprep.mubr.f32.mxu1 %v5281_v53 }
 0x114   :  { %v4305_v28 = vpop.f32.mrf.mxu0  ;;  %v4307_v49 = vpop.f32.mrf.mxu1 }
 0x115   :  { %5296 = vst [vmem:[#allocation29_spill] sm:$0xff] %v4305_v28  ;;  %5297 = vst [vmem:[#allocation30_spill] sm:$0xff] %v4307_v49 }
 0x116   :  { %v4309_v9 = vpop.f32.mrf.mxu0  ;;  %v4311_v56 = vpop.f32.mrf.mxu1  ;;  %3261 = vmatmul.mubr.msk.f32.gmra.mxu0 %vm132_vm0, %v3889_v24  ;;  %3264 = vmatmul.mubr.msk.f32.gmra.mxu1 %vm132_vm0, %v3844_v17 }
 0x117   :  { %5298 = vst [vmem:[#allocation31_spill] sm:$0xff] %v4309_v9  ;;  %5299 = vst [vmem:[#allocation32_spill] sm:$0xff] %v4311_v56  ;;  %2568 = vmatprep.mubr.f32.mxu1 %v5281_v53  ;;  %2651 = vmatprep.mubr.f32.mxu0 %v5281_v53 }
 0x118   :  { %v4319_v3 = vpop.f32.mrf.mxu0  ;;  %v4321_v25 = vpop.f32.mrf.mxu1 }
 0x119   :  { %5300 = vst [vmem:[#allocation33_spill] sm:$0xff] %v4319_v3  ;;  %5301 = vst [vmem:[#allocation34_spill] sm:$0xff] %v4321_v25 }
 0x11a   :  { %v4323_v28 = vpop.f32.mrf.mxu0  ;;  %v4325_v49 = vpop.f32.mrf.mxu1  ;;  %3265 = vmatmul.mubr.msk.f32.gmra.mxu1 %vm132_vm0, %v3855_v18  ;;  %3268 = vmatmul.mubr.msk.f32.vlgmr.msra.gmra.mxu0 %vm132_vm0, %v3796_v7 }
 0x11b   :  { %5302 = vst [vmem:[#allocation35_spill] sm:$0xff] %v4323_v28  ;;  %5303 = vst [vmem:[#allocation36_spill] sm:$0xff] %v4325_v49  ;;  %2574 = vmatprep.mubr.f32.mxu1 %v5281_v53  ;;  %2657 = vmatprep.mubr.f32.mxu0 %v5281_v53 }
 0x11c   :  { %v4333_v56 = vpop.f32.mrf.mxu0  ;;  %v4335_v9 = vpop.f32.mrf.mxu1 }
 0x11d   :  { %5304 = vst [vmem:[#allocation37_spill] sm:$0xff] %v4333_v56  ;;  %5305 = vst [vmem:[#allocation38_spill] sm:$0xff] %v4335_v9 }
 0x11e   :  { %v4337_v3 = vpop.f32.mrf.mxu0  ;;  %v4339_v25 = vpop.f32.mrf.mxu1  ;;  %3266 = vmatmul.mubr.msk.f32.gmra.mxu1 %vm132_vm0, %v3874_v22  ;;  %3269 = vmatmul.mubr.msk.f32.gmra.mxu0 %vm132_vm0, %v3817_v12 }
 0x11f   :  { %5306 = vst [vmem:[#allocation39_spill] sm:$0xff] %v4337_v3  ;;  %5307 = vst [vmem:[#allocation40_spill] sm:$0xff] %v4339_v25  ;;  %2580 = vmatprep.mubr.f32.mxu1 %v5281_v53  ;;  %2663 = vmatprep.mubr.f32.mxu0 %v5281_v53 }
 0x120   :  { %v4347_v49 = vpop.f32.mrf.mxu0  ;;  %v4349_v28 = vpop.f32.mrf.mxu1 }
 0x121   :  { %5308 = vst [vmem:[#allocation41_spill] sm:$0xff] %v4347_v49  ;;  %5309 = vst [vmem:[#allocation42_spill] sm:$0xff] %v4349_v28 }
 0x122   :  { %v4351_v56 = vpop.f32.mrf.mxu0  ;;  %v4353_v9 = vpop.f32.mrf.mxu1  ;;  %3267 = vmatmul.mubr.msk.f32.gmra.mxu1 %vm132_vm0, %v3889_v24  ;;  %3270 = vmatmul.mubr.msk.f32.gmra.mxu0 %vm132_vm0, %v3844_v17 }
 0x123   :  { %5310 = vst [vmem:[#allocation43_spill] sm:$0xff] %v4351_v56  ;;  %5311 = vst [vmem:[#allocation44_spill] sm:$0xff] %v4353_v9  ;;  %2669 = vmatprep.mubr.f32.mxu0 %v5281_v53  ;;  %3313 = vmatprep.mubr.msk.f32.mxu1 %vm132_vm0, %v3796_v7 }
 0x124   :  { %v4362_v25 = vpop.f32.mrf.mxu0  ;;  %v4364_v49 = vpop.f32.mrf.mxu1 }
 0x125   :  { %5312 = vst [vmem:[#allocation45_spill] sm:$0xff] %v4362_v25  ;;  %5313 = vst [vmem:[#allocation46_spill] sm:$0xff] %v4364_v49 }
 0x126   :  { %v4366_v28 = vpop.f32.mrf.mxu0  ;;  %v4368_v56 = vpop.f32.mrf.mxu1  ;;  %3271 = vmatmul.mubr.msk.f32.gmra.mxu0 %vm132_vm0, %v3855_v18  ;;  %3314 = vmatmul.mubr.msk.f32.vlgmr.msra.gmra.mxu1 %vm132_vm0, %v3817_v12 }
 0x127   :  { %5314 = vst [vmem:[#allocation47_spill] sm:$0xff] %v4366_v28  ;;  %5315 = vst [vmem:[#allocation48_spill] sm:$0xff] %v4368_v56  ;;  %2675 = vmatprep.mubr.f32.mxu0 %v5281_v53  ;;  %3316 = vmatprep.mubr.msk.f32.mxu1 %vm132_vm0, %v3844_v17 }
 0x128   :  { %v4377_v7 = vpop.f32.mrf.mxu0  ;;  %v4379_v9 = vpop.f32.mrf.mxu1 }
 0x129   :  { %5316 = vst [vmem:[#allocation49_spill] sm:$0xff] %v4377_v7  ;;  %5317 = vst [vmem:[#allocation50_spill] sm:$0xff] %v4379_v9 }
 0x12a   :  { %v4381_v49 = vpop.f32.mrf.mxu0  ;;  %v4383_v28 = vpop.f32.mrf.mxu1  ;;  %3272 = vmatmul.mubr.msk.f32.gmra.mxu0 %vm132_vm0, %v3874_v22  ;;  %3317 = vmatmul.mubr.msk.f32.gmra.mxu1 %vm132_vm0, %v3855_v18 }
 0x12b   :  { %5318 = vst [vmem:[#allocation51_spill] sm:$0xff] %v4381_v49  ;;  %5319 = vst [vmem:[#allocation52_spill] sm:$0xff] %v4383_v28  ;;  %2681 = vmatprep.mubr.f32.mxu0 %v5281_v53  ;;  %3319 = vmatprep.mubr.msk.f32.mxu1 %vm132_vm0, %v3874_v22 }
 0x12c   :  { %v4392_v12 = vpop.f32.mrf.mxu0  ;;  %v4394_v17 = vpop.f32.mrf.mxu1 }
 0x12d   :  { %5320 = vst [vmem:[#allocation53_spill] sm:$0xff] %v4392_v12  ;;  %5321 = vst [vmem:[#allocation54_spill] sm:$0xff] %v4394_v17 }
 0x12e   :  { %v4396_v9 = vpop.f32.mrf.mxu0  ;;  %v4398_v56 = vpop.f32.mrf.mxu1  ;;  %3273 = vmatmul.mubr.msk.f32.gmra.mxu0 %vm132_vm0, %v3889_v24  ;;  %3320 = vmatmul.mubr.msk.f32.gmra.mxu1 %vm132_vm0, %v3889_v24 }
 0x12f   :  { %5322 = vst [vmem:[#allocation55_spill] sm:$0xff] %v4396_v9  ;;  %5323 = vst [vmem:[#allocation56_spill] sm:$0xff] %v4398_v56 }
 0x130   :  { %v4404_v18 = vpop.f32.mrf.mxu0  ;;  %v4406_v53 = vpop.f32.mrf.mxu1 }
 0x131   :  { %5324 = vst [vmem:[#allocation57_spill] sm:$0xff] %v4404_v18  ;;  %5325 = vst [vmem:[#allocation58_spill] sm:$0xff] %v4406_v53 }
 0x132   :  { %v4408_v28 = vpop.f32.mrf.mxu0  ;;  %v4410_v22 = vpop.f32.mrf.mxu1 }
 0x133   :  { %5326 = vst [vmem:[#allocation59_spill] sm:$0xff] %v4408_v28  ;;  %5327 = vst [vmem:[#allocation60_spill] sm:$0xff] %v4410_v22 }
 0x134   :  { %v4412_v12 = vpop.f32.mrf.mxu0  ;;  %v4414_v17 = vpop.f32.mrf.mxu1 }
 0x135   :  { %5328 = vst [vmem:[#allocation61_spill] sm:$0xff] %v4412_v12  ;;  %5329 = vst [vmem:[#allocation62_spill] sm:$0xff] %v4414_v17 }
 0x136   :  { %v4416_v9 = vpop.f32.mrf.mxu0  ;;  %v4418_v56 = vpop.f32.mrf.mxu1 }
 0x137   :  { %5330 = vst [vmem:[#allocation63_spill] sm:$0xff] %v4416_v9  ;;  %5331 = vst [vmem:[#allocation64_spill] sm:$0xff] %v4418_v56 }
 0x138   :  { %v4420_v49 = vpop.f32.mrf.mxu0  ;;  %v4422_v7 = vpop.f32.mrf.mxu1 }
 0x139   :  { %5332 = vst [vmem:[#allocation65_spill] sm:$0xff] %v4420_v49  ;;  %5333 = vst [vmem:[#allocation66_spill] sm:$0xff] %v4422_v7 }
 0x13a   :  { %v4424_v24 = vpop.f32.mrf.mxu0  ;;  %v4426_v18 = vpop.f32.mrf.mxu1 }
 0x13b   :  { %5334 = vst [vmem:[#allocation67_spill] sm:$0xff] %v4424_v24  ;;  %5335 = vst [vmem:[#allocation68_spill] sm:$0xff] %v4426_v18 }
 0x13c   :  { %v4428_v53 = vpop.f32.mrf.mxu0  ;;  %v4430_v28 = vpop.f32.mrf.mxu1 }
 0x13d   :  { %5336 = vst [vmem:[#allocation69_spill] sm:$0xff] %v4428_v53  ;;  %5337 = vst [vmem:[#allocation70_spill] sm:$0xff] %v4430_v28 }
 0x13e   :  { %v4432_v22 = vpop.f32.mrf.mxu0  ;;  %v4434_v12 = vpop.f32.mrf.mxu1 }
 0x13f   :  { %5338 = vst [vmem:[#allocation71_spill] sm:$0xff] %v4432_v22  ;;  %5339 = vst [vmem:[#allocation72_spill] sm:$0xff] %v4434_v12 }
 0x140   :  { %v4436_v17 = vpop.f32.mrf.mxu0  ;;  %v4438_v9 = vpop.f32.mrf.mxu1 }
 0x141   :  { %5340 = vst [vmem:[#allocation73_spill] sm:$0xff] %v4436_v17  ;;  %5341 = vst [vmem:[#allocation74_spill] sm:$0xff] %v4438_v9 }
 0x142   :  { %v4440_v56 = vpop.f32.mrf.mxu0  ;;  %v4442_v49 = vpop.f32.mrf.mxu1 }
 0x143   :  { %5342 = vst [vmem:[#allocation75_spill] sm:$0xff] %v4440_v56  ;;  %5343 = vst [vmem:[#allocation76_spill] sm:$0xff] %v4442_v49 }
 0x144   :  { %v4444_v7 = vpop.f32.mrf.mxu0  ;;  %v4446_v24 = vpop.f32.mrf.mxu1 }
 0x145   :  { %5344 = vst [vmem:[#allocation77_spill] sm:$0xff] %v4444_v7  ;;  %5345 = vst [vmem:[#allocation78_spill] sm:$0xff] %v4446_v24 }
 0x146   :  { %v4448_v18 = vpop.f32.mrf.mxu0  ;;  %v4450_v53 = vpop.f32.mrf.mxu1 }
 0x147   :  { %5346 = vst [vmem:[#allocation79_spill] sm:$0xff] %v4448_v18  ;;  %5347 = vst [vmem:[#allocation80_spill] sm:$0xff] %v4450_v53 }
 0x148   :  { %v4452_v28 = vpop.f32.mrf.mxu0  ;;  %v4454_v22 = vpop.f32.mrf.mxu1 }
 0x149   :  { %5348 = vst [vmem:[#allocation81_spill] sm:$0xff] %v4452_v28  ;;  %5349 = vst [vmem:[#allocation82_spill] sm:$0xff] %v4454_v22  ;;  %v4476_v22 = vpop.permute.xlu0 %2791 }
 0x14a   :  { %v4456_v12 = vpop.f32.mrf.mxu0  ;;  %v4458_v17 = vpop.f32.mrf.mxu1 }
 0x14b   :  { %5350 = vst [vmem:[#allocation83_spill] sm:$0xff] %v4456_v12  ;;  %5351 = vst [vmem:[#allocation84_spill] sm:$0xff] %v4458_v17 }
 0x14c   :  { %v4460_v9 = vpop.f32.mrf.mxu0  ;;  %v4462_v56 = vpop.f32.mrf.mxu1 }
 0x14d   :  { %5352 = vst [vmem:[#allocation85_spill] sm:$0xff] %v4460_v9  ;;  %5353 = vst [vmem:[#allocation86_spill] sm:$0xff] %v4462_v56  ;;  %v4489_v25 = vpop.permute.xlu0 %2796 }
 0x14e   :  { %v4464_v49 = vpop.f32.mrf.mxu0  ;;  %v4466_v7 = vpop.f32.mrf.mxu1 }
 0x14f   :  { %5354 = vst [vmem:[#allocation87_spill] sm:$0xff] %v4464_v49  ;;  %5355 = vst [vmem:[#allocation88_spill] sm:$0xff] %v4466_v7 }
 0x150   :  { %v4468_v24 = vpop.f32.mrf.mxu0  ;;  %v4470_v18 = vpop.f32.mrf.mxu1 }
 0x151   :  { %5356 = vst [vmem:[#allocation89_spill] sm:$0xff] %v4468_v24  ;;  %5357 = vst [vmem:[#allocation90_spill] sm:$0xff] %v4470_v18 }
 0x152   :  { %v4472_v53 = vpop.f32.mrf.mxu0  ;;  %v4474_v28 = vpop.f32.mrf.mxu1 }
 0x153   :  { %5358 = vst [vmem:[#allocation91_spill] sm:$0xff] %v4472_v53  ;;  %5359 = vst [vmem:[#allocation92_spill] sm:$0xff] %v4474_v28 }
 0x154   :  { %v4478_v12 = vpop.f32.mrf.mxu0  ;;  %v4480_v17 = vpop.f32.mrf.mxu1 }
 0x155   :  { %5360 = vst [vmem:[#allocation93_spill] sm:$0xff] %v4480_v17 }
 0x156   :  { %v4482_v9 = vpop.f32.mrf.mxu0  ;;  %v1542_v56 = vpop.f32.mrf.mxu1 }
 0x157   :  { %v1543_v49 = vadd.f32 %v1542_v56, %v3963_v35  ;;  %v4498_v56 = vpop.permute.xlu1 %2801 }
 0x158   :  { %v4485_v7 = vpop.f32.mrf.mxu0  ;;  %v1544_v24 = vpop.f32.mrf.mxu1 }
 0x159   :  { %5361 = vst [vmem:[#allocation94_spill] sm:$0xff] %v4485_v7  ;;  %v2819_v18 = vadd.f32 %v4476_v22, %v1543_v49  ;;  %v1545_v53 = vadd.f32 %v1544_v24, %v3975_v38 }
 0x15a   :  { %v4491_v28 = vpop.f32.mrf.mxu0  ;;  %v1548_v3 = vpop.f32.mrf.mxu1 }
 0x15b   :  { %5362 = vst [vmem:[#allocation95_spill] sm:$0xff] %v4491_v28  ;;  %2969 = vst [vmem:[%s5265_s5] sm:$0xff] %v2819_v18  ;;  %v2820_v17 = vadd.f32 %v4476_v22, %v1545_v53  ;;  %v1549_v35 = vadd.f32 %v1548_v3, %v3983_v41 }
 0x15c   :  { %v4500_v7 = vpop.f32.mrf.mxu0  ;;  %v1550_v49 = vpop.f32.mrf.mxu1 }
 0x15d   :  { %5363 = vst [vmem:[#allocation96_spill] sm:$0xff] %v4500_v7  ;;  %2970 = vst [vmem:[%s5265_s5 + $0x8] sm:$0xff] %v2820_v17  ;;  %v2844_v38 = vadd.f32 %v4489_v25, %v1549_v35  ;;  %v1551_v24 = vadd.f32 %v1550_v49, %v3993_v43  ;;  %v4521_v35 = vpop.permute.xlu1 %2806 }
 0x15e   :  { %v4507_v28 = vpop.f32.mrf.mxu0  ;;  %v1554_v18 = vpop.f32.mrf.mxu1 }
 0x15f   :  { %5364 = vst [vmem:[#allocation97_spill] sm:$0xff] %v4507_v28  ;;  %2995 = vst [vmem:[%s5265_s5 + $0xc8] sm:$0xff] %v2844_v38  ;;  %v2845_v41 = vadd.f32 %v4489_v25, %v1551_v24  ;;  %v1555_v3 = vadd.f32 %v1554_v18, %v3997_v45 }
 0x160   :  { %v4514_v53 = vpop.f32.mrf.mxu0  ;;  %v1556_v7 = vpop.f32.mrf.mxu1 }
 0x161   :  { %5365 = vst [vmem:[#allocation98_spill] sm:$0xff] %v4514_v53  ;;  %2996 = vst [vmem:[%s5265_s5 + $0xd0] sm:$0xff] %v2845_v41  ;;  %v2869_v43 = vadd.f32 %v4498_v56, %v1555_v3  ;;  %v1557_v17 = vadd.f32 %v1556_v7, %v4007_v47  ;;  %v4536_v53 = vpop.permute.xlu0 %2811 }
 0x162   :  { %v1560_v49 = vpop.f32.mrf.mxu1  ;;  %v1643_v28 = vpop.f32.mrf.mxu0 }
 0x163   :  { %3020 = vst [vmem:[%s5265_s5 + $0x190] sm:$0xff] %v2869_v43  ;;  %v2870_v45 = vadd.f32 %v4498_v56, %v1557_v17  ;;  %v1561_v38 = vadd.f32 %v1560_v49, %v4017_v51  ;;  %v1644_v24 = vadd.f32 %v1643_v28, %v3965_v36 }
 0x164   :  { %v1562_v18 = vpop.f32.mrf.mxu1  ;;  %v1645_v41 = vpop.f32.mrf.mxu0 }
 0x165   :  { %3021 = vst [vmem:[%s5265_s5 + $0x198] sm:$0xff] %v2870_v45  ;;  %v2821_v47 = vadd.f32 %v4476_v22, %v1644_v24  ;;  %v2894_v7 = vadd.f32 %v4521_v35, %v1561_v38  ;;  %v1563_v3 = vadd.f32 %v1562_v18, %v4029_v54  ;;  %v1646_v43 = vadd.f32 %v1645_v41, %v3977_v39  ;;  %v4558_v41 = vpop.permute.xlu1 %2816 }
 0x166   :  { %v1566_v17 = vpop.f32.mrf.mxu1  ;;  %v1649_v51 = vpop.f32.mrf.mxu0 }
 0x167   :  { %2971 = vst [vmem:[%s5265_s5 + $0x10] sm:$0xff] %v2821_v47  ;;  %3045 = vst [vmem:[%s5265_s5 + $0x258] sm:$0xff] %v2894_v7  ;;  %v2895_v36 = vadd.f32 %v4521_v35, %v1563_v3  ;;  %v2822_v28 = vadd.f32 %v4476_v22, %v1646_v43  ;;  %v1567_v54 = vadd.f32 %v1566_v17, %v4037_v57 }
 0x168   :  { %v1650_v39 = vadd.f32 %v1649_v51, %v3985_v42  ;;  %v1568_v49 = vpop.f32.mrf.mxu1  ;;  %v1651_v45 = vpop.f32.mrf.mxu0 }
 0x169   :  { %3046 = vst [vmem:[%s5265_s5 + $0x260] sm:$0xff] %v2895_v36  ;;  %2972 = vst [vmem:[%s5265_s5 + $0x18] sm:$0xff] %v2822_v28  ;;  %v2919_v24 = vadd.f32 %v4536_v53, %v1567_v54  ;;  %v1569_v18 = vadd.f32 %v1568_v49, %v4047_v59  ;;  %v1652_v57 = vadd.f32 %v1651_v45, %v3995_v44 }
 0x16a   :  { %v2846_v38 = vadd.f32 %v4489_v25, %v1650_v39  ;;  %v1572_v42 = vpop.f32.mrf.mxu1  ;;  %v1655_v47 = vpop.f32.mrf.mxu0 }
 0x16b   :  { %3070 = vst [vmem:[%s5265_s5 + $0x320] sm:$0xff] %v2919_v24  ;;  %v2920_v7 = vadd.f32 %v4536_v53, %v1569_v18  ;;  %v2847_v3 = vadd.f32 %v4489_v25, %v1652_v57  ;;  %v1573_v59 = vadd.f32 %v1572_v42, %v4051_v61  ;;  %v1656_v44 = vadd.f32 %v1655_v47, %v3999_v46 }
 0x16c   :  { %2997 = vst [vmem:[%s5265_s5 + $0xd8] sm:$0xff] %v2846_v38  ;;  %v1574_v43 = vpop.f32.mrf.mxu1  ;;  %v1657_v17 = vpop.f32.mrf.mxu0 }
 0x16d   :  { %3071 = vst [vmem:[%s5265_s5 + $0x328] sm:$0xff] %v2920_v7  ;;  %2998 = vst [vmem:[%s5265_s5 + $0xe0] sm:$0xff] %v2847_v3  ;;  %v2871_v51 = vadd.f32 %v4498_v56, %v1656_v44  ;;  %v2944_v36 = vadd.f32 %v4558_v41, %v1573_v59  ;;  %v1575_v28 = vadd.f32 %v1574_v43, %v4061_v63 }
 0x16e   :  { %v1658_v61 = vadd.f32 %v1657_v17, %v4009_v48  ;;  %v1661_v54 = vpop.f32.mrf.mxu0  ;;  %v1744_v46 = vpop.f32.mrf.mxu1 }
 0x16f   :  { %3022 = vst [vmem:[%s5265_s5 + $0x1a0] sm:$0xff] %v2871_v51  ;;  %3095 = vst [vmem:[%s5265_s5 + $0x3e8] sm:$0xff] %v2944_v36  ;;  %v2945_v39 = vadd.f32 %v4558_v41, %v1575_v28  ;;  %v1662_v45 = vadd.f32 %v1661_v54, %v4019_v52  ;;  %v1745_v63 = vadd.f32 %v1744_v46, %v4071_v4 }
 0x170   :  { %v2872_v49 = vadd.f32 %v4498_v56, %v1658_v61  ;;  %v1663_v38 = vpop.f32.mrf.mxu0  ;;  %v1746_v48 = vpop.f32.mrf.mxu1 }
 0x171   :  { %3096 = vst [vmem:[%s5265_s5 + $0x3f0] sm:$0xff] %v2945_v39  ;;  %v2896_v24 = vadd.f32 %v4521_v35, %v1662_v45  ;;  %v2823_v18 = vadd.f32 %v4476_v22, %v1745_v63  ;;  %v1664_v57 = vadd.f32 %v1663_v38, %v4031_v55  ;;  %v1747_v52 = vadd.f32 %v1746_v48, %v4083_v8 }
 0x172   :  { %3023 = vst [vmem:[%s5265_s5 + $0x1a8] sm:$0xff] %v2872_v49  ;;  %v1667_v42 = vpop.f32.mrf.mxu0  ;;  %v1750_v4 = vpop.f32.mrf.mxu1 }
 0x173   :  { %3047 = vst [vmem:[%s5265_s5 + $0x268] sm:$0xff] %v2896_v24  ;;  %2973 = vst [vmem:[%s5265_s5 + $0x20] sm:$0xff] %v2823_v18  ;;  %v2897_v47 = vadd.f32 %v4521_v35, %v1664_v57  ;;  %v2824_v7 = vadd.f32 %v4476_v22, %v1747_v52  ;;  %v1668_v3 = vadd.f32 %v1667_v42, %v4039_v58 }
 0x174   :  { %v1751_v55 = vadd.f32 %v1750_v4, %v4091_v11  ;;  %v1669_v59 = vpop.f32.mrf.mxu0  ;;  %v1752_v8 = vpop.f32.mrf.mxu1 }
 0x175   :  { %3048 = vst [vmem:[%s5265_s5 + $0x270] sm:$0xff] %v2897_v47  ;;  %2974 = vst [vmem:[%s5265_s5 + $0x28] sm:$0xff] %v2824_v7  ;;  %v2921_v44 = vadd.f32 %v4536_v53, %v1668_v3  ;;  %v1670_v17 = vadd.f32 %v1669_v59, %v4049_v60  ;;  %v1753_v58 = vadd.f32 %v1752_v8, %v4101_v14 }
 0x176   :  { %v2848_v43 = vadd.f32 %v4489_v25, %v1751_v55  ;;  %v1673_v51 = vpop.f32.mrf.mxu0  ;;  %v1756_v11 = vpop.f32.mrf.mxu1 }
 0x177   :  { %3072 = vst [vmem:[%s5265_s5 + $0x330] sm:$0xff] %v2921_v44  ;;  %v2922_v36 = vadd.f32 %v4536_v53, %v1670_v17  ;;  %v2849_v28 = vadd.f32 %v4489_v25, %v1753_v58  ;;  %v1674_v61 = vadd.f32 %v1673_v51, %v4053_v62  ;;  %v1757_v60 = vadd.f32 %v1756_v11, %v4105_v16 }
 0x178   :  { %2999 = vst [vmem:[%s5265_s5 + $0xe8] sm:$0xff] %v2848_v43  ;;  %v1675_v54 = vpop.f32.mrf.mxu0  ;;  %v1758_v14 = vpop.f32.mrf.mxu1 }
 0x179   :  { %3073 = vst [vmem:[%s5265_s5 + $0x338] sm:$0xff] %v2922_v36  ;;  %3000 = vst [vmem:[%s5265_s5 + $0xf0] sm:$0xff] %v2849_v28  ;;  %v2946_v46 = vadd.f32 %v4558_v41, %v1674_v61  ;;  %v2873_v39 = vadd.f32 %v4498_v56, %v1757_v60  ;;  %v1676_v49 = vadd.f32 %v1675_v54, %v4063_v0 }
 0x17a   :  { %v1759_v62 = vadd.f32 %v1758_v14, %v4115_v20  ;;  %v1762_v45 = vpop.f32.mrf.mxu1  ;;  %v1845_v16 = vpop.f32.mrf.mxu0 }
 0x17b   :  { %3097 = vst [vmem:[%s5265_s5 + $0x3f8] sm:$0xff] %v2946_v46  ;;  %3024 = vst [vmem:[%s5265_s5 + $0x1b0] sm:$0xff] %v2873_v39  ;;  %v2947_v63 = vadd.f32 %v4558_v41, %v1676_v49  ;;  %v1763_v48 = vadd.f32 %v1762_v45, %v4125_v26  ;;  %v1846_v0 = vadd.f32 %v1845_v16, %v4073_v5 }
 0x17c   :  { %v2874_v38 = vadd.f32 %v4498_v56, %v1759_v62  ;;  %v1764_v24 = vpop.f32.mrf.mxu1  ;;  %v1847_v20 = vpop.f32.mrf.mxu0 }
 0x17d   :  { %3098 = vst [vmem:[%s5265_s5 + $0x400] sm:$0xff] %v2947_v63  ;;  %v2898_v18 = vadd.f32 %v4521_v35, %v1763_v48  ;;  %v2825_v57 = vadd.f32 %v4476_v22, %v1846_v0  ;;  %v1765_v52 = vadd.f32 %v1764_v24, %v4137_v29  ;;  %v1848_v26 = vadd.f32 %v1847_v20, %v4085_v10 }
 0x17e   :  { %3025 = vst [vmem:[%s5265_s5 + $0x1b8] sm:$0xff] %v2874_v38  ;;  %v1768_v42 = vpop.f32.mrf.mxu1  ;;  %v1851_v5 = vpop.f32.mrf.mxu0 }
 0x17f   :  { %3049 = vst [vmem:[%s5265_s5 + $0x278] sm:$0xff] %v2898_v18  ;;  %2975 = vst [vmem:[%s5265_s5 + $0x30] sm:$0xff] %v2825_v57  ;;  %v2899_v4 = vadd.f32 %v4521_v35, %v1765_v52  ;;  %v2826_v47 = vadd.f32 %v4476_v22, %v1848_v26  ;;  %v1769_v7 = vadd.f32 %v1768_v42, %v4145_v32  ;;  %v5366_v18 = vld [vmem:[#allocation7_spill] sm:$0xff]  ;;  %v5367_v42 = vld [vmem:[#allocation2_spill] sm:$0xff] }
 0x180   :  { %v1852_v29 = vadd.f32 %v1851_v5, %v4093_v13  ;;  %v1770_v3 = vpop.f32.mrf.mxu1  ;;  %v1853_v10 = vpop.f32.mrf.mxu0 }
 0x181   :  { %3050 = vst [vmem:[%s5265_s5 + $0x280] sm:$0xff] %v2899_v4  ;;  %2976 = vst [vmem:[%s5265_s5 + $0x38] sm:$0xff] %v2826_v47  ;;  %v2923_v55 = vadd.f32 %v4536_v53, %v1769_v7  ;;  %v1771_v8 = vadd.f32 %v1770_v3, %v4155_v34  ;;  %v1854_v32 = vadd.f32 %v1853_v10, %v4103_v15  ;;  %v5368_v4 = vld [vmem:[#allocation9_spill] sm:$0xff]  ;;  %v5369_v10 = vld [vmem:[#allocation3_spill] sm:$0xff] }
 0x182   :  { %v2850_v59 = vadd.f32 %v4489_v25, %v1852_v29  ;;  %v1774_v44 = vpop.f32.mrf.mxu1  ;;  %v1857_v13 = vpop.f32.mrf.mxu0 }
 0x183   :  { %3074 = vst [vmem:[%s5265_s5 + $0x340] sm:$0xff] %v2923_v55  ;;  %v2924_v43 = vadd.f32 %v4536_v53, %v1771_v8  ;;  %v2851_v17 = vadd.f32 %v4489_v25, %v1854_v32  ;;  %v1775_v58 = vadd.f32 %v1774_v44, %v4159_v40  ;;  %v1858_v34 = vadd.f32 %v1857_v13, %v4107_v19 }
 0x184   :  { %3001 = vst [vmem:[%s5265_s5 + $0xf8] sm:$0xff] %v2850_v59  ;;  %v1776_v51 = vpop.f32.mrf.mxu1  ;;  %v1859_v15 = vpop.f32.mrf.mxu0  ;;  %v5370_v59 = vld [vmem:[#allocation11_spill] sm:$0xff] }
 0x185   :  { %3075 = vst [vmem:[%s5265_s5 + $0x348] sm:$0xff] %v2924_v43  ;;  %3002 = vst [vmem:[%s5265_s5 + $0x100] sm:$0xff] %v2851_v17  ;;  %v2948_v11 = vadd.f32 %v4558_v41, %v1775_v58  ;;  %v2875_v36 = vadd.f32 %v4498_v56, %v1858_v34  ;;  %v1777_v28 = vadd.f32 %v1776_v51, %v4169_v50  ;;  %v5371_v17 = vld [vmem:[#allocation13_spill] sm:$0xff]  ;;  %v5372_v34 = vld [vmem:[#allocation4_spill] sm:$0xff] }
 0x186   :  { %v1860_v40 = vadd.f32 %v1859_v15, %v4117_v21  ;;  %v1863_v61 = vpop.f32.mrf.mxu0  ;;  %v1946_v19 = vpop.f32.mrf.mxu1 }
 0x187   :  { %3099 = vst [vmem:[%s5265_s5 + $0x408] sm:$0xff] %v2948_v11  ;;  %3026 = vst [vmem:[%s5265_s5 + $0x1c0] sm:$0xff] %v2875_v36  ;;  %v2949_v60 = vadd.f32 %v4558_v41, %v1777_v28  ;;  %v1864_v14 = vadd.f32 %v1863_v61, %v4127_v27  ;;  %v1947_v50 = vadd.f32 %v1946_v19, %v4179_v2  ;;  %v5373_v61 = vld [vmem:[#allocation5_spill] sm:$0xff] }
 0x188   :  { %v2876_v54 = vadd.f32 %v4498_v56, %v1860_v40  ;;  %v1865_v46 = vpop.f32.mrf.mxu0  ;;  %v1948_v21 = vpop.f32.mrf.mxu1 }
 0x189   :  { %3100 = vst [vmem:[%s5265_s5 + $0x410] sm:$0xff] %v2949_v60  ;;  %v2900_v39 = vadd.f32 %v4521_v35, %v1864_v14  ;;  %v2827_v49 = vadd.f32 %v4476_v22, %v1947_v50  ;;  %v1866_v62 = vadd.f32 %v1865_v46, %v4139_v30  ;;  %v1949_v27 = vadd.f32 %v1948_v21, %v4191_v23  ;;  %v5374_v46 = vld [vmem:[#allocation16_spill] sm:$0xff] }
 0x18a   :  { %3027 = vst [vmem:[%s5265_s5 + $0x1c8] sm:$0xff] %v2876_v54  ;;  %v1869_v45 = vpop.f32.mrf.mxu0  ;;  %v1952_v2 = vpop.f32.mrf.mxu1 }
 0x18b   :  { %3051 = vst [vmem:[%s5265_s5 + $0x288] sm:$0xff] %v2900_v39  ;;  %2977 = vst [vmem:[%s5265_s5 + $0x40] sm:$0xff] %v2827_v49  ;;  %v2901_v16 = vadd.f32 %v4521_v35, %v1866_v62  ;;  %v2828_v63 = vadd.f32 %v4476_v22, %v1949_v27  ;;  %v1870_v38 = vadd.f32 %v1869_v45, %v4147_v33  ;;  %v5375_v39 = vld [vmem:[#allocation6_spill] sm:$0xff] }
 0x18c   :  { %v1953_v30 = vadd.f32 %v1952_v2, %v4199_v31  ;;  %v1871_v48 = vpop.f32.mrf.mxu0  ;;  %v1954_v23 = vpop.f32.mrf.mxu1 }
 0x18d   :  { %3052 = vst [vmem:[%s5265_s5 + $0x290] sm:$0xff] %v2901_v16  ;;  %2978 = vst [vmem:[%s5265_s5 + $0x48] sm:$0xff] %v2828_v63  ;;  %v2925_v0 = vadd.f32 %v4536_v53, %v1870_v38  ;;  %v1872_v20 = vadd.f32 %v1871_v48, %v4157_v37  ;;  %v1955_v33 = vadd.f32 %v1954_v23, %v5366_v18  ;;  %v5376_v16 = vld [vmem:[#allocation8_spill] sm:$0xff] }
 0x18e   :  { %v2852_v24 = vadd.f32 %v4489_v25, %v1953_v30  ;;  %v1875_v57 = vpop.f32.mrf.mxu0  ;;  %v1958_v31 = vpop.f32.mrf.mxu1 }
 0x18f   :  { %3076 = vst [vmem:[%s5265_s5 + $0x350] sm:$0xff] %v2925_v0  ;;  %v2926_v52 = vadd.f32 %v4536_v53, %v1872_v20  ;;  %v2853_v26 = vadd.f32 %v4489_v25, %v1955_v33  ;;  %v1876_v5 = vadd.f32 %v1875_v57, %v5367_v42  ;;  %v1959_v37 = vadd.f32 %v1958_v31, %v5368_v4  ;;  %v5377_v0 = vld [vmem:[#allocation19_spill] sm:$0xff]  ;;  %v5378_v20 = vld [vmem:[#allocation10_spill] sm:$0xff]  ;;  %v5380_v42 = vld [vmem:[#allocation12_spill] sm:$0xff] }
 0x190   :  { %3003 = vst [vmem:[%s5265_s5 + $0x108] sm:$0xff] %v2852_v24  ;;  %v1877_v47 = vpop.f32.mrf.mxu0  ;;  %v1960_v7 = vpop.f32.mrf.mxu1 }
 0x191   :  { %3077 = vst [vmem:[%s5265_s5 + $0x358] sm:$0xff] %v2926_v52  ;;  %3004 = vst [vmem:[%s5265_s5 + $0x110] sm:$0xff] %v2853_v26  ;;  %v2950_v29 = vadd.f32 %v4558_v41, %v1876_v5  ;;  %v2877_v3 = vadd.f32 %v4498_v56, %v1959_v37  ;;  %v1878_v55 = vadd.f32 %v1877_v47, %v5369_v10  ;;  %v5379_v52 = vld [vmem:[#allocation21_spill] sm:$0xff]  ;;  %v5382_v10 = vld [vmem:[#allocation23_spill] sm:$0xff] }
 0x192   :  { %v1961_v8 = vadd.f32 %v1960_v7, %v5370_v59  ;;  %v1964_v32 = vpop.f32.mrf.mxu1  ;;  %v2047_v44 = vpop.f32.mrf.mxu0 }
 0x193   :  { %3101 = vst [vmem:[%s5265_s5 + $0x418] sm:$0xff] %v2950_v29  ;;  %3028 = vst [vmem:[%s5265_s5 + $0x1d0] sm:$0xff] %v2877_v3  ;;  %v2951_v13 = vadd.f32 %v4558_v41, %v1878_v55  ;;  %v1965_v58 = vadd.f32 %v1964_v32, %v5371_v17  ;;  %v2048_v51 = vadd.f32 %v2047_v44, %v5372_v34  ;;  %v5381_v29 = vld [vmem:[#allocation14_spill] sm:$0xff]  ;;  %v5384_v17 = vld [vmem:[#allocation25_spill] sm:$0xff] }
 0x194   :  { %v2878_v43 = vadd.f32 %v4498_v56, %v1961_v8  ;;  %v1966_v15 = vpop.f32.mrf.mxu1  ;;  %v2049_v11 = vpop.f32.mrf.mxu0 }
 0x195   :  { %3102 = vst [vmem:[%s5265_s5 + $0x420] sm:$0xff] %v2951_v13  ;;  %v2902_v36 = vadd.f32 %v4521_v35, %v1965_v58  ;;  %v2829_v28 = vadd.f32 %v4476_v22, %v2048_v51  ;;  %v1967_v40 = vadd.f32 %v1966_v15, %v4245_v6  ;;  %v2050_v19 = vadd.f32 %v2049_v11, %v5373_v61  ;;  %v5383_v13 = vld [vmem:[#allocation15_spill] sm:$0xff] }
 0x196   :  { %3029 = vst [vmem:[%s5265_s5 + $0x1d8] sm:$0xff] %v2878_v43  ;;  %v1970_v60 = vpop.f32.mrf.mxu1  ;;  %v2053_v54 = vpop.f32.mrf.mxu0 }
 0x197   :  { %3053 = vst [vmem:[%s5265_s5 + $0x298] sm:$0xff] %v2902_v36  ;;  %2979 = vst [vmem:[%s5265_s5 + $0x50] sm:$0xff] %v2829_v28  ;;  %v2903_v14 = vadd.f32 %v4521_v35, %v1967_v40  ;;  %v2830_v50 = vadd.f32 %v4476_v22, %v2050_v19  ;;  %v1971_v21 = vadd.f32 %v1970_v60, %v5374_v46  ;;  %v5385_v36 = vld [vmem:[#allocation17_spill] sm:$0xff]  ;;  %v5386_v40 = vld [vmem:[#allocation27_spill] sm:$0xff] }
 0x198   :  { %v2054_v6 = vadd.f32 %v2053_v54, %v5375_v39  ;;  %v1972_v49 = vpop.f32.mrf.mxu1  ;;  %v2055_v62 = vpop.f32.mrf.mxu0 }
 0x199   :  { %3054 = vst [vmem:[%s5265_s5 + $0x2a0] sm:$0xff] %v2903_v14  ;;  %2980 = vst [vmem:[%s5265_s5 + $0x58] sm:$0xff] %v2830_v50  ;;  %v2927_v27 = vadd.f32 %v4536_v53, %v1971_v21  ;;  %v1973_v2 = vadd.f32 %v1972_v49, %v4260_v1  ;;  %v2056_v63 = vadd.f32 %v2055_v62, %v5376_v16  ;;  %v5387_v50 = vld [vmem:[#allocation18_spill] sm:$0xff]  ;;  %v5388_v21 = vld [vmem:[#allocation29_spill] sm:$0xff] }
 0x19a   :  { %v2854_v45 = vadd.f32 %v4489_v25, %v2054_v6  ;;  %v1976_v38 = vpop.f32.mrf.mxu1  ;;  %v2059_v30 = vpop.f32.mrf.mxu0  ;;  %v5390_v16 = vld [vmem:[#allocation31_spill] sm:$0xff] }
 0x19b   :  { %3078 = vst [vmem:[%s5265_s5 + $0x360] sm:$0xff] %v2927_v27  ;;  %v2928_v48 = vadd.f32 %v4536_v53, %v1973_v2  ;;  %v2855_v23 = vadd.f32 %v4489_v25, %v2056_v63  ;;  %v1977_v24 = vadd.f32 %v1976_v38, %v5377_v0  ;;  %v2060_v1 = vadd.f32 %v2059_v30, %v5378_v20  ;;  %v5391_v0 = vld [vmem:[#allocation22_spill] sm:$0xff]  ;;  %v5392_v20 = vld [vmem:[#allocation33_spill] sm:$0xff] }
 0x19c   :  { %3005 = vst [vmem:[%s5265_s5 + $0x118] sm:$0xff] %v2854_v45  ;;  %v1978_v18 = vpop.f32.mrf.mxu1  ;;  %v2061_v33 = vpop.f32.mrf.mxu0  ;;  %v5389_v45 = vld [vmem:[#allocation20_spill] sm:$0xff] }
 0x19d   :  { %3079 = vst [vmem:[%s5265_s5 + $0x368] sm:$0xff] %v2928_v48  ;;  %3006 = vst [vmem:[%s5265_s5 + $0x120] sm:$0xff] %v2855_v23  ;;  %v2952_v57 = vadd.f32 %v4558_v41, %v1977_v24  ;;  %v2879_v31 = vadd.f32 %v4498_v56, %v2060_v1  ;;  %v1979_v26 = vadd.f32 %v1978_v18, %v5379_v52  ;;  %v5393_v52 = vld [vmem:[#allocation35_spill] sm:$0xff] }
 0x19e   :  { %v2062_v5 = vadd.f32 %v2061_v33, %v5380_v42  ;;  %v2065_v4 = vpop.f32.mrf.mxu0  ;;  %v2148_v37 = vpop.f32.mrf.mxu1  ;;  %v5394_v42 = vld [vmem:[#allocation24_spill] sm:$0xff] }
 0x19f   :  { %3103 = vst [vmem:[%s5265_s5 + $0x428] sm:$0xff] %v2952_v57  ;;  %3030 = vst [vmem:[%s5265_s5 + $0x1e0] sm:$0xff] %v2879_v31  ;;  %v2953_v47 = vadd.f32 %v4558_v41, %v1979_v26  ;;  %v2066_v3 = vadd.f32 %v2065_v4, %v5381_v29  ;;  %v2149_v55 = vadd.f32 %v2148_v37, %v5382_v10  ;;  %v5395_v29 = vld [vmem:[#allocation37_spill] sm:$0xff]  ;;  %v5396_v10 = vld [vmem:[#allocation26_spill] sm:$0xff] }
 0x1a0   :  { %v2880_v7 = vadd.f32 %v4498_v56, %v2062_v5  ;;  %v2067_v59 = vpop.f32.mrf.mxu0  ;;  %v2150_v8 = vpop.f32.mrf.mxu1 }
 0x1a1   :  { %3104 = vst [vmem:[%s5265_s5 + $0x430] sm:$0xff] %v2953_v47  ;;  %v2904_v32 = vadd.f32 %v4521_v35, %v2066_v3  ;;  %v2831_v44 = vadd.f32 %v4476_v22, %v2149_v55  ;;  %v2068_v43 = vadd.f32 %v2067_v59, %v5383_v13  ;;  %v2151_v58 = vadd.f32 %v2150_v8, %v5384_v17  ;;  %v5397_v13 = vld [vmem:[#allocation39_spill] sm:$0xff]  ;;  %v5398_v17 = vld [vmem:[#allocation28_spill] sm:$0xff] }
 0x1a2   :  { %3031 = vst [vmem:[%s5265_s5 + $0x1e8] sm:$0xff] %v2880_v7  ;;  %v2071_v34 = vpop.f32.mrf.mxu0  ;;  %v2154_v51 = vpop.f32.mrf.mxu1 }
 0x1a3   :  { %3055 = vst [vmem:[%s5265_s5 + $0x2a8] sm:$0xff] %v2904_v32  ;;  %2981 = vst [vmem:[%s5265_s5 + $0x60] sm:$0xff] %v2831_v44  ;;  %v2905_v15 = vadd.f32 %v4521_v35, %v2068_v43  ;;  %v2832_v11 = vadd.f32 %v4476_v22, %v2151_v58  ;;  %v2072_v28 = vadd.f32 %v2071_v34, %v5385_v36  ;;  %v5399_v36 = vld [vmem:[#allocation41_spill] sm:$0xff] }
 0x1a4   :  { %v2155_v61 = vadd.f32 %v2154_v51, %v5386_v40  ;;  %v2073_v19 = vpop.f32.mrf.mxu0  ;;  %v2156_v60 = vpop.f32.mrf.mxu1  ;;  %v5400_v40 = vld [vmem:[#allocation30_spill] sm:$0xff] }
 0x1a5   :  { %3056 = vst [vmem:[%s5265_s5 + $0x2b0] sm:$0xff] %v2905_v15  ;;  %2982 = vst [vmem:[%s5265_s5 + $0x68] sm:$0xff] %v2832_v11  ;;  %v2929_v54 = vadd.f32 %v4536_v53, %v2072_v28  ;;  %v2074_v46 = vadd.f32 %v2073_v19, %v5387_v50  ;;  %v2157_v39 = vadd.f32 %v2156_v60, %v5388_v21  ;;  %v5401_v50 = vld [vmem:[#allocation43_spill] sm:$0xff]  ;;  %v5402_v21 = vld [vmem:[#allocation32_spill] sm:$0xff] }
 0x1a6   :  { %v2856_v14 = vadd.f32 %v4489_v25, %v2155_v61  ;;  %v2077_v6 = vpop.f32.mrf.mxu0  ;;  %v2160_v49 = vpop.f32.mrf.mxu1 }
 0x1a7   :  { %3080 = vst [vmem:[%s5265_s5 + $0x370] sm:$0xff] %v2929_v54  ;;  %v2930_v62 = vadd.f32 %v4536_v53, %v2074_v46  ;;  %v2857_v27 = vadd.f32 %v4489_v25, %v2157_v39  ;;  %v2078_v2 = vadd.f32 %v2077_v6, %v5389_v45  ;;  %v2161_v63 = vadd.f32 %v2160_v49, %v5390_v16  ;;  %v5403_v45 = vld [vmem:[#allocation45_spill] sm:$0xff]  ;;  %v5404_v16 = vld [vmem:[#allocation34_spill] sm:$0xff] }
 0x1a8   :  { %3007 = vst [vmem:[%s5265_s5 + $0x128] sm:$0xff] %v2856_v14  ;;  %v2079_v38 = vpop.f32.mrf.mxu0  ;;  %v2162_v30 = vpop.f32.mrf.mxu1 }
 0x1a9   :  { %3081 = vst [vmem:[%s5265_s5 + $0x378] sm:$0xff] %v2930_v62  ;;  %3008 = vst [vmem:[%s5265_s5 + $0x130] sm:$0xff] %v2857_v27  ;;  %v2954_v48 = vadd.f32 %v4558_v41, %v2078_v2  ;;  %v2881_v23 = vadd.f32 %v4498_v56, %v2161_v63  ;;  %v2080_v24 = vadd.f32 %v2079_v38, %v5391_v0  ;;  %v5405_v0 = vld [vmem:[#allocation36_spill] sm:$0xff] }
 0x1aa   :  { %v2163_v1 = vadd.f32 %v2162_v30, %v5392_v20  ;;  %v2166_v18 = vpop.f32.mrf.mxu1  ;;  %v2249_v33 = vpop.f32.mrf.mxu0  ;;  %v5406_v20 = vld [vmem:[#allocation47_spill] sm:$0xff] }
 0x1ab   :  { %3105 = vst [vmem:[%s5265_s5 + $0x438] sm:$0xff] %v2954_v48  ;;  %3032 = vst [vmem:[%s5265_s5 + $0x1f0] sm:$0xff] %v2881_v23  ;;  %v2955_v57 = vadd.f32 %v4558_v41, %v2080_v24  ;;  %v2167_v26 = vadd.f32 %v2166_v18, %v5393_v52  ;;  %v2250_v5 = vadd.f32 %v2249_v33, %v5394_v42  ;;  %v5407_v52 = vld [vmem:[#allocation38_spill] sm:$0xff]  ;;  %v5408_v42 = vld [vmem:[#allocation49_spill] sm:$0xff] }
 0x1ac   :  { %v2882_v31 = vadd.f32 %v4498_v56, %v2163_v1  ;;  %v2168_v4 = vpop.f32.mrf.mxu1  ;;  %v2251_v37 = vpop.f32.mrf.mxu0 }
 0x1ad   :  { %3106 = vst [vmem:[%s5265_s5 + $0x440] sm:$0xff] %v2955_v57  ;;  %v2906_v47 = vadd.f32 %v4521_v35, %v2167_v26  ;;  %v2833_v7 = vadd.f32 %v4476_v22, %v2250_v5  ;;  %v2169_v3 = vadd.f32 %v2168_v4, %v5395_v29  ;;  %v2252_v55 = vadd.f32 %v2251_v37, %v5396_v10  ;;  %v5409_v29 = vld [vmem:[#allocation40_spill] sm:$0xff]  ;;  %v5410_v10 = vld [vmem:[#allocation51_spill] sm:$0xff] }
 0x1ae   :  { %3033 = vst [vmem:[%s5265_s5 + $0x1f8] sm:$0xff] %v2882_v31  ;;  %v2172_v59 = vpop.f32.mrf.mxu1  ;;  %v2255_v8 = vpop.f32.mrf.mxu0 }
 0x1af   :  { %3057 = vst [vmem:[%s5265_s5 + $0x2b8] sm:$0xff] %v2906_v47  ;;  %2983 = vst [vmem:[%s5265_s5 + $0x70] sm:$0xff] %v2833_v7  ;;  %v2907_v32 = vadd.f32 %v4521_v35, %v2169_v3  ;;  %v2834_v44 = vadd.f32 %v4476_v22, %v2252_v55  ;;  %v2173_v43 = vadd.f32 %v2172_v59, %v5397_v13  ;;  %v5411_v13 = vld [vmem:[#allocation42_spill] sm:$0xff] }
 0x1b0   :  { %v2256_v58 = vadd.f32 %v2255_v8, %v5398_v17  ;;  %v2174_v34 = vpop.f32.mrf.mxu1  ;;  %v2257_v51 = vpop.f32.mrf.mxu0  ;;  %v5412_v17 = vld [vmem:[#allocation53_spill] sm:$0xff] }
 0x1b1   :  { %3058 = vst [vmem:[%s5265_s5 + $0x2c0] sm:$0xff] %v2907_v32  ;;  %2984 = vst [vmem:[%s5265_s5 + $0x78] sm:$0xff] %v2834_v44  ;;  %v2931_v15 = vadd.f32 %v4536_v53, %v2173_v43  ;;  %v2175_v28 = vadd.f32 %v2174_v34, %v5399_v36  ;;  %v2258_v61 = vadd.f32 %v2257_v51, %v5400_v40  ;;  %v5413_v36 = vld [vmem:[#allocation44_spill] sm:$0xff]  ;;  %v5414_v40 = vld [vmem:[#allocation55_spill] sm:$0xff] }
 0x1b2   :  { %v2858_v11 = vadd.f32 %v4489_v25, %v2256_v58  ;;  %v2178_v19 = vpop.f32.mrf.mxu1  ;;  %v2261_v60 = vpop.f32.mrf.mxu0 }
 0x1b3   :  { %3082 = vst [vmem:[%s5265_s5 + $0x380] sm:$0xff] %v2931_v15  ;;  %v2932_v54 = vadd.f32 %v4536_v53, %v2175_v28  ;;  %v2859_v14 = vadd.f32 %v4489_v25, %v2258_v61  ;;  %v2179_v46 = vadd.f32 %v2178_v19, %v5401_v50  ;;  %v2262_v39 = vadd.f32 %v2261_v60, %v5402_v21  ;;  %v5415_v50 = vld [vmem:[#allocation46_spill] sm:$0xff]  ;;  %v5416_v21 = vld [vmem:[#allocation57_spill] sm:$0xff] }
 0x1b4   :  { %3009 = vst [vmem:[%s5265_s5 + $0x138] sm:$0xff] %v2858_v11  ;;  %v2180_v6 = vpop.f32.mrf.mxu1  ;;  %v2263_v49 = vpop.f32.mrf.mxu0 }
 0x1b5   :  { %3083 = vst [vmem:[%s5265_s5 + $0x388] sm:$0xff] %v2932_v54  ;;  %3010 = vst [vmem:[%s5265_s5 + $0x140] sm:$0xff] %v2859_v14  ;;  %v2956_v62 = vadd.f32 %v4558_v41, %v2179_v46  ;;  %v2883_v27 = vadd.f32 %v4498_v56, %v2262_v39  ;;  %v2181_v2 = vadd.f32 %v2180_v6, %v5403_v45  ;;  %v5417_v45 = vld [vmem:[#allocation59_spill] sm:$0xff] }
 0x1b6   :  { %v2264_v63 = vadd.f32 %v2263_v49, %v5404_v16  ;;  %v2267_v38 = vpop.f32.mrf.mxu0  ;;  %v2350_v30 = vpop.f32.mrf.mxu1  ;;  %v5418_v16 = vld [vmem:[#allocation48_spill] sm:$0xff] }
 0x1b7   :  { %3107 = vst [vmem:[%s5265_s5 + $0x448] sm:$0xff] %v2956_v62  ;;  %3034 = vst [vmem:[%s5265_s5 + $0x200] sm:$0xff] %v2883_v27  ;;  %v2957_v48 = vadd.f32 %v4558_v41, %v2181_v2  ;;  %v2268_v24 = vadd.f32 %v2267_v38, %v5405_v0  ;;  %v2351_v1 = vadd.f32 %v2350_v30, %v5406_v20  ;;  %v5419_v0 = vld [vmem:[#allocation61_spill] sm:$0xff]  ;;  %v5420_v20 = vld [vmem:[#allocation50_spill] sm:$0xff] }
 0x1b8   :  { %v2884_v23 = vadd.f32 %v4498_v56, %v2264_v63  ;;  %v2269_v18 = vpop.f32.mrf.mxu0  ;;  %v2352_v33 = vpop.f32.mrf.mxu1 }
 0x1b9   :  { %3108 = vst [vmem:[%s5265_s5 + $0x450] sm:$0xff] %v2957_v48  ;;  %v2908_v57 = vadd.f32 %v4521_v35, %v2268_v24  ;;  %v2835_v31 = vadd.f32 %v4476_v22, %v2351_v1  ;;  %v2270_v26 = vadd.f32 %v2269_v18, %v5407_v52  ;;  %v2353_v5 = vadd.f32 %v2352_v33, %v5408_v42  ;;  %v5421_v52 = vld [vmem:[#allocation63_spill] sm:$0xff]  ;;  %v5422_v42 = vld [vmem:[#allocation52_spill] sm:$0xff] }
 0x1ba   :  { %3035 = vst [vmem:[%s5265_s5 + $0x208] sm:$0xff] %v2884_v23  ;;  %v2273_v4 = vpop.f32.mrf.mxu0  ;;  %v2356_v37 = vpop.f32.mrf.mxu1 }
 0x1bb   :  { %3059 = vst [vmem:[%s5265_s5 + $0x2c8] sm:$0xff] %v2908_v57  ;;  %2985 = vst [vmem:[%s5265_s5 + $0x80] sm:$0xff] %v2835_v31  ;;  %v2909_v47 = vadd.f32 %v4521_v35, %v2270_v26  ;;  %v2836_v7 = vadd.f32 %v4476_v22, %v2353_v5  ;;  %v2274_v3 = vadd.f32 %v2273_v4, %v5409_v29  ;;  %v5423_v29 = vld [vmem:[#allocation65_spill] sm:$0xff] }
 0x1bc   :  { %v2357_v55 = vadd.f32 %v2356_v37, %v5410_v10  ;;  %v2275_v59 = vpop.f32.mrf.mxu0  ;;  %v2358_v8 = vpop.f32.mrf.mxu1  ;;  %v5424_v10 = vld [vmem:[#allocation54_spill] sm:$0xff] }
 0x1bd   :  { %3060 = vst [vmem:[%s5265_s5 + $0x2d0] sm:$0xff] %v2909_v47  ;;  %2986 = vst [vmem:[%s5265_s5 + $0x88] sm:$0xff] %v2836_v7  ;;  %v2933_v32 = vadd.f32 %v4536_v53, %v2274_v3  ;;  %v2276_v43 = vadd.f32 %v2275_v59, %v5411_v13  ;;  %v2359_v58 = vadd.f32 %v2358_v8, %v5412_v17  ;;  %v5425_v13 = vld [vmem:[#allocation67_spill] sm:$0xff]  ;;  %v5426_v17 = vld [vmem:[#allocation56_spill] sm:$0xff] }
 0x1be   :  { %v2860_v44 = vadd.f32 %v4489_v25, %v2357_v55  ;;  %v2279_v34 = vpop.f32.mrf.mxu0  ;;  %v2362_v51 = vpop.f32.mrf.mxu1 }
 0x1bf   :  { %3084 = vst [vmem:[%s5265_s5 + $0x390] sm:$0xff] %v2933_v32  ;;  %v2934_v15 = vadd.f32 %v4536_v53, %v2276_v43  ;;  %v2861_v11 = vadd.f32 %v4489_v25, %v2359_v58  ;;  %v2280_v28 = vadd.f32 %v2279_v34, %v5413_v36  ;;  %v2363_v61 = vadd.f32 %v2362_v51, %v5414_v40  ;;  %v5427_v36 = vld [vmem:[#allocation69_spill] sm:$0xff]  ;;  %v5428_v40 = vld [vmem:[#allocation58_spill] sm:$0xff] }
 0x1c0   :  { %3011 = vst [vmem:[%s5265_s5 + $0x148] sm:$0xff] %v2860_v44  ;;  %v2281_v19 = vpop.f32.mrf.mxu0  ;;  %v2364_v60 = vpop.f32.mrf.mxu1 }
 0x1c1   :  { %3085 = vst [vmem:[%s5265_s5 + $0x398] sm:$0xff] %v2934_v15  ;;  %3012 = vst [vmem:[%s5265_s5 + $0x150] sm:$0xff] %v2861_v11  ;;  %v2958_v54 = vadd.f32 %v4558_v41, %v2280_v28  ;;  %v2885_v14 = vadd.f32 %v4498_v56, %v2363_v61  ;;  %v2282_v46 = vadd.f32 %v2281_v19, %v5415_v50  ;;  %v5429_v50 = vld [vmem:[#allocation60_spill] sm:$0xff] }
 0x1c2   :  { %v2365_v39 = vadd.f32 %v2364_v60, %v5416_v21  ;;  %v2368_v6 = vpop.f32.mrf.mxu1  ;;  %v2451_v49 = vpop.f32.mrf.mxu0  ;;  %v5430_v21 = vld [vmem:[#allocation71_spill] sm:$0xff] }
 0x1c3   :  { %3109 = vst [vmem:[%s5265_s5 + $0x458] sm:$0xff] %v2958_v54  ;;  %3036 = vst [vmem:[%s5265_s5 + $0x210] sm:$0xff] %v2885_v14  ;;  %v2959_v62 = vadd.f32 %v4558_v41, %v2282_v46  ;;  %v2369_v2 = vadd.f32 %v2368_v6, %v5417_v45  ;;  %v2452_v63 = vadd.f32 %v2451_v49, %v5418_v16  ;;  %v5431_v45 = vld [vmem:[#allocation62_spill] sm:$0xff]  ;;  %v5432_v16 = vld [vmem:[#allocation73_spill] sm:$0xff] }
 0x1c4   :  { %v2886_v27 = vadd.f32 %v4498_v56, %v2365_v39  ;;  %v2370_v38 = vpop.f32.mrf.mxu1  ;;  %v2453_v30 = vpop.f32.mrf.mxu0 }
 0x1c5   :  { %3110 = vst [vmem:[%s5265_s5 + $0x460] sm:$0xff] %v2959_v62  ;;  %v2910_v48 = vadd.f32 %v4521_v35, %v2369_v2  ;;  %v2837_v23 = vadd.f32 %v4476_v22, %v2452_v63  ;;  %v2371_v24 = vadd.f32 %v2370_v38, %v5419_v0  ;;  %v2454_v1 = vadd.f32 %v2453_v30, %v5420_v20  ;;  %v5433_v0 = vld [vmem:[#allocation64_spill] sm:$0xff]  ;;  %v5434_v20 = vld [vmem:[#allocation75_spill] sm:$0xff] }
 0x1c6   :  { %3037 = vst [vmem:[%s5265_s5 + $0x218] sm:$0xff] %v2886_v27  ;;  %v2374_v18 = vpop.f32.mrf.mxu1  ;;  %v2457_v33 = vpop.f32.mrf.mxu0 }
 0x1c7   :  { %3061 = vst [vmem:[%s5265_s5 + $0x2d8] sm:$0xff] %v2910_v48  ;;  %2987 = vst [vmem:[%s5265_s5 + $0x90] sm:$0xff] %v2837_v23  ;;  %v2911_v57 = vadd.f32 %v4521_v35, %v2371_v24  ;;  %v2838_v31 = vadd.f32 %v4476_v22, %v2454_v1  ;;  %v2375_v26 = vadd.f32 %v2374_v18, %v5421_v52  ;;  %v5435_v52 = vld [vmem:[#allocation66_spill] sm:$0xff] }
 0x1c8   :  { %v2458_v5 = vadd.f32 %v2457_v33, %v5422_v42  ;;  %v2376_v4 = vpop.f32.mrf.mxu1  ;;  %v2459_v37 = vpop.f32.mrf.mxu0  ;;  %v5436_v42 = vld [vmem:[#allocation77_spill] sm:$0xff] }
 0x1c9   :  { %3062 = vst [vmem:[%s5265_s5 + $0x2e0] sm:$0xff] %v2911_v57  ;;  %2988 = vst [vmem:[%s5265_s5 + $0x98] sm:$0xff] %v2838_v31  ;;  %v2935_v47 = vadd.f32 %v4536_v53, %v2375_v26  ;;  %v2377_v3 = vadd.f32 %v2376_v4, %v5423_v29  ;;  %v2460_v55 = vadd.f32 %v2459_v37, %v5424_v10  ;;  %v5437_v29 = vld [vmem:[#allocation68_spill] sm:$0xff]  ;;  %v5438_v10 = vld [vmem:[#allocation79_spill] sm:$0xff] }
 0x1ca   :  { %v2862_v7 = vadd.f32 %v4489_v25, %v2458_v5  ;;  %v2380_v59 = vpop.f32.mrf.mxu1  ;;  %v2463_v8 = vpop.f32.mrf.mxu0 }
 0x1cb   :  { %3086 = vst [vmem:[%s5265_s5 + $0x3a0] sm:$0xff] %v2935_v47  ;;  %v2936_v32 = vadd.f32 %v4536_v53, %v2377_v3  ;;  %v2863_v44 = vadd.f32 %v4489_v25, %v2460_v55  ;;  %v2381_v43 = vadd.f32 %v2380_v59, %v5425_v13  ;;  %v2464_v58 = vadd.f32 %v2463_v8, %v5426_v17  ;;  %v5439_v13 = vld [vmem:[#allocation70_spill] sm:$0xff]  ;;  %v5440_v17 = vld [vmem:[#allocation81_spill] sm:$0xff] }
 0x1cc   :  { %3013 = vst [vmem:[%s5265_s5 + $0x158] sm:$0xff] %v2862_v7  ;;  %v2382_v34 = vpop.f32.mrf.mxu1  ;;  %v2465_v51 = vpop.f32.mrf.mxu0 }
 0x1cd   :  { %3087 = vst [vmem:[%s5265_s5 + $0x3a8] sm:$0xff] %v2936_v32  ;;  %3014 = vst [vmem:[%s5265_s5 + $0x160] sm:$0xff] %v2863_v44  ;;  %v2960_v15 = vadd.f32 %v4558_v41, %v2381_v43  ;;  %v2887_v11 = vadd.f32 %v4498_v56, %v2464_v58  ;;  %v2383_v28 = vadd.f32 %v2382_v34, %v5427_v36  ;;  %v5441_v36 = vld [vmem:[#allocation83_spill] sm:$0xff] }
 0x1ce   :  { %v2466_v61 = vadd.f32 %v2465_v51, %v5428_v40  ;;  %v2469_v19 = vpop.f32.mrf.mxu0  ;;  %v2552_v60 = vpop.f32.mrf.mxu1  ;;  %v5442_v40 = vld [vmem:[#allocation72_spill] sm:$0xff] }
 0x1cf   :  { %3111 = vst [vmem:[%s5265_s5 + $0x468] sm:$0xff] %v2960_v15  ;;  %3038 = vst [vmem:[%s5265_s5 + $0x220] sm:$0xff] %v2887_v11  ;;  %v2961_v54 = vadd.f32 %v4558_v41, %v2383_v28  ;;  %v2470_v46 = vadd.f32 %v2469_v19, %v5429_v50  ;;  %v2553_v39 = vadd.f32 %v2552_v60, %v5430_v21  ;;  %v5443_v50 = vld [vmem:[#allocation85_spill] sm:$0xff]  ;;  %v5444_v21 = vld [vmem:[#allocation74_spill] sm:$0xff] }
 0x1d0   :  { %v2888_v14 = vadd.f32 %v4498_v56, %v2466_v61  ;;  %v2471_v6 = vpop.f32.mrf.mxu0  ;;  %v2554_v49 = vpop.f32.mrf.mxu1 }
 0x1d1   :  { %3112 = vst [vmem:[%s5265_s5 + $0x470] sm:$0xff] %v2961_v54  ;;  %v2912_v62 = vadd.f32 %v4521_v35, %v2470_v46  ;;  %v2839_v27 = vadd.f32 %v4476_v22, %v2553_v39  ;;  %v2472_v2 = vadd.f32 %v2471_v6, %v5431_v45  ;;  %v2555_v63 = vadd.f32 %v2554_v49, %v5432_v16  ;;  %v5445_v45 = vld [vmem:[#allocation87_spill] sm:$0xff]  ;;  %v5446_v16 = vld [vmem:[#allocation76_spill] sm:$0xff] }
 0x1d2   :  { %3039 = vst [vmem:[%s5265_s5 + $0x228] sm:$0xff] %v2888_v14  ;;  %v2475_v38 = vpop.f32.mrf.mxu0  ;;  %v2558_v30 = vpop.f32.mrf.mxu1 }
 0x1d3   :  { %3063 = vst [vmem:[%s5265_s5 + $0x2e8] sm:$0xff] %v2912_v62  ;;  %2989 = vst [vmem:[%s5265_s5 + $0xa0] sm:$0xff] %v2839_v27  ;;  %v2913_v48 = vadd.f32 %v4521_v35, %v2472_v2  ;;  %v2840_v23 = vadd.f32 %v4476_v22, %v2555_v63  ;;  %v2476_v24 = vadd.f32 %v2475_v38, %v5433_v0  ;;  %v5447_v0 = vld [vmem:[#allocation89_spill] sm:$0xff] }
 0x1d4   :  { %v2559_v1 = vadd.f32 %v2558_v30, %v5434_v20  ;;  %v2477_v18 = vpop.f32.mrf.mxu0  ;;  %v2560_v33 = vpop.f32.mrf.mxu1  ;;  %v5448_v20 = vld [vmem:[#allocation78_spill] sm:$0xff] }
 0x1d5   :  { %3064 = vst [vmem:[%s5265_s5 + $0x2f0] sm:$0xff] %v2913_v48  ;;  %2990 = vst [vmem:[%s5265_s5 + $0xa8] sm:$0xff] %v2840_v23  ;;  %v2937_v57 = vadd.f32 %v4536_v53, %v2476_v24  ;;  %v2478_v26 = vadd.f32 %v2477_v18, %v5435_v52  ;;  %v2561_v5 = vadd.f32 %v2560_v33, %v5436_v42  ;;  %v5449_v52 = vld [vmem:[#allocation91_spill] sm:$0xff]  ;;  %v5450_v42 = vld [vmem:[#allocation80_spill] sm:$0xff] }
 0x1d6   :  { %v2864_v31 = vadd.f32 %v4489_v25, %v2559_v1  ;;  %v2481_v4 = vpop.f32.mrf.mxu0  ;;  %v2564_v37 = vpop.f32.mrf.mxu1 }
 0x1d7   :  { %3088 = vst [vmem:[%s5265_s5 + $0x3b0] sm:$0xff] %v2937_v57  ;;  %v2938_v47 = vadd.f32 %v4536_v53, %v2478_v26  ;;  %v2865_v7 = vadd.f32 %v4489_v25, %v2561_v5  ;;  %v2482_v3 = vadd.f32 %v2481_v4, %v5437_v29  ;;  %v2565_v55 = vadd.f32 %v2564_v37, %v5438_v10 }
 0x1d8   :  { %3015 = vst [vmem:[%s5265_s5 + $0x168] sm:$0xff] %v2864_v31  ;;  %v2483_v59 = vpop.f32.mrf.mxu0  ;;  %v2566_v8 = vpop.f32.mrf.mxu1 }
 0x1d9   :  { %3089 = vst [vmem:[%s5265_s5 + $0x3b8] sm:$0xff] %v2938_v47  ;;  %3016 = vst [vmem:[%s5265_s5 + $0x170] sm:$0xff] %v2865_v7  ;;  %v2962_v32 = vadd.f32 %v4558_v41, %v2482_v3  ;;  %v2889_v44 = vadd.f32 %v4498_v56, %v2565_v55  ;;  %v2484_v43 = vadd.f32 %v2483_v59, %v5439_v13  ;;  %v5451_v3 = vld [vmem:[#allocation82_spill] sm:$0xff] }
 0x1da   :  { %v2567_v58 = vadd.f32 %v2566_v8, %v5440_v17  ;;  %v2570_v34 = vpop.f32.mrf.mxu1  ;;  %v2653_v51 = vpop.f32.mrf.mxu0 }
 0x1db   :  { %3113 = vst [vmem:[%s5265_s5 + $0x478] sm:$0xff] %v2962_v32  ;;  %3040 = vst [vmem:[%s5265_s5 + $0x230] sm:$0xff] %v2889_v44  ;;  %v2963_v15 = vadd.f32 %v4558_v41, %v2484_v43  ;;  %v2571_v28 = vadd.f32 %v2570_v34, %v5441_v36  ;;  %v2654_v61 = vadd.f32 %v2653_v51, %v5442_v40  ;;  %v5452_v44 = vld [vmem:[#allocation84_spill] sm:$0xff]  ;;  %v5453_v51 = vld [vmem:[#allocation86_spill] sm:$0xff] }
 0x1dc   :  { %v2890_v11 = vadd.f32 %v4498_v56, %v2567_v58  ;;  %v2572_v19 = vpop.f32.mrf.mxu1  ;;  %v2655_v60 = vpop.f32.mrf.mxu0 }
 0x1dd   :  { %3114 = vst [vmem:[%s5265_s5 + $0x480] sm:$0xff] %v2963_v15  ;;  %v2914_v54 = vadd.f32 %v4521_v35, %v2571_v28  ;;  %v2841_v14 = vadd.f32 %v4476_v22, %v2654_v61  ;;  %v2573_v46 = vadd.f32 %v2572_v19, %v5443_v50  ;;  %v2656_v39 = vadd.f32 %v2655_v60, %v5444_v21  ;;  %v5456_v60 = vld [vmem:[#allocation95_spill] sm:$0xff] }
 0x1de   :  { %3041 = vst [vmem:[%s5265_s5 + $0x238] sm:$0xff] %v2890_v11  ;;  %v2576_v6 = vpop.f32.mrf.mxu1  ;;  %v2659_v49 = vpop.f32.mrf.mxu0  ;;  %v5454_v11 = vld [vmem:[#allocation94_spill] sm:$0xff] }
 0x1df   :  { %3065 = vst [vmem:[%s5265_s5 + $0x2f8] sm:$0xff] %v2914_v54  ;;  %2991 = vst [vmem:[%s5265_s5 + $0xb0] sm:$0xff] %v2841_v14  ;;  %v2915_v62 = vadd.f32 %v4521_v35, %v2573_v46  ;;  %v2842_v27 = vadd.f32 %v4476_v22, %v2656_v39  ;;  %v2577_v2 = vadd.f32 %v2576_v6, %v5445_v45  ;;  %v5458_v6 = vld [vmem:[#allocation96_spill] sm:$0xff] }
 0x1e0   :  { %v2660_v63 = vadd.f32 %v2659_v49, %v5446_v16  ;;  %v2578_v38 = vpop.f32.mrf.mxu1  ;;  %v2661_v30 = vpop.f32.mrf.mxu0 }
 0x1e1   :  { %3066 = vst [vmem:[%s5265_s5 + $0x300] sm:$0xff] %v2915_v62  ;;  %2992 = vst [vmem:[%s5265_s5 + $0xb8] sm:$0xff] %v2842_v27  ;;  %v2939_v48 = vadd.f32 %v4536_v53, %v2577_v2  ;;  %v2579_v24 = vadd.f32 %v2578_v38, %v5447_v0  ;;  %v2662_v1 = vadd.f32 %v2661_v30, %v5448_v20  ;;  %v5462_v20 = vld [vmem:[#allocation98_spill] sm:$0xff] }
 0x1e2   :  { %v2866_v23 = vadd.f32 %v4489_v25, %v2660_v63  ;;  %v2582_v18 = vpop.f32.mrf.mxu1  ;;  %v2665_v33 = vpop.f32.mrf.mxu0  ;;  %v5460_v63 = vld [vmem:[#allocation97_spill] sm:$0xff] }
 0x1e3   :  { %3090 = vst [vmem:[%s5265_s5 + $0x3c0] sm:$0xff] %v2939_v48  ;;  %v2940_v57 = vadd.f32 %v4536_v53, %v2579_v24  ;;  %v2867_v31 = vadd.f32 %v4489_v25, %v2662_v1  ;;  %v2583_v26 = vadd.f32 %v2582_v18, %v5449_v52  ;;  %v2666_v5 = vadd.f32 %v2665_v33, %v5450_v42 }
 0x1e4   :  { %3017 = vst [vmem:[%s5265_s5 + $0x178] sm:$0xff] %v2866_v23  ;;  %v2584_v4 = vpop.f32.mrf.mxu1  ;;  %v2667_v37 = vpop.f32.mrf.mxu0 }
 0x1e5   :  { %3091 = vst [vmem:[%s5265_s5 + $0x3c8] sm:$0xff] %v2940_v57  ;;  %3018 = vst [vmem:[%s5265_s5 + $0x180] sm:$0xff] %v2867_v31  ;;  %v2964_v47 = vadd.f32 %v4558_v41, %v2583_v26  ;;  %v2891_v7 = vadd.f32 %v4498_v56, %v2666_v5  ;;  %v2585_v29 = vadd.f32 %v2584_v4, %v4478_v12 }
 0x1e6   :  { %v2668_v10 = vadd.f32 %v2667_v37, %v5451_v3  ;;  %v2671_v55 = vpop.f32.mrf.mxu0  ;;  %v3315_v59 = vpop.f32.mrf.mxu1 }
 0x1e7   :  { %3115 = vst [vmem:[%s5265_s5 + $0x488] sm:$0xff] %v2964_v47  ;;  %3042 = vst [vmem:[%s5265_s5 + $0x240] sm:$0xff] %v2891_v7  ;;  %v2965_v8 = vadd.f32 %v4558_v41, %v2585_v29  ;;  %v2672_v13 = vadd.f32 %v2671_v55, %v5452_v44  ;;  %v2760_v12 = vadd.f32 %v3315_v59, %v4482_v9 }
 0x1e8   :  { %v2892_v32 = vadd.f32 %v4498_v56, %v2668_v10  ;;  %v2673_v43 = vpop.f32.mrf.mxu0  ;;  %v2754_v17 = vpop.f32.mrf.mxu1 }
 0x1e9   :  { %3116 = vst [vmem:[%s5265_s5 + $0x490] sm:$0xff] %v2965_v8  ;;  %v2916_v58 = vadd.f32 %v4521_v35, %v2672_v13  ;;  %v2868_v34 = vadd.f32 %v4489_v25, %v2760_v12  ;;  %v2674_v15 = vadd.f32 %v2673_v43, %v5453_v51  ;;  %v2755_v36 = vadd.f32 %v2754_v17, %v5454_v11  ;;  %v5455_v25 = vld [vmem:[#allocation88_spill] sm:$0xff] }
 0x1ea   :  { %3043 = vst [vmem:[%s5265_s5 + $0x248] sm:$0xff] %v2892_v32  ;;  %v2677_v9 = vpop.f32.mrf.mxu0  ;;  %v3318_v28 = vpop.f32.mrf.mxu1 }
 0x1eb   :  { %3067 = vst [vmem:[%s5265_s5 + $0x308] sm:$0xff] %v2916_v58  ;;  %3019 = vst.msk [vmem:[%s5265_s5 + $0x188] sm:$0xff] %vm2993_vm1, %v2868_v34  ;;  %v2917_v40 = vadd.f32 %v4521_v35, %v2674_v15  ;;  %v2843_v61 = vadd.f32 %v4476_v22, %v2755_v36  ;;  %v2678_v19 = vadd.f32 %v2677_v9, %v5455_v25  ;;  %v5457_v22 = vld [vmem:[#allocation90_spill] sm:$0xff] }
 0x1ec   :  { %v2770_v54 = vadd.f32 %v3318_v28, %v5456_v60  ;;  %v2679_v14 = vpop.f32.mrf.mxu0  ;;  %v2764_v50 = vpop.f32.mrf.mxu1 }
 0x1ed   :  { %3068 = vst [vmem:[%s5265_s5 + $0x310] sm:$0xff] %v2917_v40  ;;  %2994 = vst.msk [vmem:[%s5265_s5 + $0xc0] sm:$0xff] %vm2993_vm1, %v2843_v61  ;;  %v2941_v46 = vadd.f32 %v4536_v53, %v2678_v19  ;;  %v2680_v39 = vadd.f32 %v2679_v14, %v5457_v22  ;;  %v2765_v49 = vadd.f32 %v2764_v50, %v5458_v6 }
 0x1ee   :  { %v2918_v21 = vadd.f32 %v4521_v35, %v2770_v54  ;;  %v2683_v62 = vpop.f32.mrf.mxu0  ;;  %v3321_v27 = vpop.f32.mrf.mxu1  ;;  %v5459_v35 = vld [vmem:[#allocation92_spill] sm:$0xff] }
 0x1ef   :  { %3092 = vst [vmem:[%s5265_s5 + $0x3d0] sm:$0xff] %v2941_v46  ;;  %v2942_v45 = vadd.f32 %v4536_v53, %v2680_v39  ;;  %v2893_v2 = vadd.f32 %v4498_v56, %v2765_v49  ;;  %v2684_v16 = vadd.f32 %v2683_v62, %v5459_v35  ;;  %v2780_v38 = vadd.f32 %v3321_v27, %v5460_v63  ;;  %v5461_v56 = vld [vmem:[#allocation93_spill] sm:$0xff] }
 0x1f0   :  { %3069 = vst.msk [vmem:[%s5265_s5 + $0x318] sm:$0xff] %vm2993_vm1, %v2918_v21  ;;  %v2685_v30 = vpop.f32.mrf.mxu0  ;;  %v2774_v48 = vpop.f32.mrf.mxu1 }
 0x1f1   :  { %3093 = vst [vmem:[%s5265_s5 + $0x3d8] sm:$0xff] %v2942_v45  ;;  %3044 = vst.msk [vmem:[%s5265_s5 + $0x250] sm:$0xff] %vm2993_vm1, %v2893_v2  ;;  %v2966_v23 = vadd.f32 %v4558_v41, %v2684_v16  ;;  %v2968_v0 = vadd.f32 %v4558_v41, %v2780_v38  ;;  %v2686_v24 = vadd.f32 %v2685_v30, %v5461_v56 }
 0x1f2   :  { %v2775_v1 = vadd.f32 %v2774_v48, %v5462_v20 }
 0x1f3   :  { %3117 = vst [vmem:[%s5265_s5 + $0x498] sm:$0xff] %v2966_v23  ;;  %3119 = vst.msk [vmem:[%s5265_s5 + $0x4a8] sm:$0xff] %vm2993_vm1, %v2968_v0  ;;  %v2967_v18 = vadd.f32 %v4558_v41, %v2686_v24 }
 0x1f4   :  { %v2943_v33 = vadd.f32 %v4536_v53, %v2775_v1 }
 0x1f5   :  { %3118 = vst [vmem:[%s5265_s5 + $0x4a0] sm:$0xff] %v2967_v18 }
 0x1f6   :  { %3094 = vst.msk [vmem:[%s5265_s5 + $0x3e0] sm:$0xff] %vm2993_vm1, %v2943_v33 }

</bundles_post_ra>
